<compile_context>
chip_gen: v7x
topology: tpu7x:2x2x1
jax: 0.10.0
libtpu: 0.0.40
codegen_flags: <defaults>
</compile_context>

<pallas_src>
import math
import numpy as np
import jax
import jax.numpy as jnp
from jax import lax
from jax.experimental import pallas as pl
from jax.experimental.pallas import tpu as pltpu

KERNEL_SIZES = (1, 3, 5)
DILATIONS = (1, 2, 3)
PMAX = max(d * (k // 2) for k, d in zip(KERNEL_SIZES, DILATIONS))  # = 6


def _round_up(a, m):
    return -(-a // m) * m


def _auto_act_dtype():
    """bf16 activations on v6e/v7x (bf16-native VPU/MXU); f32 on v5e and older."""
    try:
        kind = jax.devices()[0].device_kind.lower()
    except Exception:
        return jnp.float32
    if "v6" in kind or "v7" in kind:
        return jnp.bfloat16
    return jnp.float32


# --------------------------------------------------------------------------
# Pallas kernel
# --------------------------------------------------------------------------
def _make_mscb_kernel(B, Wp, Lout, lead, xs_base, mm_prec):
    def kernel(x_ref, w1_ref, b1_ref, mask_ref,
               wd0_ref, bd0_ref, wd1_ref, bd1_ref, wd2_ref, bd2_ref,
               w2_ref, wskip_ref, b2_ref, o_ref, p1_ref):
        # Grid-invariant operands: load / broadcast once per step (hoisted out
        # of the per-image loop so the broadcast is not re-emitted).
        w1 = w1_ref[...]
        bm = b1_ref[...] * mask_ref[...]          # (Cex, Lpad) masked BN1 bias
        w2 = w2_ref[...]
        wsk = wskip_ref[...]
        b2 = b2_ref[...]
        dw = ((KERNEL_SIZES[0], DILATIONS[0], wd0_ref, bd0_ref),
              (KERNEL_SIZES[1], DILATIONS[1], wd1_ref, bd1_ref),
              (KERNEL_SIZES[2], DILATIONS[2], wd2_ref, bd2_ref))

        for b in range(B):                         # static unroll, B is small
            # ---- pconv1 (BN scale folded into w1, masked bias keeps the halo
            #      exactly zero), ReLU6, stored once to the single-image VMEM
            #      scratch that the tap windows read from.
            xb = x_ref[b].astype(jnp.float32)      # (Cin, Lpad)
            p1 = jnp.clip(
                jnp.dot(w1, xb, preferred_element_type=jnp.float32,
                        precision=mm_prec) + bm, 0.0, 6.0)
            p1_ref[...] = p1.astype(p1_ref.dtype)

            # ---- multi-scale dilated depthwise convs (+folded BN, ReLU6),
            #      summed.  Only this image's Lout lanes are computed (no
            #      cross-image junk lanes); f32 accumulation on the VPU.
            dout = None
            for k, d, w_ref, bd_ref in dw:
                off = PMAX - d * (k // 2)          # PyTorch padding per scale
                acc = None
                for ki in range(k):
                    for kj in range(k):
                        base = lead + (off + ki * d) * Wp + (off + kj * d)
                        t = ki * k + kj
                        win = p1_ref[:, base:base + Lout].astype(jnp.float32)
                        term = w_ref[:, t:t + 1] * win
                        acc = term if acc is None else acc + term
                y = jnp.clip(acc + bd_ref[...], 0.0, 6.0)
                dout = y if dout is None else dout + y

            # ---- pconv2 (BN scale + channel shuffle folded into w2) and the
            #      1x1 skip conv: two matmuls into one f32 accumulator
            #      (no sublane concat); skip slice is lane-aligned (xs_base%128==0).
            xskip = xb[:, xs_base:xs_base + Lout]
            out = (jnp.dot(w2, dout, preferred_element_type=jnp.float32,
                           precision=mm_prec)
                   + jnp.dot(wsk, xskip, preferred_element_type=jnp.float32,
                             precision=mm_prec)
                   + b2)
            o_ref[b] = out.astype(o_ref.dtype)

    return kernel


# --------------------------------------------------------------------------
# Parameter init (deterministic, mirrors MSCB.__init__ shapes)
# --------------------------------------------------------------------------
def init_mscb_params(key, in_channels, out_channels, expansion_factor=2):
    ex = int(in_channels * expansion_factor)
    keys = iter(jax.random.split(key, 32))

    def conv(shape):                       # 'normal' init scheme: std=0.02
        return 0.02 * jax.random.normal(next(keys), shape, jnp.float32)

    def bn(c):                             # BN params (non-trivial, deterministic)
        return dict(
            gamma=1.0 + 0.1 * jax.random.normal(next(keys), (c,), jnp.float32),
            beta=0.1 * jax.random.normal(next(keys), (c,), jnp.float32),
            mean=jnp.zeros((c,), jnp.float32),
            var=jnp.ones((c,), jnp.float32),
            eps=1e-5)

    p = dict(
        in_channels=in_channels, out_channels=out_channels, ex_channels=ex,
        w1=conv((ex, in_channels)), bn1=bn(ex),
        wd=[conv((ex, k, k)) for k in KERNEL_SIZES],
        bnd=[bn(ex) for _ in KERNEL_SIZES],
        w2=conv((out_channels, ex)), bn2=bn(out_channels),
    )
    if in_channels != out_channels:
        p['wskip'] = conv((out_channels, in_channels))
    else:
        p['wskip'] = jnp.eye(out_channels, dtype=jnp.float32)  # identity skip
    return p


def _fold_bn(bn):
    scale = bn['gamma'] / jnp.sqrt(bn['var'] + bn['eps'])
    shift = bn['beta'] - bn['mean'] * scale
    return scale, shift


# --------------------------------------------------------------------------
# Wrapper: layout glue + pallas_call
# --------------------------------------------------------------------------
def mscb_forward(x, p, batch_block=None, act_dtype=None, vmem_budget_bytes=None):
    N, Cin, H, W = x.shape
    Cex, Cout = p['ex_channels'], p['out_channels']
    Hp, Wp = H + 2 * PMAX, W + 2 * PMAX

    if act_dtype is None:
        act_dtype = _auto_act_dtype()
    act_bytes = jnp.dtype(act_dtype).itemsize
    mm_prec = (lax.Precision.HIGHEST
               if jnp.dtype(act_dtype) == jnp.dtype(jnp.float32)
               else lax.Precision.DEFAULT)

    Cout_pad = _round_up(Cout, 8)          # unmasked (8-sublane) output stores

    # Per-image flat output span, 128-aligned so output stores are unmasked.
    Lout = _round_up(H * Wp, 128)
    # Leading slab pad so the interior (0,0) / skip-slice offset is lane-aligned.
    xs_base0 = PMAX * Wp + PMAX
    lead = (-xs_base0) % 128
    xs_base = xs_base0 + lead
    # Worst-case tap start offset within an image's padded-flat slab.
    base_max = lead + max((PMAX + d * (k // 2)) * (Wp + 1)
                          for k, d in zip(KERNEL_SIZES, DILATIONS))
    # Per-image slab length (multiple of 128): holds the padded image and keeps
    # every tap / skip slice in bounds.
    Lpad = _round_up(max(lead + Hp * Wp, base_max + Lout), 128)

    # ---- VMEM-budget-aware images-per-step; keep >=2 grid steps when possible
    #      so DMA/compute overlap and megacore sharding stay available.
    if vmem_budget_bytes is None:
        vmem_budget_bytes = 24 << 20       # under the 32 MiB scoped limit set below
    weights_bytes = 4 * 2 * (Cex * Cin + 2 * Cex + Lpad
                             + sum(Cex * k * k + Cex for k in KERNEL_SIZES)
                             + Cout_pad * (Cex + Cin + 1))
    fixed = Cex * Lpad * act_bytes + weights_bytes          # p1 scratch + weights
    per_img = 2 * Cin * Lpad * act_bytes + 2 * Cout_pad * Lout * 4
    if batch_block is None:
        divisors = [b for b in range(1, N + 1) if N % b == 0]
        feasible = [b for b in divisors
                    if fixed + b * per_img <= vmem_budget_bytes] or [1]
        pref = [b for b in feasible if N // b >= 2]
        batch_block = max(pref) if pref else max(feasible)
    B = batch_block
    assert N % B == 0
    Nc = N // B

    # ---- fold BN affines into weights; fold channel shuffle into pconv2 ----
    s1, b1 = _fold_bn(p['bn1'])
    s2, b2 = _fold_bn(p['bn2'])
    w1s = p['w1'] * s1[:, None]                                    # (Cex, Cin)

    g = math.gcd(Cex, Cout)
    cpg = Cex // g
    perm = np.array([(c % cpg) * g + (c // cpg) for c in range(Cex)])
    w2s = p['w2'][:, perm] * s2[:, None]                           # (Cout, Cex)
    w2s = jnp.pad(w2s, ((0, Cout_pad - Cout), (0, 0)))
    wskip = jnp.pad(p['wskip'], ((0, Cout_pad - Cout), (0, 0)))    # (Cout_pad, Cin)
    b2p = jnp.pad(b2, (0, Cout_pad - Cout)).reshape(Cout_pad, 1)

    dw_args = []
    for k, wd, bnd in zip(KERNEL_SIZES, p['wd'], p['bnd']):
        sd, bd = _fold_bn(bnd)
        dw_args += [(wd * sd[:, None, None]).reshape(Cex, k * k),
                    bd.reshape(Cex, 1)]

    # Halo mask (1, Lpad): BN1 bias is applied only to interior pixels so the
    # padded-flat p1 is exactly zero in the halo (== zero padding for the dw convs).
    mask = np.zeros((Lpad,), np.float32)
    interior = np.zeros((Hp, Wp), np.float32)
    interior[PMAX:PMAX + H, PMAX:PMAX + W] = 1.0
    mask[lead:lead + Hp * Wp] = interior.reshape(-1)
    mask = jnp.asarray(mask).reshape(1, Lpad)

    # ---- layout: zero-pad each image + flatten; batch order kept (no transpose) --
    xf = jnp.pad(x, ((0, 0), (0, 0), (PMAX, PMAX), (PMAX, PMAX)))
    xf = xf.reshape(N, Cin, Hp * Wp)
    xf = jnp.pad(xf, ((0, 0), (0, 0), (lead, Lpad - lead - Hp * Wp)))
    xf = xf.astype(act_dtype)                                      # (N, Cin, Lpad)

    args = [xf, w1s, b1.reshape(Cex, 1), mask, *dw_args, w2s, wskip, b2p]

    # Grid-invariant operands use constant index maps, so Pallas skips their
    # re-fetch between steps.  (They are tiny after dropping the dense b1m
    # operand, so forcing single-buffering via pipeline_mode is not worth it.)
    in_specs = [pl.BlockSpec((B, Cin, Lpad), lambda nb: (nb, 0, 0))]
    in_specs += [pl.BlockSpec(tuple(a.shape), lambda nb, _nd=a.ndim: (0,) * _nd)
                 for a in args[1:]]

    out = pl.pallas_call(
        _make_mscb_kernel(B, Wp, Lout, lead, xs_base, mm_prec),
        out_shape=jax.ShapeDtypeStruct((N, Cout_pad, Lout), jnp.float32),
        grid_spec=pltpu.PrefetchScalarGridSpec(
            num_scalar_prefetch=0,
            grid=(Nc,),
            in_specs=in_specs,
            out_specs=pl.BlockSpec((B, Cout_pad, Lout), lambda nb: (nb, 0, 0)),
            scratch_shapes=[pltpu.VMEM((Cex, Lpad), act_dtype)]),
        compiler_params=pltpu.CompilerParams(
            dimension_semantics=("parallel",),
            vmem_limit_bytes=32 * 1024 * 1024),
    )(*args)

    # ---- extract valid channels / (H, W) pixels from the padded-flat output ----
    out = out[:, :Cout, :H * Wp].reshape(N, Cout, H, Wp)[:, :, :, :W]
    return out


# --------------------------------------------------------------------------
# Pure-JAX reference (same math, explicit channel shuffle) for validation
# --------------------------------------------------------------------------
def mscb_reference(x, p):
    N, Cin, H, W = x.shape
    Cex, Cout = p['ex_channels'], p['out_channels']
    s1, b1 = _fold_bn(p['bn1'])
    s2, b2 = _fold_bn(p['bn2'])

    p1 = jnp.einsum('ec,nchw->nehw', p['w1'], x)
    p1 = jnp.clip(p1 * s1[None, :, None, None] + b1[None, :, None, None], 0.0, 6.0)

    dout = jnp.zeros((N, Cex, H, W), jnp.float32)
    for k, d, wd, bnd in zip(KERNEL_SIZES, DILATIONS, p['wd'], p['bnd']):
        pad = d * (k // 2)
        y = lax.conv_general_dilated(
            p1, wd.reshape(Cex, 1, k, k), window_strides=(1, 1),
            padding=[(pad, pad), (pad, pad)], rhs_dilation=(d, d),
            feature_group_count=Cex,
            dimension_numbers=('NCHW', 'OIHW', 'NCHW'))
        sd, bd = _fold_bn(bnd)
        dout = dout + jnp.clip(y * sd[None, :, None, None] + bd[None, :, None, None],
                               0.0, 6.0)

    g = math.gcd(Cex, Cout)
    dout = dout.reshape(N, g, Cex // g, H, W).transpose(0, 2, 1, 3, 4).reshape(N, Cex, H, W)
    out = jnp.einsum('oe,nehw->nohw', p['w2'], dout)
    out = out * s2[None, :, None, None] + b2[None, :, None, None]
    skip = jnp.einsum('oc,nchw->nohw', p['wskip'], x)
    return skip + out


# --------------------------------------------------------------------------
if __name__ == "__main__":
    jax.config.update("jax_default_matmul_precision", "highest")

    N, Cin, Cout, H, W = 2, 4, 6, 16, 16     # stride=1, expansion=2 -> Cex=8
    key = jax.random.PRNGKey(0)
    kx, kp = jax.random.split(key)
    x = jax.random.normal(kx, (N, Cin, H, W), jnp.float32)
    params = init_mscb_params(kp, Cin, Cout, expansion_factor=2)

    act_dtype = _auto_act_dtype()
    out = jax.block_until_ready(mscb_forward(x, params, act_dtype=act_dtype))
    assert out.shape == (N, Cout, H, W)

    ref = jax.block_until_ready(mscb_reference(x, params))
    tol = 2e-3 if jnp.dtype(act_dtype) == jnp.dtype(jnp.float32) else 1e-2
    np.testing.assert_allclose(np.asarray(out), np.asarray(ref), rtol=tol, atol=tol)

    print("KERNEL_OK")
</pallas_src>

<mosaic_0001>
module attributes {stable_mosaic.version = 11 : i64} {
  func.func @kernel(%arg0: i32, %arg1: memref<1x4x1024xf32, #tpu.memory_space<vmem>>, %arg2: memref<8x4xf32, #tpu.memory_space<vmem>>, %arg3: memref<8x1xf32, #tpu.memory_space<vmem>>, %arg4: memref<1x1024xf32, #tpu.memory_space<vmem>>, %arg5: memref<8x1xf32, #tpu.memory_space<vmem>>, %arg6: memref<8x1xf32, #tpu.memory_space<vmem>>, %arg7: memref<8x9xf32, #tpu.memory_space<vmem>>, %arg8: memref<8x1xf32, #tpu.memory_space<vmem>>, %arg9: memref<8x25xf32, #tpu.memory_space<vmem>>, %arg10: memref<8x1xf32, #tpu.memory_space<vmem>>, %arg11: memref<8x8xf32, #tpu.memory_space<vmem>>, %arg12: memref<8x4xf32, #tpu.memory_space<vmem>>, %arg13: memref<8x1xf32, #tpu.memory_space<vmem>>, %arg14: memref<1x8x512xf32, #tpu.memory_space<vmem>>, %arg15: memref<8x1024xf32, #tpu.memory_space<vmem>>) attributes {dimension_semantics = [#tpu.dimension_semantics<parallel>], iteration_bounds = array<i64: 2>, scalar_prefetch = 0 : i64, scratch_operands = 1 : i64, tpu.core_type = #tpu.core_type<tc>, window_params = [{transform_indices = @transform_0, window_bounds = array<i64: 1, 4, 1024>}, {pipeline_mode = #tpu.pipeline_mode<synchronous>, transform_indices = @transform_1, window_bounds = array<i64: 8, 4>}, {pipeline_mode = #tpu.pipeline_mode<synchronous>, transform_indices = @transform_2, window_bounds = array<i64: 8, 1>}, {pipeline_mode = #tpu.pipeline_mode<synchronous>, transform_indices = @transform_3, window_bounds = array<i64: 1, 1024>}, {pipeline_mode = #tpu.pipeline_mode<synchronous>, transform_indices = @transform_4, window_bounds = array<i64: 8, 1>}, {pipeline_mode = #tpu.pipeline_mode<synchronous>, transform_indices = @transform_5, window_bounds = array<i64: 8, 1>}, {pipeline_mode = #tpu.pipeline_mode<synchronous>, transform_indices = @transform_6, window_bounds = array<i64: 8, 9>}, {pipeline_mode = #tpu.pipeline_mode<synchronous>, transform_indices = @transform_7, window_bounds = array<i64: 8, 1>}, {pipeline_mode = #tpu.pipeline_mode<synchronous>, transform_indices = @transform_8, window_bounds = array<i64: 8, 25>}, {pipeline_mode = #tpu.pipeline_mode<synchronous>, transform_indices = @transform_9, window_bounds = array<i64: 8, 1>}, {pipeline_mode = #tpu.pipeline_mode<synchronous>, transform_indices = @transform_10, window_bounds = array<i64: 8, 8>}, {pipeline_mode = #tpu.pipeline_mode<synchronous>, transform_indices = @transform_11, window_bounds = array<i64: 8, 4>}, {pipeline_mode = #tpu.pipeline_mode<synchronous>, transform_indices = @transform_12, window_bounds = array<i64: 8, 1>}, {transform_indices = @transform_13, window_bounds = array<i64: 1, 8, 512>}]} {
    %c0 = arith.constant 0 : index
    %c0_0 = arith.constant 0 : index
    %0 = vector.load %arg2[%c0, %c0_0] : memref<8x4xf32, #tpu.memory_space<vmem>>, vector<8x4xf32>
    %c0_1 = arith.constant 0 : index
    %c0_2 = arith.constant 0 : index
    %1 = vector.load %arg3[%c0_1, %c0_2] : memref<8x1xf32, #tpu.memory_space<vmem>>, vector<8x1xf32>
    %c0_3 = arith.constant 0 : index
    %c0_4 = arith.constant 0 : index
    %2 = vector.load %arg4[%c0_3, %c0_4] : memref<1x1024xf32, #tpu.memory_space<vmem>>, vector<1x1024xf32>
    %3 = vector.broadcast %1 : vector<8x1xf32> to vector<8x1024xf32>
    %4 = vector.broadcast %2 : vector<1x1024xf32> to vector<8x1024xf32>
    %5 = arith.mulf %3, %4 : vector<8x1024xf32>
    %c0_5 = arith.constant 0 : index
    %c0_6 = arith.constant 0 : index
    %6 = vector.load %arg11[%c0_5, %c0_6] : memref<8x8xf32, #tpu.memory_space<vmem>>, vector<8x8xf32>
    %c0_7 = arith.constant 0 : index
    %c0_8 = arith.constant 0 : index
    %7 = vector.load %arg12[%c0_7, %c0_8] : memref<8x4xf32, #tpu.memory_space<vmem>>, vector<8x4xf32>
    %c0_9 = arith.constant 0 : index
    %c0_10 = arith.constant 0 : index
    %8 = vector.load %arg13[%c0_9, %c0_10] : memref<8x1xf32, #tpu.memory_space<vmem>>, vector<8x1xf32>
    %c0_11 = arith.constant 0 : index
    %c0_12 = arith.constant 0 : index
    %c0_13 = arith.constant 0 : index
    %9 = vector.load %arg1[%c0_11, %c0_12, %c0_13] : memref<1x4x1024xf32, #tpu.memory_space<vmem>>, vector<1x4x1024xf32>
    %10 = vector.shape_cast %9 : vector<1x4x1024xf32> to vector<4x1024xf32>
    %cst = arith.constant dense<0.000000e+00> : vector<8x1024xf32>
    %11 = tpu.matmul %0, %10, %cst {dimension_numbers = #tpu.dot_dimension_numbers<[1], [0], [0], [1], [0, 0, 1, 1], [], []>, precision = #tpu.contract_precision<fp32>} : vector<8x4xf32>, vector<4x1024xf32>, vector<8x1024xf32> -> vector<8x1024xf32>
    %12 = arith.addf %11, %5 : vector<8x1024xf32>
    %cst_14 = arith.constant 0.000000e+00 : f32
    %cst_15 = arith.constant 6.000000e+00 : f32
    %13 = vector.broadcast %cst_14 : f32 to vector<8x1024xf32>
    %14 = arith.maximumf %13, %12 : vector<8x1024xf32>
    %15 = vector.broadcast %cst_15 : f32 to vector<8x1024xf32>
    %16 = arith.minimumf %15, %14 : vector<8x1024xf32>
    %c0_16 = arith.constant 0 : index
    %c0_17 = arith.constant 0 : index
    %17 = vector.load %arg15[%c0_16, %c0_17] : memref<8x1024xf32, #tpu.memory_space<vmem>>, vector<8x1024xf32>
    tpu.vector_store %arg15[%c0_16, %c0_17], %16 {strides = array<i32>} : memref<8x1024xf32, #tpu.memory_space<vmem>>, vector<8x1024xf32>,
    %c0_18 = arith.constant 0 : index
    %c256 = arith.constant 256 : index
    %18 = vector.load %arg15[%c0_18, %c256] : memref<8x1024xf32, #tpu.memory_space<vmem>>, vector<8x512xf32>
    %c0_19 = arith.constant 0 : index
    %c0_20 = arith.constant 0 : index
    %19 = vector.load %arg5[%c0_19, %c0_20] : memref<8x1xf32, #tpu.memory_space<vmem>>, vector<8x1xf32>
    %20 = vector.broadcast %19 : vector<8x1xf32> to vector<8x512xf32>
    %21 = arith.mulf %20, %18 : vector<8x512xf32>
    %c0_21 = arith.constant 0 : index
    %c0_22 = arith.constant 0 : index
    %22 = vector.load %arg6[%c0_21, %c0_22] : memref<8x1xf32, #tpu.memory_space<vmem>>, vector<8x1xf32>
    %23 = vector.broadcast %22 : vector<8x1xf32> to vector<8x512xf32>
    %24 = arith.addf %21, %23 : vector<8x512xf32>
    %cst_23 = arith.constant 0.000000e+00 : f32
    %cst_24 = arith.constant 6.000000e+00 : f32
    %25 = vector.broadcast %cst_23 : f32 to vector<8x512xf32>
    %26 = arith.maximumf %25, %24 : vector<8x512xf32>
    %27 = vector.broadcast %cst_24 : f32 to vector<8x512xf32>
    %28 = arith.minimumf %27, %26 : vector<8x512xf32>
    %c0_25 = arith.constant 0 : index
    %c198 = arith.constant 198 : index
    %29 = vector.load %arg15[%c0_25, %c198] : memref<8x1024xf32, #tpu.memory_space<vmem>>, vector<8x512xf32>
    %c0_26 = arith.constant 0 : index
    %c0_27 = arith.constant 0 : index
    %30 = vector.load %arg7[%c0_26, %c0_27] : memref<8x9xf32, #tpu.memory_space<vmem>>, vector<8x1xf32>
    %31 = vector.broadcast %30 : vector<8x1xf32> to vector<8x512xf32>
    %32 = arith.mulf %31, %29 : vector<8x512xf32>
    %c0_28 = arith.constant 0 : index
    %c200 = arith.constant 200 : index
    %33 = vector.load %arg15[%c0_28, %c200] : memref<8x1024xf32, #tpu.memory_space<vmem>>, vector<8x512xf32>
    %c0_29 = arith.constant 0 : index
    %c1 = arith.constant 1 : index
    %34 = vector.load %arg7[%c0_29, %c1] : memref<8x9xf32, #tpu.memory_space<vmem>>, vector<8x1xf32>
    %35 = vector.broadcast %34 : vector<8x1xf32> to vector<8x512xf32>
    %36 = arith.mulf %35, %33 : vector<8x512xf32>
    %37 = arith.addf %32, %36 : vector<8x512xf32>
    %c0_30 = arith.constant 0 : index
    %c202 = arith.constant 202 : index
    %38 = vector.load %arg15[%c0_30, %c202] : memref<8x1024xf32, #tpu.memory_space<vmem>>, vector<8x512xf32>
    %c0_31 = arith.constant 0 : index
    %c2 = arith.constant 2 : index
    %39 = vector.load %arg7[%c0_31, %c2] : memref<8x9xf32, #tpu.memory_space<vmem>>, vector<8x1xf32>
    %40 = vector.broadcast %39 : vector<8x1xf32> to vector<8x512xf32>
    %41 = arith.mulf %40, %38 : vector<8x512xf32>
    %42 = arith.addf %37, %41 : vector<8x512xf32>
    %c0_32 = arith.constant 0 : index
    %c254 = arith.constant 254 : index
    %43 = vector.load %arg15[%c0_32, %c254] : memref<8x1024xf32, #tpu.memory_space<vmem>>, vector<8x512xf32>
    %c0_33 = arith.constant 0 : index
    %c3 = arith.constant 3 : index
    %44 = vector.load %arg7[%c0_33, %c3] : memref<8x9xf32, #tpu.memory_space<vmem>>, vector<8x1xf32>
    %45 = vector.broadcast %44 : vector<8x1xf32> to vector<8x512xf32>
    %46 = arith.mulf %45, %43 : vector<8x512xf32>
    %47 = arith.addf %42, %46 : vector<8x512xf32>
    %c0_34 = arith.constant 0 : index
    %c256_35 = arith.constant 256 : index
    %48 = vector.load %arg15[%c0_34, %c256_35] : memref<8x1024xf32, #tpu.memory_space<vmem>>, vector<8x512xf32>
    %c0_36 = arith.constant 0 : index
    %c4 = arith.constant 4 : index
    %49 = vector.load %arg7[%c0_36, %c4] : memref<8x9xf32, #tpu.memory_space<vmem>>, vector<8x1xf32>
    %50 = vector.broadcast %49 : vector<8x1xf32> to vector<8x512xf32>
    %51 = arith.mulf %50, %48 : vector<8x512xf32>
    %52 = arith.addf %47, %51 : vector<8x512xf32>
    %c0_37 = arith.constant 0 : index
    %c258 = arith.constant 258 : index
    %53 = vector.load %arg15[%c0_37, %c258] : memref<8x1024xf32, #tpu.memory_space<vmem>>, vector<8x512xf32>
    %c0_38 = arith.constant 0 : index
    %c5 = arith.constant 5 : index
    %54 = vector.load %arg7[%c0_38, %c5] : memref<8x9xf32, #tpu.memory_space<vmem>>, vector<8x1xf32>
    %55 = vector.broadcast %54 : vector<8x1xf32> to vector<8x512xf32>
    %56 = arith.mulf %55, %53 : vector<8x512xf32>
    %57 = arith.addf %52, %56 : vector<8x512xf32>
    %c0_39 = arith.constant 0 : index
    %c310 = arith.constant 310 : index
    %58 = vector.load %arg15[%c0_39, %c310] : memref<8x1024xf32, #tpu.memory_space<vmem>>, vector<8x512xf32>
    %c0_40 = arith.constant 0 : index
    %c6 = arith.constant 6 : index
    %59 = vector.load %arg7[%c0_40, %c6] : memref<8x9xf32, #tpu.memory_space<vmem>>, vector<8x1xf32>
    %60 = vector.broadcast %59 : vector<8x1xf32> to vector<8x512xf32>
    %61 = arith.mulf %60, %58 : vector<8x512xf32>
    %62 = arith.addf %57, %61 : vector<8x512xf32>
    %c0_41 = arith.constant 0 : index
    %c312 = arith.constant 312 : index
    %63 = vector.load %arg15[%c0_41, %c312] : memref<8x1024xf32, #tpu.memory_space<vmem>>, vector<8x512xf32>
    %c0_42 = arith.constant 0 : index
    %c7 = arith.constant 7 : index
    %64 = vector.load %arg7[%c0_42, %c7] : memref<8x9xf32, #tpu.memory_space<vmem>>, vector<8x1xf32>
    %65 = vector.broadcast %64 : vector<8x1xf32> to vector<8x512xf32>
    %66 = arith.mulf %65, %63 : vector<8x512xf32>
    %67 = arith.addf %62, %66 : vector<8x512xf32>
    %c0_43 = arith.constant 0 : index
    %c314 = arith.constant 314 : index
    %68 = vector.load %arg15[%c0_43, %c314] : memref<8x1024xf32, #tpu.memory_space<vmem>>, vector<8x512xf32>
    %c0_44 = arith.constant 0 : index
    %c8 = arith.constant 8 : index
    %69 = vector.load %arg7[%c0_44, %c8] : memref<8x9xf32, #tpu.memory_space<vmem>>, vector<8x1xf32>
    %70 = vector.broadcast %69 : vector<8x1xf32> to vector<8x512xf32>
    %71 = arith.mulf %70, %68 : vector<8x512xf32>
    %72 = arith.addf %67, %71 : vector<8x512xf32>
    %c0_45 = arith.constant 0 : index
    %c0_46 = arith.constant 0 : index
    %73 = vector.load %arg8[%c0_45, %c0_46] : memref<8x1xf32, #tpu.memory_space<vmem>>, vector<8x1xf32>
    %74 = vector.broadcast %73 : vector<8x1xf32> to vector<8x512xf32>
    %75 = arith.addf %72, %74 : vector<8x512xf32>
    %cst_47 = arith.constant 0.000000e+00 : f32
    %cst_48 = arith.constant 6.000000e+00 : f32
    %76 = vector.broadcast %cst_47 : f32 to vector<8x512xf32>
    %77 = arith.maximumf %76, %75 : vector<8x512xf32>
    %78 = vector.broadcast %cst_48 : f32 to vector<8x512xf32>
    %79 = arith.minimumf %78, %77 : vector<8x512xf32>
    %80 = arith.addf %28, %79 : vector<8x512xf32>
    %c0_49 = arith.constant 0 : index
    %c82 = arith.constant 82 : index
    %81 = vector.load %arg15[%c0_49, %c82] : memref<8x1024xf32, #tpu.memory_space<vmem>>, vector<8x512xf32>
    %c0_50 = arith.constant 0 : index
    %c0_51 = arith.constant 0 : index
    %82 = vector.load %arg9[%c0_50, %c0_51] : memref<8x25xf32, #tpu.memory_space<vmem>>, vector<8x1xf32>
    %83 = vector.broadcast %82 : vector<8x1xf32> to vector<8x512xf32>
    %84 = arith.mulf %83, %81 : vector<8x512xf32>
    %c0_52 = arith.constant 0 : index
    %c85 = arith.constant 85 : index
    %85 = vector.load %arg15[%c0_52, %c85] : memref<8x1024xf32, #tpu.memory_space<vmem>>, vector<8x512xf32>
    %c0_53 = arith.constant 0 : index
    %c1_54 = arith.constant 1 : index
    %86 = vector.load %arg9[%c0_53, %c1_54] : memref<8x25xf32, #tpu.memory_space<vmem>>, vector<8x1xf32>
    %87 = vector.broadcast %86 : vector<8x1xf32> to vector<8x512xf32>
    %88 = arith.mulf %87, %85 : vector<8x512xf32>
    %89 = arith.addf %84, %88 : vector<8x512xf32>
    %c0_55 = arith.constant 0 : index
    %c88 = arith.constant 88 : index
    %90 = vector.load %arg15[%c0_55, %c88] : memref<8x1024xf32, #tpu.memory_space<vmem>>, vector<8x512xf32>
    %c0_56 = arith.constant 0 : index
    %c2_57 = arith.constant 2 : index
    %91 = vector.load %arg9[%c0_56, %c2_57] : memref<8x25xf32, #tpu.memory_space<vmem>>, vector<8x1xf32>
    %92 = vector.broadcast %91 : vector<8x1xf32> to vector<8x512xf32>
    %93 = arith.mulf %92, %90 : vector<8x512xf32>
    %94 = arith.addf %89, %93 : vector<8x512xf32>
    %c0_58 = arith.constant 0 : index
    %c91 = arith.constant 91 : index
    %95 = vector.load %arg15[%c0_58, %c91] : memref<8x1024xf32, #tpu.memory_space<vmem>>, vector<8x512xf32>
    %c0_59 = arith.constant 0 : index
    %c3_60 = arith.constant 3 : index
    %96 = vector.load %arg9[%c0_59, %c3_60] : memref<8x25xf32, #tpu.memory_space<vmem>>, vector<8x1xf32>
    %97 = vector.broadcast %96 : vector<8x1xf32> to vector<8x512xf32>
    %98 = arith.mulf %97, %95 : vector<8x512xf32>
    %99 = arith.addf %94, %98 : vector<8x512xf32>
    %c0_61 = arith.constant 0 : index
    %c94 = arith.constant 94 : index
    %100 = vector.load %arg15[%c0_61, %c94] : memref<8x1024xf32, #tpu.memory_space<vmem>>, vector<8x512xf32>
    %c0_62 = arith.constant 0 : index
    %c4_63 = arith.constant 4 : index
    %101 = vector.load %arg9[%c0_62, %c4_63] : memref<8x25xf32, #tpu.memory_space<vmem>>, vector<8x1xf32>
    %102 = vector.broadcast %101 : vector<8x1xf32> to vector<8x512xf32>
    %103 = arith.mulf %102, %100 : vector<8x512xf32>
    %104 = arith.addf %99, %103 : vector<8x512xf32>
    %c0_64 = arith.constant 0 : index
    %c166 = arith.constant 166 : index
    %105 = vector.load %arg15[%c0_64, %c166] : memref<8x1024xf32, #tpu.memory_space<vmem>>, vector<8x512xf32>
    %c0_65 = arith.constant 0 : index
    %c5_66 = arith.constant 5 : index
    %106 = vector.load %arg9[%c0_65, %c5_66] : memref<8x25xf32, #tpu.memory_space<vmem>>, vector<8x1xf32>
    %107 = vector.broadcast %106 : vector<8x1xf32> to vector<8x512xf32>
    %108 = arith.mulf %107, %105 : vector<8x512xf32>
    %109 = arith.addf %104, %108 : vector<8x512xf32>
    %c0_67 = arith.constant 0 : index
    %c169 = arith.constant 169 : index
    %110 = vector.load %arg15[%c0_67, %c169] : memref<8x1024xf32, #tpu.memory_space<vmem>>, vector<8x512xf32>
    %c0_68 = arith.constant 0 : index
    %c6_69 = arith.constant 6 : index
    %111 = vector.load %arg9[%c0_68, %c6_69] : memref<8x25xf32, #tpu.memory_space<vmem>>, vector<8x1xf32>
    %112 = vector.broadcast %111 : vector<8x1xf32> to vector<8x512xf32>
    %113 = arith.mulf %112, %110 : vector<8x512xf32>
    %114 = arith.addf %109, %113 : vector<8x512xf32>
    %c0_70 = arith.constant 0 : index
    %c172 = arith.constant 172 : index
    %115 = vector.load %arg15[%c0_70, %c172] : memref<8x1024xf32, #tpu.memory_space<vmem>>, vector<8x512xf32>
    %c0_71 = arith.constant 0 : index
    %c7_72 = arith.constant 7 : index
    %116 = vector.load %arg9[%c0_71, %c7_72] : memref<8x25xf32, #tpu.memory_space<vmem>>, vector<8x1xf32>
    %117 = vector.broadcast %116 : vector<8x1xf32> to vector<8x512xf32>
    %118 = arith.mulf %117, %115 : vector<8x512xf32>
    %119 = arith.addf %114, %118 : vector<8x512xf32>
    %c0_73 = arith.constant 0 : index
    %c175 = arith.constant 175 : index
    %120 = vector.load %arg15[%c0_73, %c175] : memref<8x1024xf32, #tpu.memory_space<vmem>>, vector<8x512xf32>
    %c0_74 = arith.constant 0 : index
    %c8_75 = arith.constant 8 : index
    %121 = vector.load %arg9[%c0_74, %c8_75] : memref<8x25xf32, #tpu.memory_space<vmem>>, vector<8x1xf32>
    %122 = vector.broadcast %121 : vector<8x1xf32> to vector<8x512xf32>
    %123 = arith.mulf %122, %120 : vector<8x512xf32>
    %124 = arith.addf %119, %123 : vector<8x512xf32>
    %c0_76 = arith.constant 0 : index
    %c178 = arith.constant 178 : index
    %125 = vector.load %arg15[%c0_76, %c178] : memref<8x1024xf32, #tpu.memory_space<vmem>>, vector<8x512xf32>
    %c0_77 = arith.constant 0 : index
    %c9 = arith.constant 9 : index
    %126 = vector.load %arg9[%c0_77, %c9] : memref<8x25xf32, #tpu.memory_space<vmem>>, vector<8x1xf32>
    %127 = vector.broadcast %126 : vector<8x1xf32> to vector<8x512xf32>
    %128 = arith.mulf %127, %125 : vector<8x512xf32>
    %129 = arith.addf %124, %128 : vector<8x512xf32>
    %c0_78 = arith.constant 0 : index
    %c250 = arith.constant 250 : index
    %130 = vector.load %arg15[%c0_78, %c250] : memref<8x1024xf32, #tpu.memory_space<vmem>>, vector<8x512xf32>
    %c0_79 = arith.constant 0 : index
    %c10 = arith.constant 10 : index
    %131 = vector.load %arg9[%c0_79, %c10] : memref<8x25xf32, #tpu.memory_space<vmem>>, vector<8x1xf32>
    %132 = vector.broadcast %131 : vector<8x1xf32> to vector<8x512xf32>
    %133 = arith.mulf %132, %130 : vector<8x512xf32>
    %134 = arith.addf %129, %133 : vector<8x512xf32>
    %c0_80 = arith.constant 0 : index
    %c253 = arith.constant 253 : index
    %135 = vector.load %arg15[%c0_80, %c253] : memref<8x1024xf32, #tpu.memory_space<vmem>>, vector<8x512xf32>
    %c0_81 = arith.constant 0 : index
    %c11 = arith.constant 11 : index
    %136 = vector.load %arg9[%c0_81, %c11] : memref<8x25xf32, #tpu.memory_space<vmem>>, vector<8x1xf32>
    %137 = vector.broadcast %136 : vector<8x1xf32> to vector<8x512xf32>
    %138 = arith.mulf %137, %135 : vector<8x512xf32>
    %139 = arith.addf %134, %138 : vector<8x512xf32>
    %c0_82 = arith.constant 0 : index
    %c256_83 = arith.constant 256 : index
    %140 = vector.load %arg15[%c0_82, %c256_83] : memref<8x1024xf32, #tpu.memory_space<vmem>>, vector<8x512xf32>
    %c0_84 = arith.constant 0 : index
    %c12 = arith.constant 12 : index
    %141 = vector.load %arg9[%c0_84, %c12] : memref<8x25xf32, #tpu.memory_space<vmem>>, vector<8x1xf32>
    %142 = vector.broadcast %141 : vector<8x1xf32> to vector<8x512xf32>
    %143 = arith.mulf %142, %140 : vector<8x512xf32>
    %144 = arith.addf %139, %143 : vector<8x512xf32>
    %c0_85 = arith.constant 0 : index
    %c259 = arith.constant 259 : index
    %145 = vector.load %arg15[%c0_85, %c259] : memref<8x1024xf32, #tpu.memory_space<vmem>>, vector<8x512xf32>
    %c0_86 = arith.constant 0 : index
    %c13 = arith.constant 13 : index
    %146 = vector.load %arg9[%c0_86, %c13] : memref<8x25xf32, #tpu.memory_space<vmem>>, vector<8x1xf32>
    %147 = vector.broadcast %146 : vector<8x1xf32> to vector<8x512xf32>
    %148 = arith.mulf %147, %145 : vector<8x512xf32>
    %149 = arith.addf %144, %148 : vector<8x512xf32>
    %c0_87 = arith.constant 0 : index
    %c262 = arith.constant 262 : index
    %150 = vector.load %arg15[%c0_87, %c262] : memref<8x1024xf32, #tpu.memory_space<vmem>>, vector<8x512xf32>
    %c0_88 = arith.constant 0 : index
    %c14 = arith.constant 14 : index
    %151 = vector.load %arg9[%c0_88, %c14] : memref<8x25xf32, #tpu.memory_space<vmem>>, vector<8x1xf32>
    %152 = vector.broadcast %151 : vector<8x1xf32> to vector<8x512xf32>
    %153 = arith.mulf %152, %150 : vector<8x512xf32>
    %154 = arith.addf %149, %153 : vector<8x512xf32>
    %c0_89 = arith.constant 0 : index
    %c334 = arith.constant 334 : index
    %155 = vector.load %arg15[%c0_89, %c334] : memref<8x1024xf32, #tpu.memory_space<vmem>>, vector<8x512xf32>
    %c0_90 = arith.constant 0 : index
    %c15 = arith.constant 15 : index
    %156 = vector.load %arg9[%c0_90, %c15] : memref<8x25xf32, #tpu.memory_space<vmem>>, vector<8x1xf32>
    %157 = vector.broadcast %156 : vector<8x1xf32> to vector<8x512xf32>
    %158 = arith.mulf %157, %155 : vector<8x512xf32>
    %159 = arith.addf %154, %158 : vector<8x512xf32>
    %c0_91 = arith.constant 0 : index
    %c337 = arith.constant 337 : index
    %160 = vector.load %arg15[%c0_91, %c337] : memref<8x1024xf32, #tpu.memory_space<vmem>>, vector<8x512xf32>
    %c0_92 = arith.constant 0 : index
    %c16 = arith.constant 16 : index
    %161 = vector.load %arg9[%c0_92, %c16] : memref<8x25xf32, #tpu.memory_space<vmem>>, vector<8x1xf32>
    %162 = vector.broadcast %161 : vector<8x1xf32> to vector<8x512xf32>
    %163 = arith.mulf %162, %160 : vector<8x512xf32>
    %164 = arith.addf %159, %163 : vector<8x512xf32>
    %c0_93 = arith.constant 0 : index
    %c340 = arith.constant 340 : index
    %165 = vector.load %arg15[%c0_93, %c340] : memref<8x1024xf32, #tpu.memory_space<vmem>>, vector<8x512xf32>
    %c0_94 = arith.constant 0 : index
    %c17 = arith.constant 17 : index
    %166 = vector.load %arg9[%c0_94, %c17] : memref<8x25xf32, #tpu.memory_space<vmem>>, vector<8x1xf32>
    %167 = vector.broadcast %166 : vector<8x1xf32> to vector<8x512xf32>
    %168 = arith.mulf %167, %165 : vector<8x512xf32>
    %169 = arith.addf %164, %168 : vector<8x512xf32>
    %c0_95 = arith.constant 0 : index
    %c343 = arith.constant 343 : index
    %170 = vector.load %arg15[%c0_95, %c343] : memref<8x1024xf32, #tpu.memory_space<vmem>>, vector<8x512xf32>
    %c0_96 = arith.constant 0 : index
    %c18 = arith.constant 18 : index
    %171 = vector.load %arg9[%c0_96, %c18] : memref<8x25xf32, #tpu.memory_space<vmem>>, vector<8x1xf32>
    %172 = vector.broadcast %171 : vector<8x1xf32> to vector<8x512xf32>
    %173 = arith.mulf %172, %170 : vector<8x512xf32>
    %174 = arith.addf %169, %173 : vector<8x512xf32>
    %c0_97 = arith.constant 0 : index
    %c346 = arith.constant 346 : index
    %175 = vector.load %arg15[%c0_97, %c346] : memref<8x1024xf32, #tpu.memory_space<vmem>>, vector<8x512xf32>
    %c0_98 = arith.constant 0 : index
    %c19 = arith.constant 19 : index
    %176 = vector.load %arg9[%c0_98, %c19] : memref<8x25xf32, #tpu.memory_space<vmem>>, vector<8x1xf32>
    %177 = vector.broadcast %176 : vector<8x1xf32> to vector<8x512xf32>
    %178 = arith.mulf %177, %175 : vector<8x512xf32>
    %179 = arith.addf %174, %178 : vector<8x512xf32>
    %c0_99 = arith.constant 0 : index
    %c418 = arith.constant 418 : index
    %180 = vector.load %arg15[%c0_99, %c418] : memref<8x1024xf32, #tpu.memory_space<vmem>>, vector<8x512xf32>
    %c0_100 = arith.constant 0 : index
    %c20 = arith.constant 20 : index
    %181 = vector.load %arg9[%c0_100, %c20] : memref<8x25xf32, #tpu.memory_space<vmem>>, vector<8x1xf32>
    %182 = vector.broadcast %181 : vector<8x1xf32> to vector<8x512xf32>
    %183 = arith.mulf %182, %180 : vector<8x512xf32>
    %184 = arith.addf %179, %183 : vector<8x512xf32>
    %c0_101 = arith.constant 0 : index
    %c421 = arith.constant 421 : index
    %185 = vector.load %arg15[%c0_101, %c421] : memref<8x1024xf32, #tpu.memory_space<vmem>>, vector<8x512xf32>
    %c0_102 = arith.constant 0 : index
    %c21 = arith.constant 21 : index
    %186 = vector.load %arg9[%c0_102, %c21] : memref<8x25xf32, #tpu.memory_space<vmem>>, vector<8x1xf32>
    %187 = vector.broadcast %186 : vector<8x1xf32> to vector<8x512xf32>
    %188 = arith.mulf %187, %185 : vector<8x512xf32>
    %189 = arith.addf %184, %188 : vector<8x512xf32>
    %c0_103 = arith.constant 0 : index
    %c424 = arith.constant 424 : index
    %190 = vector.load %arg15[%c0_103, %c424] : memref<8x1024xf32, #tpu.memory_space<vmem>>, vector<8x512xf32>
    %c0_104 = arith.constant 0 : index
    %c22 = arith.constant 22 : index
    %191 = vector.load %arg9[%c0_104, %c22] : memref<8x25xf32, #tpu.memory_space<vmem>>, vector<8x1xf32>
    %192 = vector.broadcast %191 : vector<8x1xf32> to vector<8x512xf32>
    %193 = arith.mulf %192, %190 : vector<8x512xf32>
    %194 = arith.addf %189, %193 : vector<8x512xf32>
    %c0_105 = arith.constant 0 : index
    %c427 = arith.constant 427 : index
    %195 = vector.load %arg15[%c0_105, %c427] : memref<8x1024xf32, #tpu.memory_space<vmem>>, vector<8x512xf32>
    %c0_106 = arith.constant 0 : index
    %c23 = arith.constant 23 : index
    %196 = vector.load %arg9[%c0_106, %c23] : memref<8x25xf32, #tpu.memory_space<vmem>>, vector<8x1xf32>
    %197 = vector.broadcast %196 : vector<8x1xf32> to vector<8x512xf32>
    %198 = arith.mulf %197, %195 : vector<8x512xf32>
    %199 = arith.addf %194, %198 : vector<8x512xf32>
    %c0_107 = arith.constant 0 : index
    %c430 = arith.constant 430 : index
    %200 = vector.load %arg15[%c0_107, %c430] : memref<8x1024xf32, #tpu.memory_space<vmem>>, vector<8x512xf32>
    %c0_108 = arith.constant 0 : index
    %c24 = arith.constant 24 : index
    %201 = vector.load %arg9[%c0_108, %c24] : memref<8x25xf32, #tpu.memory_space<vmem>>, vector<8x1xf32>
    %202 = vector.broadcast %201 : vector<8x1xf32> to vector<8x512xf32>
    %203 = arith.mulf %202, %200 : vector<8x512xf32>
    %204 = arith.addf %199, %203 : vector<8x512xf32>
    %c0_109 = arith.constant 0 : index
    %c0_110 = arith.constant 0 : index
    %205 = vector.load %arg10[%c0_109, %c0_110] : memref<8x1xf32, #tpu.memory_space<vmem>>, vector<8x1xf32>
    %206 = vector.broadcast %205 : vector<8x1xf32> to vector<8x512xf32>
    %207 = arith.addf %204, %206 : vector<8x512xf32>
    %cst_111 = arith.constant 0.000000e+00 : f32
    %cst_112 = arith.constant 6.000000e+00 : f32
    %208 = vector.broadcast %cst_111 : f32 to vector<8x512xf32>
    %209 = arith.maximumf %208, %207 : vector<8x512xf32>
    %210 = vector.broadcast %cst_112 : f32 to vector<8x512xf32>
    %211 = arith.minimumf %210, %209 : vector<8x512xf32>
    %212 = arith.addf %80, %211 : vector<8x512xf32>
    %213 = vector.extract_strided_slice %10 {offsets = [0, 256], sizes = [4, 512], strides = [1, 1]} : vector<4x1024xf32> to vector<4x512xf32>
    %cst_113 = arith.constant dense<0.000000e+00> : vector<8x512xf32>
    %214 = tpu.matmul %6, %212, %cst_113 {dimension_numbers = #tpu.dot_dimension_numbers<[1], [0], [0], [1], [0, 0, 1, 1], [], []>, precision = #tpu.contract_precision<fp32>} : vector<8x8xf32>, vector<8x512xf32>, vector<8x512xf32> -> vector<8x512xf32>
    %cst_114 = arith.constant dense<0.000000e+00> : vector<8x512xf32>
    %215 = tpu.matmul %7, %213, %cst_114 {dimension_numbers = #tpu.dot_dimension_numbers<[1], [0], [0], [1], [0, 0, 1, 1], [], []>, precision = #tpu.contract_precision<fp32>} : vector<8x4xf32>, vector<4x512xf32>, vector<8x512xf32> -> vector<8x512xf32>
    %216 = arith.addf %214, %215 : vector<8x512xf32>
    %217 = vector.broadcast %8 : vector<8x1xf32> to vector<8x512xf32>
    %218 = arith.addf %216, %217 : vector<8x512xf32>
    %c0_115 = arith.constant 0 : index
    %c0_116 = arith.constant 0 : index
    %c0_117 = arith.constant 0 : index
    %219 = vector.load %arg14[%c0_115, %c0_116, %c0_117] : memref<1x8x512xf32, #tpu.memory_space<vmem>>, vector<1x8x512xf32>
    %220 = vector.shape_cast %219 : vector<1x8x512xf32> to vector<8x512xf32>
    %221 = vector.shape_cast %218 : vector<8x512xf32> to vector<1x8x512xf32>
    tpu.vector_store %arg14[%c0_115, %c0_116, %c0_117], %221 {strides = array<i32>} : memref<1x8x512xf32, #tpu.memory_space<vmem>>, vector<1x8x512xf32>,
    return
  }
  func.func @transform_0(%arg0: i32) -> (i32, i32, i32) {
    %c0_i32 = arith.constant 0 : i32
    %c0_i32_0 = arith.constant 0 : i32
    %c0_i32_1 = arith.constant 0 : i32
    return %arg0, %c0_i32, %c0_i32_0 : i32, i32, i32
  }
  func.func @transform_1(%arg0: i32) -> (i32, i32) {
    %c0_i32 = arith.constant 0 : i32
    %c0_i32_0 = arith.constant 0 : i32
    %c0_i32_1 = arith.constant 0 : i32
    return %c0_i32, %c0_i32_0 : i32, i32
  }
  func.func @transform_2(%arg0: i32) -> (i32, i32) {
    %c0_i32 = arith.constant 0 : i32
    %c0_i32_0 = arith.constant 0 : i32
    %c0_i32_1 = arith.constant 0 : i32
    return %c0_i32, %c0_i32_0 : i32, i32
  }
  func.func @transform_3(%arg0: i32) -> (i32, i32) {
    %c0_i32 = arith.constant 0 : i32
    %c0_i32_0 = arith.constant 0 : i32
    %c0_i32_1 = arith.constant 0 : i32
    return %c0_i32, %c0_i32_0 : i32, i32
  }
  func.func @transform_4(%arg0: i32) -> (i32, i32) {
    %c0_i32 = arith.constant 0 : i32
    %c0_i32_0 = arith.constant 0 : i32
    %c0_i32_1 = arith.constant 0 : i32
    return %c0_i32, %c0_i32_0 : i32, i32
  }
  func.func @transform_5(%arg0: i32) -> (i32, i32) {
    %c0_i32 = arith.constant 0 : i32
    %c0_i32_0 = arith.constant 0 : i32
    %c0_i32_1 = arith.constant 0 : i32
    return %c0_i32, %c0_i32_0 : i32, i32
  }
  func.func @transform_6(%arg0: i32) -> (i32, i32) {
    %c0_i32 = arith.constant 0 : i32
    %c0_i32_0 = arith.constant 0 : i32
    %c0_i32_1 = arith.constant 0 : i32
    return %c0_i32, %c0_i32_0 : i32, i32
  }
  func.func @transform_7(%arg0: i32) -> (i32, i32) {
    %c0_i32 = arith.constant 0 : i32
    %c0_i32_0 = arith.constant 0 : i32
    %c0_i32_1 = arith.constant 0 : i32
    return %c0_i32, %c0_i32_0 : i32, i32
  }
  func.func @transform_8(%arg0: i32) -> (i32, i32) {
    %c0_i32 = arith.constant 0 : i32
    %c0_i32_0 = arith.constant 0 : i32
    %c0_i32_1 = arith.constant 0 : i32
    return %c0_i32, %c0_i32_0 : i32, i32
  }
  func.func @transform_9(%arg0: i32) -> (i32, i32) {
    %c0_i32 = arith.constant 0 : i32
    %c0_i32_0 = arith.constant 0 : i32
    %c0_i32_1 = arith.constant 0 : i32
    return %c0_i32, %c0_i32_0 : i32, i32
  }
  func.func @transform_10(%arg0: i32) -> (i32, i32) {
    %c0_i32 = arith.constant 0 : i32
    %c0_i32_0 = arith.constant 0 : i32
    %c0_i32_1 = arith.constant 0 : i32
    return %c0_i32, %c0_i32_0 : i32, i32
  }
  func.func @transform_11(%arg0: i32) -> (i32, i32) {
    %c0_i32 = arith.constant 0 : i32
    %c0_i32_0 = arith.constant 0 : i32
    %c0_i32_1 = arith.constant 0 : i32
    return %c0_i32, %c0_i32_0 : i32, i32
  }
  func.func @transform_12(%arg0: i32) -> (i32, i32) {
    %c0_i32 = arith.constant 0 : i32
    %c0_i32_0 = arith.constant 0 : i32
    %c0_i32_1 = arith.constant 0 : i32
    return %c0_i32, %c0_i32_0 : i32, i32
  }
  func.func @transform_13(%arg0: i32) -> (i32, i32, i32) {
    %c0_i32 = arith.constant 0 : i32
    %c0_i32_0 = arith.constant 0 : i32
    %c0_i32_1 = arith.constant 0 : i32
    return %arg0, %c0_i32, %c0_i32_0 : i32, i32, i32
  }
}

</mosaic_0001>

<bundles_post_ra>
// kernel: tpu_custom_call.1
= control target key start
LH: loop header
LB: loop body
LE: loop exit
PB: predicated region body
PF: predicated region fallthrough
CT: control target
= control target key end

     0   :  { %s7944_s0 = inlined_call_operand.vmem [shape: f32[2,4,1024], index: 0, kind: input, shape index: {}]   ;;  %s7945_s1 = inlined_call_operand.vmem [shape: f32[8,4], index: 1, kind: input, shape index: {}]   ;;  %s7946_s2 = inlined_call_operand.vmem [shape: f32[8,1], index: 2, kind: input, shape index: {}]   ;;  %s7947_s3 = inlined_call_operand.vmem [shape: f32[1,1024], index: 3, kind: input, shape index: {}]   ;;  %s7948_s4 = inlined_call_operand.vmem [shape: f32[8,1], index: 4, kind: input, shape index: {}]   ;;  %s7949_s5 = inlined_call_operand.vmem [shape: f32[8,1], index: 5, kind: input, shape index: {}]   ;;  %s7950_s6 = inlined_call_operand.vmem [shape: f32[8,9], index: 6, kind: input, shape index: {}]   ;;  %s7951_s7 = inlined_call_operand.vmem [shape: f32[8,1], index: 7, kind: input, shape index: {}]   ;;  %s7952_s8 = inlined_call_operand.vmem [shape: f32[8,25], index: 8, kind: input, shape index: {}]   ;;  %s7953_s9 = inlined_call_operand.vmem [shape: f32[8,1], index: 9, kind: input, shape index: {}]   ;;  %s7954_s10 = inlined_call_operand.vmem [shape: f32[8,8], index: 10, kind: input, shape index: {}]   ;;  %s7955_s11 = inlined_call_operand.vmem [shape: f32[8,4], index: 11, kind: input, shape index: {}]   ;;  %s7956_s12 = inlined_call_operand.vmem [shape: f32[8,1], index: 12, kind: input, shape index: {}]   ;;  %s7957_s13 = inlined_call_operand.hbm [shape: f32[2,8,512], index: 13, kind: output, shape index: {}]  }
   0x1   :  { %8060 = sst [smem:[#allocation67_spill]] %s7944_s0 }
   0x2   :  { %8061 = sst [smem:[#allocation68_spill]] %s7945_s1 }
   0x3   :  { %8062 = sst [smem:[#allocation69_spill]] %s7946_s2 }
   0x4   :  { %8063 = sst [smem:[#allocation70_spill]] %s7947_s3 }
   0x5   :  { %8064 = sst [smem:[#allocation71_spill]] %s7950_s6 }
   0x6   :  { %8065 = sst [smem:[#allocation72_spill]] %s7952_s8 }
   0x7   :  { %18 = vsyncpa [#allocation4], 0 }
   0x8   :  { %20 = vsyncpa [#allocation4 + $0x1], 0  ;;  %s6210_s25 = smov 0   ;;  %s6212_s26 = smov 0  }
   0x9   :  { %s6214_s27 = smov 0   ;;  %s6216_s28 = smov 0  }
   0xa LB: > { %8066 = sst [smem:[#allocation6_spill]] %s6066_s25  ;;  %s6231_s29 = sadd.s32 4294967295, %s6078_s28   ;;  %s6078_s28 = sphi %s6216_s28, %s8233_s28   ;;  %s6074_s27 = sphi %s6214_s27, %s8235_s27   ;;  %s6070_s26 = sphi %s6212_s26, %s8237_s26   ;;  %s6066_s25 = sphi %s6210_s25, %s8236_s25  }
   0xb   : > { %8067 = sst [smem:[#allocation7_spill]] %s6074_s27  ;;  %s5774_s30 = sadd.s32 4294967294, %s6078_s28  }
   0xc   : > { %s6235_s14 = sadd.s32 1, %s6078_s28   ;;  %s311_s15 = sadd.s32 1, %s6074_s27 }
   0xd   : > { %8068 = sst [smem:[#allocation8_spill]] %s6235_s14  ;;  %s308_s16 = ssub.s32 %s6078_s28, %s6235_s14 }
   0xe   : > { %p321_p0 = scmp.ne.s32.totalorder %s6074_s27, %s6070_s26  ;;  %p309_p1 = scmp.eq.s32.totalorder %s308_s16, 0 }
   0xf   : > { %p322_p2 = scmp.eq.s32.totalorder %s6231_s29, 1  ;;  %p327_p3 = scmp.ne.s32.totalorder %s6070_s26, %s6066_s25 }
  0x10   : > { %p328_p4 = scmp.eq.s32.totalorder %s5774_s30, 1  ;;  %p5777_p7 = scmp.ge.s32.totalorder %s6078_s28, 1 }
  0x11   : > { %s6246_s17 = scalar_select %p309_p1, %s6074_s27, %s311_s15  }
  0x12   : > { %p6248_p5 = por %p322_p2, %p321_p0  ;;  %p6252_p6 = por %p328_p4, %p327_p3 }
  0x13   : > { %8069 = sst [smem:[#allocation9_spill]] %s6246_s17  ;;  %p390_p8 = scmp.lt.s32.totalorder %s6078_s28, 3 }
  0x14   : > { %s8071_s19 = scalar_select %p6252_p6, 1, 0 }
  0x15   : > { %p391_p9 = pnand %p5777_p7, %p390_p8 }
  0x16   : > { %8072 = sst [smem:[#allocation10_spill]] %s8071_s19 }
  0x17   : > { %394 = sbr.rel (%p391_p9) target bundleno = 1159 (0x487), region = 72 }
  0x1e   : > { %p434_p10 = scmp.lt.s32.totalorder %s6231_s29, 1  ;;  %s8073_s1 = sld [smem:[#allocation68_spill]]  ;;  %vm511_vm0 = vcmask 31744   ;;  %v8000_v1 = vmov 0.0   ;;  %v6081_v5 = vmov 2   ;;  %vm515_vm1 = vcmask 1043456  }
  0x1f   : > { %598 = vmatprep.mubr.f32.mxu0 %v8000_v1  ;;  %1063 = vmatprep.mubr.f32.mxu1 %v8000_v1  ;;  %s8074_s8 = sld [smem:[#allocation72_spill]]  ;;  %v6082_v7 = vmov 1   ;;  %s8075_s0 = sld [smem:[#allocation67_spill]]  ;;  %v6083_v14 = vmov 3   ;;  %v6084_v20 = vmov 5   ;;  %v6085_v37 = vmov 4  }
  0x20   : > { %s435_s24 = scalar_select %p434_p10, %s6231_s29, 1  ;;  %5979 = vset.pattern.permute.xlu1 %v6081_v5  ;;  %5978 = vset.pattern.permute.xlu0 %v6082_v7  ;;  %v6086_v39 = vmov 8   ;;  %v6087_v44 = vmov 6   ;;  %v6088_v46 = vmov 11   ;;  %v6089_v51 = vmov 7  }
  0x21   : > { %v6090_v52 = vmov 14   ;;  %v6091_v61 = vmov 9   ;;  %v6092_v62 = vmov 16   ;;  %s8089_s6 = sld [smem:[#allocation71_spill]]  ;;  %s8091_s2 = sld [smem:[#allocation69_spill]]  ;;  %vm2861_vm2 = vcmask 1022976  }
  0x22   : > { %s5786_s30 = sshll.u32 %s435_s24, 5  ;;  %s8092_s3 = sld [smem:[#allocation70_spill]]  ;;  %vm2900_vm3 = vcmask 998400   ;;  %vm2939_vm4 = vcmask 973824   ;;  %vm2978_vm5 = vcmask 949248   ;;  %vm3017_vm6 = vcmask 359424  }
  0x23   : > { %s7992_s16 = smov 125   ;;  %s7960_s21 = smov 119   ;;  %vm3056_vm7 = vcmask 334848   ;;  %vm3095_vm8 = vcmask 310272   ;;  %vm3134_vm9 = vcmask 285696   ;;  %vm3173_vm10 = vcmask 261120  }
  0x24   : > { %v439_v0 = vld [vmem:[%s8073_s1] sm:$0xff]  ;;  %s7986_s22 = smov 116   ;;  %s7958_s23 = smov 44   ;;  %vm8047_vm11 = vcmask 719872   ;;  %vm3251_vm12 = vcmask 695296   ;;  %vm3286_vm13 = vcmask 670720  }
  0x25   : > { %v513_v2 = vsel %vm511_vm0, %v439_v0, 0  ;;  %v6268_v3 = vld [vmem:[%s8074_s8] sm:$0xff]  ;;  %s6282_s20 = scalar_lea.vmem %s8075_s0, %s5786_s30  ;;  %s7988_s24 = smov 41   ;;  %vm8048_vm14 = vcmask 646144   ;;  %vm3363_vm15 = vcmask 621568  }
  0x26   : > { %v6271_v4 = vand.u32 4294901760, %v513_v2  ;;  %2877 = vperm.xlu1 %5979, %v6268_v3   ;;  %2838 = vperm.xlu0 %5978, %v6268_v3   ;;  %v499_v8 = vld [vmem:[%s6282_s20] sm:$0xff]  ;;  %v500_v9 = vld [vmem:[%s6282_s20 + $0x8] sm:$0xff]  ;;  %v501_v43 = vld [vmem:[%s6282_s20 + $0x10] sm:$0xff]  ;;  %s7962_s30 = smov 38   ;;  %s7964_s15 = smov 35  }
  0x27   : > { %v507_v11 = vcombine.high %v499_v8, %v499_v8  ;;  %v508_v12 = vcombine.high %v500_v9, %v500_v9  ;;  %v520_v13 = vsel %vm515_vm1, %v500_v9, 0  ;;  %v516_v16 = vsel %vm515_vm1, %v499_v8, 0  ;;  %v502_v45 = vld [vmem:[%s6282_s20 + $0x18] sm:$0xff]  ;;  %s7987_s20 = smov 122   ;;  %s8106_s0 = smov 32  }
  0x28   : > { %v6276_v6 = vsub.f32 %v513_v2, %v6271_v4  ;;  %v6292_v15 = vand.u32 4294901760, %v520_v13  ;;  %v6305_v23 = vand.u32 4294901760, %v516_v16  ;;  %v509_v47 = vcombine.high %v501_v43, %v501_v43  ;;  %s8107_s1 = smov 1   ;;  %s8115_s8 = smov 79  }
  0x29   : > { %v518_v18 = vsel %vm515_vm1, %v507_v11, 0  ;;  %v522_v19 = vsel %vm515_vm1, %v508_v12, 0  ;;  %v510_v48 = vcombine.high %v502_v45, %v502_v45  ;;  %v524_v53 = vsel %vm515_vm1, %v501_v43, 0  ;;  %s8117_s17 = smov 125   ;;  %s8118_s27 = smov 4  }
  0x2a   : > { %v6288_v10 = vand.u32 4294901760, %v6276_v6  ;;  %5980 = vset.pattern.permute.xlu1 %v6083_v14  ;;  %8076 = vst [vmem:[#allocation11_spill] sm:$0xff] %v6292_v15  ;;  %5982 = vset.pattern.permute.xlu0 %v6084_v20  ;;  %v6301_v21 = vand.u32 4294901760, %v518_v18  ;;  %v6303_v22 = vand.u32 4294901760, %v522_v19  ;;  %v6311_v25 = vsub.f32 %v520_v13, %v6292_v15  ;;  %s8120_s14 = smov 126   ;;  %s8125_s19 = smov 122  }
  0x2b   : > { %2916 = vperm.xlu1 %5980, %v6268_v3   ;;  %2994 = vperm.xlu0 %5982, %v6268_v3   ;;  %v6316_v26 = vsub.f32 %v516_v16, %v6305_v23  ;;  %v526_v49 = vsel %vm515_vm1, %v509_v47, 0  ;;  %v530_v50 = vsel %vm515_vm1, %v510_v48, 0  ;;  %v528_v56 = vsel %vm515_vm1, %v502_v45, 0  ;;  %s8127_s25 = smov 116  }
  0x2c   : > { %v602_v17 = vsub.f32 %v6276_v6, %v6288_v10  ;;  %8077 = vst [vmem:[#allocation12_spill] sm:$0xff] %v6303_v22  ;;  %8078 = vst [vmem:[#allocation13_spill] sm:$0xff] %v6311_v25  ;;  %533 = vmatprep.subr.mxu0 %v6301_v21  ;;  %998 = vmatprep.subr.mxu1 %v6303_v22  ;;  %v611_v27 = vsub.f32 %v518_v18, %v6301_v21  ;;  %v6325_v29 = vand.u32 4294901760, %v6311_v25  ;;  %v6093_v16 = vmov 10  }
  0x2d   : > { %v6320_v28 = vsub.f32 %v522_v19, %v6303_v22  ;;  %535 = vmatpush1.msra.mxu0 %v6305_v23  ;;  %1000 = vmatpush1.msra.mxu1 %v6292_v15  ;;  %v618_v32 = vand.u32 4294901760, %v6316_v26  ;;  %v6379_v54 = vand.u32 4294901760, %v526_v49  ;;  %v6381_v55 = vand.u32 4294901760, %v530_v50 }
  0x2e   : > { %v6308_v24 = vand.u32 4294901760, %v602_v17  ;;  %8080 = vst [vmem:[#allocation15_spill] sm:$0xff] %v6325_v29  ;;  %v612_v30 = vand.u32 4294901760, %v611_v27  ;;  %v1084_v33 = vsub.f32 %v6311_v25, %v6325_v29  ;;  %v6386_v57 = vand.u32 4294901760, %v524_v53  ;;  %v6435_v17 = vld [vmem:[%s8089_s6] sm:$0xff]  ;;  %s8114_s6 = smov 70  }
  0x2f   : > { %8079 = vst [vmem:[#allocation14_spill] sm:$0xff] %v6320_v28  ;;  %v6330_v31 = vand.u32 4294901760, %v6320_v28  ;;  %v619_v36 = vsub.f32 %v6316_v26, %v618_v32  ;;  %5981 = vset.pattern.permute.xlu1 %v6085_v37  ;;  %5985 = vset.pattern.permute.xlu0 %v6086_v39  ;;  %8083 = vst [vmem:[#allocation18_spill] sm:$0xff] %v6379_v54  ;;  %v6393_v58 = vand.u32 4294901760, %v528_v56  ;;  %vm3440_vm1 = vcmask 7168  }
  0x30   : > { %604 = vmatmul.mubr.f32.vlgmr.msra.gmra.mrb[0].mxu0 %v6308_v24  ;;  %1069 = vmatmul.mubr.f32.vlgmr.msra.gmra.mrb[0].mxu1 %v6308_v24  ;;  %v613_v34 = vsub.f32 %v611_v27, %v612_v30  ;;  %v6343_v38 = vand.u32 4294901760, %v1084_v33  ;;  %8084 = vst [vmem:[#allocation19_spill] sm:$0xff] %v6386_v57  ;;  %v6398_v59 = vsub.f32 %v526_v49, %v6379_v54  ;;  %v6098_v33 = vmov 22  }
  0x31   : > { %8081 = vst [vmem:[#allocation16_spill] sm:$0xff] %v6330_v31  ;;  %684 = vmatprep.mubr.f32.mxu0 %v8000_v1  ;;  %1149 = vmatprep.mubr.f32.mxu1 %v8000_v1  ;;  %v1078_v35 = vsub.f32 %v6320_v28, %v6330_v31  ;;  %v620_v42 = vand.u32 4294901760, %v619_v36  ;;  %v6401_v60 = vsub.f32 %v530_v50, %v6381_v55  ;;  %v448_v36 = vlaneseq }
  0x32   : > { %8082 = vst [vmem:[#allocation17_spill] sm:$0xff] %v6343_v38  ;;  %2955 = vperm.xlu1 %5981, %v6268_v3   ;;  %v614_v40 = vand.u32 4294901760, %v613_v34  ;;  %3111 = vperm.xlu0 %5985, %v6268_v3   ;;  %8085 = vst [vmem:[#allocation20_spill] sm:$0xff] %v6398_v59  ;;  %v6405_v63 = vsub.f32 %v524_v53, %v6386_v57  ;;  %v6409_v0 = vsub.f32 %v528_v56, %v6393_v58  ;;  %v6102_v34 = vmov 18  }
  0x33   : > { %v6347_v41 = vand.u32 4294901760, %v1078_v35  ;;  %v6412_v2 = vand.u32 4294901760, %v6398_v59  ;;  %v2007_v8 = vand.u32 4294901760, %v6401_v60  ;;  %v6104_v35 = vmov 21  }
  0x34   : > { %615 = vmatprep.subr.mxu0 %v614_v40  ;;  %8086 = vst [vmem:[#allocation21_spill] sm:$0xff] %v6405_v63  ;;  %v6420_v9 = vand.u32 4294901760, %v6405_v63  ;;  %v2013_v11 = vand.u32 4294901760, %v6409_v0  ;;  %v6539_v40 = vld [vmem:[%s8092_s3] sm:$0xff]  ;;  %s8112_s3 = smov 82  }
  0x35   : > { %1080 = vmatprep.subr.mxu1 %v6347_v41  ;;  %621 = vmatpush1.msra.mxu0 %v620_v42  ;;  %8087 = vst [vmem:[#allocation22_spill] sm:$0xff] %v6412_v2  ;;  %v1543_v12 = vsub.f32 %v6398_v59, %v6412_v2  ;;  %v2008_v13 = vsub.f32 %v6401_v60, %v2007_v8 }
  0x36   : > { %1086 = vmatpush1.msra.mxu1 %v6343_v38  ;;  %694 = vmatprep.subr.mxu0 %v611_v27  ;;  %8088 = vst [vmem:[#allocation23_spill] sm:$0xff] %v6420_v9  ;;  %v1549_v18 = vsub.f32 %v6405_v63, %v6420_v9  ;;  %v2014_v19 = vsub.f32 %v6409_v0, %v2013_v11  ;;  %v6094_v27 = vmov 12  }
  0x37   : > { %1159 = vmatprep.subr.mxu1 %v6320_v28  ;;  %5983 = vset.pattern.permute.xlu1 %v6087_v44 }
  0x38   : > { %686 = vmatmul.mubr.f32.vlgmr.msra.gmra.mrb[0].mxu0 %v6271_v4  ;;  %1151 = vmatmul.mubr.f32.vlgmr.msra.gmra.mrb[0].mxu1 %v6271_v4 }
  0x39   : > { %697 = vmatpush1.msra.mxu0 %v6316_v26  ;;  %760 = vmatprep.mubr.f32.mxu0 %v8000_v1  ;;  %v2015_v26 = vand.u32 4294901760, %v2014_v19 }
  0x3a   : > { %1162 = vmatpush1.msra.mxu1 %v6311_v25  ;;  %1225 = vmatprep.mubr.f32.mxu1 %v8000_v1 }
  0x3b   : > { %770 = vmatprep.subr.mxu0 %v6301_v21  ;;  %1235 = vmatprep.subr.mxu1 %v6303_v22 }
  0x3c   : > { %5988 = vset.pattern.permute.xlu0 %v6088_v46  ;;  %3033 = vperm.xlu1 %5983, %v6268_v3  }
  0x3d   : > { %3228 = vperm.xlu0 %5988, %v6268_v3  }
  0x40   : > { %763 = vmatmul.mubr.f32.vlgmr.msra.gmra.mrb[0].mxu0 %v6276_v6  ;;  %1228 = vmatmul.mubr.f32.vlgmr.msra.gmra.mrb[0].mxu1 %v6276_v6 }
  0x41   : > { %772 = vmatpush1.msra.mxu0 %v6305_v23  ;;  %835 = vmatprep.mubr.f32.mxu0 %v8000_v1 }
  0x42   : > { %1237 = vmatpush1.msra.mxu1 %v6292_v15  ;;  %1300 = vmatprep.mubr.f32.mxu1 %v8000_v1 }
  0x43   : > { %848 = vmatprep.subr.mxu0 %v612_v30  ;;  %1313 = vmatprep.subr.mxu1 %v6330_v31  ;;  %v6095_v30 = vmov 19  }
  0x44   : > { %5984 = vset.pattern.permute.xlu1 %v6089_v51  ;;  %5991 = vset.pattern.permute.xlu0 %v6090_v52 }
  0x45   : > { %3072 = vperm.xlu1 %5984, %v6268_v3   ;;  %3340 = vperm.xlu0 %5991, %v6268_v3  }
  0x48   : > { %839 = vmatmul.mubr.f32.vlgmr.msra.gmra.mrb[0].mxu0 %v6288_v10  ;;  %1304 = vmatmul.mubr.f32.vlgmr.msra.gmra.mrb[0].mxu1 %v6288_v10 }
  0x49   : > { %852 = vmatpush1.msra.mxu0 %v618_v32  ;;  %915 = vmatprep.mubr.f32.mxu0 %v8000_v1  ;;  %v6097_v32 = vmov 15  }
  0x4a   : > { %1317 = vmatpush1.msra.mxu1 %v6325_v29  ;;  %1380 = vmatprep.mubr.f32.mxu1 %v8000_v1 }
  0x4b   : > { %924 = vmatprep.subr.mxu0 %v6301_v21  ;;  %1389 = vmatprep.subr.mxu1 %v6303_v22  ;;  %v6445_v21 = vand.u32 4294901760, %v1543_v12 }
  0x4c   : > { %5986 = vset.pattern.permute.xlu1 %v6091_v61  ;;  %5994 = vset.pattern.permute.xlu0 %v6092_v62 }
  0x4d   : > { %3150 = vperm.xlu1 %5986, %v6268_v3   ;;  %3417 = vperm.xlu0 %5994, %v6268_v3  }
  0x50   : > { %917 = vmatmul.mubr.f32.vlgmr.msra.gmra.mrb[0].mxu0 %v6271_v4  ;;  %1382 = vmatmul.mubr.f32.vlgmr.msra.gmra.mrb[0].mxu1 %v6271_v4 }
  0x51   : > { %926 = vmatpush1.msra.mxu0 %v6305_v23  ;;  %989 = vmatprep.mubr.f32.mxu0 %v8000_v1  ;;  %v2009_v23 = vand.u32 4294901760, %v2008_v13 }
  0x52   : > { %1391 = vmatpush1.msra.mxu1 %v6292_v15  ;;  %1454 = vmatprep.mubr.f32.mxu1 %v8000_v1 }
  0x53   : > { %1463 = vmatprep.subr.mxu0 %v6379_v54  ;;  %1928 = vmatprep.subr.mxu1 %v6381_v55 }
  0x54   : > { %5987 = vset.pattern.permute.xlu1 %v6093_v16  ;;  %5997 = vset.pattern.permute.xlu0 %v6083_v14  ;;  %v6451_v14 = vand.u32 4294901760, %v1549_v18 }
  0x55   : > { %3189 = vperm.xlu1 %5987, %v6268_v3   ;;  %2539 = vperm.xlu0 %5997, %v6435_v17  }
  0x56   : > { %8090 = vst [vmem:[#allocation24_spill] sm:$0xff] %v6451_v14 }
  0x58   : > { %991 = vmatmul.mubr.f32.vlgmr.msra.gmra.mrb[0].mxu0 %v6271_v4  ;;  %1456 = vmatmul.mubr.f32.vlgmr.msra.gmra.mrb[0].mxu1 %v6271_v4 }
  0x59   : > { %1465 = vmatpush1.msra.mxu0 %v6386_v57  ;;  %1528 = vmatprep.mubr.f32.mxu0 %v8000_v1 }
  0x5a   : > { %1930 = vmatpush1.msra.mxu1 %v6393_v58  ;;  %1993 = vmatprep.mubr.f32.mxu1 %v8000_v1 }
  0x5b   : > { %1545 = vmatprep.subr.mxu0 %v6445_v21  ;;  %2010 = vmatprep.subr.mxu1 %v2009_v23 }
  0x5c   : > { %1534 = vmatmul.mubr.f32.vlgmr.msra.gmra.mrb[2].mxu0 %v6308_v24  ;;  %1999 = vmatmul.mubr.f32.vlgmr.msra.gmra.mrb[2].mxu1 %v6308_v24  ;;  %v6096_v24 = vmov 13  }
  0x5d   : > { %1551 = vmatpush1.msra.mxu0 %v6451_v14  ;;  %1614 = vmatprep.mubr.f32.mxu0 %v8000_v1 }
  0x5e   : > { %2016 = vmatpush1.msra.mxu1 %v2015_v26  ;;  %2079 = vmatprep.mubr.f32.mxu1 %v8000_v1 }
  0x5f   : > { %1624 = vmatprep.subr.mxu0 %v6398_v59  ;;  %2089 = vmatprep.subr.mxu1 %v6401_v60 }
  0x60   : > { %5989 = vset.pattern.permute.xlu1 %v6094_v27  ;;  %6000 = vset.pattern.permute.xlu0 %v6095_v30 }
  0x61   : > { %3267 = vperm.xlu1 %5989, %v6268_v3   ;;  %3533 = vperm.xlu0 %6000, %v6268_v3  }
  0x64   : > { %1616 = vmatmul.mubr.f32.vlgmr.msra.gmra.mrb[2].mxu0 %v6271_v4  ;;  %2081 = vmatmul.mubr.f32.vlgmr.msra.gmra.mrb[2].mxu1 %v6271_v4 }
  0x65   : > { %1627 = vmatpush1.msra.mxu0 %v6405_v63  ;;  %1690 = vmatprep.mubr.f32.mxu0 %v8000_v1 }
  0x66   : > { %2092 = vmatpush1.msra.mxu1 %v6409_v0  ;;  %2155 = vmatprep.mubr.f32.mxu1 %v8000_v1 }
  0x67   : > { %5990 = vset.pattern.permute.xlu1 %v6096_v24  ;;  %1700 = vmatprep.subr.mxu0 %v6379_v54 }
  0x68   : > { %3301 = vperm.xlu1 %5990, %v6268_v3   ;;  %2165 = vmatprep.subr.mxu1 %v6381_v55 }
  0x69   : > { %6003 = vset.pattern.permute.xlu0 %v6087_v44 }
  0x6a   : > { %2656 = vperm.xlu0 %6003, %v6435_v17  }
  0x6c   : > { %1693 = vmatmul.mubr.f32.vlgmr.msra.gmra.mrb[2].mxu0 %v6276_v6  ;;  %2158 = vmatmul.mubr.f32.vlgmr.msra.gmra.mrb[2].mxu1 %v6276_v6  ;;  %v6099_v6 = vmov 24  }
  0x6d   : > { %1702 = vmatpush1.msra.mxu0 %v6386_v57  ;;  %1765 = vmatprep.mubr.f32.mxu0 %v8000_v1 }
  0x6e   : > { %2167 = vmatpush1.msra.mxu1 %v6393_v58  ;;  %2230 = vmatprep.mubr.f32.mxu1 %v8000_v1 }
  0x6f   : > { %5992 = vset.pattern.permute.xlu1 %v6097_v32  ;;  %1778 = vmatprep.subr.mxu0 %v6412_v2 }
  0x70   : > { %3379 = vperm.xlu1 %5992, %v6268_v3   ;;  %2243 = vmatprep.subr.mxu1 %v2007_v8 }
  0x71   : > { %6006 = vset.pattern.permute.xlu0 %v6098_v33 }
  0x72   : > { %3655 = vperm.xlu0 %6006, %v6268_v3  }
  0x74   : > { %1769 = vmatmul.mubr.f32.vlgmr.msra.gmra.mrb[2].mxu0 %v6288_v10  ;;  %2234 = vmatmul.mubr.f32.vlgmr.msra.gmra.mrb[2].mxu1 %v6288_v10  ;;  %v6101_v10 = vmov 0  }
  0x75   : > { %5993 = vset.pattern.permute.xlu1 %v6082_v7  ;;  %1782 = vmatpush1.msra.mxu0 %v6420_v9  ;;  %v440_v7 = vld [vmem:[%s8091_s2] sm:$0xff]  ;;  %s8110_s2 = smov 124  }
  0x76   : > { %2461 = vperm.xlu1 %5993, %v6435_v17   ;;  %1845 = vmatprep.mubr.f32.mxu0 %v8000_v1 }
  0x77   : > { %2247 = vmatpush1.msra.mxu1 %v2013_v11  ;;  %2310 = vmatprep.mubr.f32.mxu1 %v8000_v1 }
  0x78   : > { %1854 = vmatprep.subr.mxu0 %v6379_v54  ;;  %2319 = vmatprep.subr.mxu1 %v6381_v55 }
  0x79   : > { %6009 = vset.pattern.permute.xlu0 %v6099_v6 }
  0x7a   : > { %5995 = vset.pattern.permute.xlu1 %v6081_v5  ;;  %3733 = vperm.xlu0 %6009, %v6268_v3   ;;  %v6100_v5 = vmov 17  }
  0x7b   : > { %2500 = vperm.xlu1 %5995, %v6435_v17  }
  0x7c   : > { %1847 = vmatmul.mubr.f32.vlgmr.msra.gmra.mrb[2].mxu0 %v6271_v4  ;;  %2312 = vmatmul.mubr.f32.vlgmr.msra.gmra.mrb[2].mxu1 %v6271_v4 }
  0x7d   : > { %1856 = vmatpush1.msra.mxu0 %v6386_v57  ;;  %1919 = vmatprep.mubr.f32.mxu0 %v8000_v1 }
  0x7e   : > { %2321 = vmatpush1.msra.mxu1 %v6393_v58  ;;  %2384 = vmatprep.mubr.f32.mxu1 %v8000_v1 }
  0x7f   : > { %5996 = vset.pattern.permute.xlu1 %v6100_v5  ;;  %6010 = vset.pattern.permute.xlu0 %v6101_v10 }
  0x80   : > { %3456 = vperm.xlu1 %5996, %v6268_v3   ;;  %444 = vperm.xlu0 %6010, %v440_v7  }
  0x81   : > { %4289 = vmatprep.subr.mxu1 %v6379_v54  ;;  %3824 = vmatprep.subr.mxu0 %v6303_v22 }
  0x84   : > { %1921 = vmatmul.mubr.f32.vlgmr.msra.gmra.mrb[2].mxu0 %v6271_v4  ;;  %2386 = vmatmul.mubr.f32.vlgmr.msra.gmra.mrb[2].mxu1 %v6271_v4  ;;  %v6103_v4 = vmov 20  }
  0x85   : > { %5998 = vset.pattern.permute.xlu1 %v6102_v34  ;;  %2452 = vperm.xlu0 %6010, %v6435_v17  }
  0x86   : > { %3494 = vperm.xlu1 %5998, %v6268_v3   ;;  %4291 = vmatpush1.msra.mxu1 %v6386_v57 }
  0x87   : > { %4354 = vmatprep.mubr.f32.mxu1 %v8000_v1  ;;  %3826 = vmatpush1.msra.mxu0 %v6292_v15 }
  0x88   : > { %3889 = vmatprep.mubr.f32.mxu0 %v8000_v1  ;;  %4371 = vmatprep.subr.mxu1 %v6445_v21 }
  0x89   : > { %3906 = vmatprep.subr.mxu0 %v6347_v41 }
  0x8a   : > { %5999 = vset.pattern.permute.xlu1 %v6085_v37  ;;  %v6105_v37 = vmov 23  }
  0x8b   : > { %2578 = vperm.xlu1 %5999, %v6435_v17  }
  0x8f   : > { %6001 = vset.pattern.permute.xlu1 %v6084_v20  ;;  %v6533_v20 = vshrl.u32 %v448_v36, 7 }
  0x90   : > { %2617 = vperm.xlu1 %6001, %v6435_v17  }
  0x91   : > { %v466_v41 = vsub.s32 4, %v6533_v20  ;;  %v474_v42 = vsub.s32 6, %v6533_v20  ;;  %v470_v43 = vsub.s32 5, %v6533_v20  ;;  %v450_v8 = vsub.s32 0, %v6533_v20 }
  0x92   : > { %v458_v11 = vsub.s32 2, %v6533_v20 }
  0x93   : > { %v6546_v44 = vrot.slane %v6539_v40, %v466_v41  ;;  %v6549_v45 = vrot.slane %v6539_v40, %v474_v42  ;;  %v6552_v46 = vrot.slane %v6539_v40, %v470_v43  ;;  %v451_v16 = vrot.slane %v6539_v40, %v450_v8 }
  0x94   : > { %6002 = vset.pattern.permute.xlu1 %v6103_v4 }
  0x95   : > { %3577 = vperm.xlu1 %6002, %v6268_v3  }
  0x99   : > { %6004 = vset.pattern.permute.xlu1 %v6104_v35 }
  0x9a   : > { %3616 = vperm.xlu1 %6004, %v6268_v3  }
  0x9e   : > { %6005 = vset.pattern.permute.xlu1 %v6089_v51 }
  0x9f   : > { %2695 = vperm.xlu1 %6005, %v6435_v17  }
  0xa3   : > { %6007 = vset.pattern.permute.xlu1 %v6086_v39  ;;  %v478_v39 = vsub.s32 7, %v6533_v20 }
  0xa4   : > { %2734 = vperm.xlu1 %6007, %v6435_v17   ;;  %v459_v17 = vrot.slane %v6539_v40, %v458_v11 }
  0xa5   : > { %v6555_v47 = vrot.slane %v6539_v40, %v478_v39  ;;  %v6558_v48 = vpop.permute.xlu0 %2838  ;;  %v6572_v56 = vpop.permute.xlu1 %2877 }
  0xa8   : > { %6008 = vset.pattern.permute.xlu1 %v6105_v37 }
  0xa9   : > { %3694 = vperm.xlu1 %6008, %v6268_v3  }
  0xaa   : > { %v6560_v49 = vpop.permute.xlu0 %2994  ;;  %v6576_v60 = vpop.permute.xlu1 %2916 }
  0xad   : > { %6011 = vset.pattern.permute.xlu1 %v6101_v10 }
  0xae   : > { %2829 = vperm.xlu1 %6011, %v6268_v3  }
  0xb1   : > { %v6562_v50 = vpop.permute.xlu0 %3111  ;;  %v6580_v61 = vpop.permute.xlu1 %2955 }
  0xbb   : > { %v6584_v0 = vpop.permute.xlu1 %3033 }
  0xbc   : > { %v6564_v51 = vpop.permute.xlu0 %3228 }
  0xc4   : > { %v6566_v52 = vpop.permute.xlu0 %3340  ;;  %v6590_v13 = vpop.permute.xlu1 %3072 }
  0xcc   : > { %v6568_v53 = vpop.permute.xlu0 %3417  ;;  %v6598_v23 = vpop.permute.xlu1 %3150 }
  0xd4   : > { %v6570_v55 = vpop.permute.xlu0 %2539  ;;  %v6608_v34 = vpop.permute.xlu1 %3189 }
  0xe0   : > { %v6574_v58 = vpop.permute.xlu0 %3533  ;;  %v6620_v41 = vpop.permute.xlu1 %3267 }
  0xe7   : > { %v6630_v39 = vpop.permute.xlu1 %3301 }
  0xe9   : > { %v6578_v3 = vpop.permute.xlu0 %2656 }
  0xf1   : > { %v6582_v62 = vpop.permute.xlu0 %3655 }
  0xf2   : > { %8093 = vst [vmem:[#allocation25_spill] sm:$0xff] %v6582_v62 }
  0xf9   : > { %v6588_v12 = vpop.permute.xlu0 %3733 }
  0xfa   : > { %8094 = vst [vmem:[#allocation26_spill] sm:$0xff] %v6588_v12 }
  0xff   : > { %v6594_v18 = vpop.permute.xlu0 %444 }
 0x100   : > { %v488_v19 = vmul.f32 %v451_v16, %v6594_v18  ;;  %v490_v21 = vmul.f32 %v459_v17, %v6594_v18 }
 0x12b   : > { %v992_v26 = vpop.f32.mrb[0].mxu0  ;;  %v1457_v27 = vpop.f32.mrb[0].mxu1 }
 0x12c   : > { %v5788_v30 = vadd.f32 %v992_v26, %v488_v19  ;;  %v5790_v24 = vadd.f32 %v1457_v27, %v490_v21  ;;  %v6600_v32 = vpop.f32.mrb[1].mxu0  ;;  %v6602_v33 = vpop.f32.mrb[1].mxu1 }
 0x12d   : > { %v6642_v19 = vpop.permute.xlu1 %3379 }
 0x12e   : > { %v2392_v6 = vmax.f32 %v5788_v30, 0.0  ;;  %v2394_v7 = vmax.f32 %v5790_v24, 0.0  ;;  %v454_v30 = vsub.s32 1, %v6533_v20 }
 0x130   : > { %v6604_v5 = vmin.f32 %v2392_v6, 6.0  ;;  %v6606_v10 = vmin.f32 %v2394_v7, 6.0  ;;  %v462_v7 = vsub.s32 3, %v6533_v20 }
 0x131   : > { %v6652_v27 = vpop.permute.xlu1 %2461 }
 0x132   : > { %8095 = vst [vmem:[#allocation27_spill] sm:$0xff] %v6604_v5  ;;  %8096 = vst [vmem:[#allocation28_spill] sm:$0xff] %v6606_v10  ;;  %v2843_v4 = vmul.f32 %v6558_v48, %v6606_v10  ;;  %v2841_v35 = vmul.f32 %v6558_v48, %v6604_v5  ;;  %v2880_v36 = vmul.f32 %v6572_v56, %v6604_v5 }
 0x133   : > { %v2882_v37 = vmul.f32 %v6572_v56, %v6606_v10  ;;  %v2921_v42 = vmul.f32 %v6576_v60, %v6606_v10  ;;  %v2919_v43 = vmul.f32 %v6576_v60, %v6604_v5  ;;  %v2958_v8 = vmul.f32 %v6580_v61, %v6604_v5 }
 0x134   : > { %2855 = vrot.lane.b32.xlu0 %v2843_v4, %s7992_s16  ;;  %2851 = vrot.lane.b32.xlu1 %v2841_v35, %s7992_s16  ;;  %v2960_v11 = vmul.f32 %v6580_v61, %v6606_v10  ;;  %v2998_v16 = vmul.f32 %v6560_v49, %v6606_v10  ;;  %v3037_v17 = vmul.f32 %v6584_v0, %v6606_v10 }
 0x135   : > { %v3076_v21 = vmul.f32 %v6590_v13, %v6606_v10  ;;  %v3115_v26 = vmul.f32 %v6562_v50, %v6606_v10  ;;  %v3154_v24 = vmul.f32 %v6598_v23, %v6606_v10  ;;  %v3232_v6 = vmul.f32 %v6564_v51, %v6606_v10 }
 0x136   : > { %v455_v4 = vrot.slane %v6539_v40, %v454_v30  ;;  %v3193_v35 = vmul.f32 %v6608_v34, %v6606_v10  ;;  %v2465_v30 = vmul.f32 %v6652_v27, %v6606_v10 }
 0x138   : > { %2890 = vrot.lane.b32.xlu0 %v2880_v36, %s7987_s20  ;;  %2894 = vrot.lane.b32.xlu1 %v2882_v37, %s7987_s20  ;;  %v3270_v36 = vmul.f32 %v6620_v41, %v6606_v10  ;;  %v6667_v37 = vpop.permute.xlu1 %2500  ;;  %v489_v20 = vmul.f32 %v455_v4, %v6594_v18 }
 0x13c   : > { %2933 = vrot.lane.b32.xlu0 %v2921_v42, %s7960_s21  ;;  %2929 = vrot.lane.b32.xlu1 %v2919_v43, %s7960_s21  ;;  %s7968_s21 = smov 85   ;;  %v463_v42 = vrot.slane %v6539_v40, %v462_v7  ;;  %v3304_v43 = vmul.f32 %v6630_v39, %v6606_v10  ;;  %v6682_v40 = vpop.permute.xlu1 %3456  ;;  %v493_v7 = vmul.f32 %v6552_v46, %v6594_v18 }
 0x140   : > { %2968 = vrot.lane.b32.xlu0 %v2958_v8, %s7986_s22  ;;  %2972 = vrot.lane.b32.xlu1 %v2960_v11, %s7986_s22  ;;  %v3343_v8 = vmul.f32 %v6566_v52, %v6606_v10  ;;  %v491_v11 = vmul.f32 %v463_v42, %v6594_v18 }
 0x144   : > { %3009 = vrot.lane.b32.xlu0 %v2998_v16, %s7958_s23  ;;  %3048 = vrot.lane.b32.xlu1 %v3037_v17, %s7988_s24  ;;  %s7966_s23 = smov 32   ;;  %v492_v16 = vmul.f32 %v6546_v44, %v6594_v18  ;;  %v5789_v17 = vadd.f32 %v6600_v32, %v489_v20  ;;  %v495_v44 = vmul.f32 %v6555_v47, %v6594_v18 }
 0x145   : > { %v5791_v20 = vadd.f32 %v6602_v33, %v491_v11  ;;  %v3459_v47 = vmul.f32 %v6682_v40, %v6606_v10  ;;  %v2504_v33 = vmul.f32 %v6667_v37, %v6606_v10 }
 0x146   : > { %v2393_v46 = vmax.f32 %v5789_v17, 0.0 }
 0x148   : > { %3087 = vrot.lane.b32.xlu0 %v3076_v21, %s7962_s30  ;;  %3126 = vrot.lane.b32.xlu1 %v3115_v26, %s7964_s15  ;;  %s7978_s30 = smov 88   ;;  %s7972_s15 = smov 82   ;;  %v494_v21 = vmul.f32 %v6549_v45, %v6594_v18  ;;  %v3382_v26 = vmul.f32 %v6642_v19, %v6606_v10  ;;  %v3420_v18 = vmul.f32 %v6568_v53, %v6606_v10 }
 0x14c   : > { %3165 = vrot.lane.b32.xlu0 %v3154_v24, %s7966_s23  ;;  %3243 = vrot.lane.b32.xlu1 %v3232_v6, %s7968_s21  ;;  %s7970_s23 = smov 79   ;;  %s7974_s21 = smov 76  }
 0x150   : > { %3204 = vrot.lane.b32.xlu0 %v3193_v35, %s7978_s30  ;;  %3278 = vrot.lane.b32.xlu1 %v3270_v36, %s7972_s15  ;;  %s7997_s15 = smov 126   ;;  %s7995_s30 = smov 124  }
 0x154   : > { %3314 = vrot.lane.b32.xlu0 %v3304_v43, %s7970_s23  ;;  %3353 = vrot.lane.b32.xlu1 %v3343_v8, %s7974_s21  ;;  %s7976_s23 = smov 4   ;;  %s7980_s21 = smov 1   ;;  %v6712_v43 = vpop.permute.xlu1 %3494  ;;  %v6714_v8 = vmin.f32 %v2393_v46, 6.0 }
 0x155   : > { %v3497_v17 = vmul.f32 %v6712_v43, %v6606_v10 }
 0x156   : > { %8097 = vst [vmem:[#allocation29_spill] sm:$0xff] %v6714_v8  ;;  %v3036_v46 = vmul.f32 %v6584_v0, %v6714_v8 }
 0x157   : > { %v1922_v24 = vpop.f32.mrb[2].mxu0  ;;  %v2387_v6 = vpop.f32.mrb[2].mxu1 }
 0x158   : > { %v6695_v4 = vadd.f32 %v1922_v24, %v492_v16  ;;  %v6697_v32 = vadd.f32 %v2387_v6, %v494_v21  ;;  %v1924_v35 = vpop.f32.mrb[3].mxu0  ;;  %v2389_v45 = vpop.f32.mrb[3].mxu1  ;;  %3392 = vrot.lane.b32.xlu0 %v3382_v26, %s7976_s23  ;;  %2476 = vrot.lane.b32.xlu1 %v2465_v30, %s7997_s15  ;;  %v2395_v16 = vmax.f32 %v5791_v20, 0.0  ;;  %s7982_s23 = smov 123   ;;  %v2881_v21 = vmul.f32 %v6572_v56, %v6714_v8 }
 0x159   : > { %v6701_v36 = vadd.f32 %v1924_v35, %v493_v7  ;;  %v6703_v42 = vadd.f32 %v2389_v45, %v495_v44  ;;  %v2543_v26 = vmul.f32 %v6570_v55, %v6606_v10  ;;  %v6730_v30 = vpop.permute.xlu1 %2578  ;;  %v2959_v7 = vmul.f32 %v6580_v61, %v6714_v8 }
 0x15a   : > { %v6722_v11 = vmin.f32 %v2395_v16, 6.0  ;;  %v2581_v6 = vmul.f32 %v6730_v30, %v6606_v10  ;;  %v3536_v44 = vmul.f32 %v6574_v58, %v6606_v10  ;;  %v2842_v45 = vmul.f32 %v6558_v48, %v6714_v8 }
 0x15b   : > { %v3114_v16 = vmul.f32 %v6562_v50, %v6714_v8  ;;  %v2398_v22 = vmax.f32 %v6697_v32, 0.0 }
 0x15c   : > { %3469 = vrot.lane.b32.xlu0 %v3459_v47, %s7997_s15  ;;  %3430 = vrot.lane.b32.xlu1 %v3420_v18, %s7980_s21  ;;  %8098 = vst [vmem:[#allocation30_spill] sm:$0xff] %v6722_v11  ;;  %s7984_s21 = smov 72   ;;  %v2883_v24 = vmul.f32 %v6572_v56, %v6722_v11  ;;  %v2961_v35 = vmul.f32 %v6580_v61, %v6722_v11 }
 0x15d   : > { %v2844_v20 = vmul.f32 %v6558_v48, %v6722_v11  ;;  %v3038_v47 = vmul.f32 %v6584_v0, %v6722_v11  ;;  %v2920_v18 = vmul.f32 %v6576_v60, %v6714_v8  ;;  %v6918_v63 = vmin.f32 %v2398_v22, 6.0 }
 0x15f   : > { %v3308_v22 = vmul.f32 %v6630_v39, %v6918_v63 }
 0x160   : > { %3507 = vrot.lane.b32.xlu0 %v3497_v17, %s7982_s23  ;;  %2515 = vrot.lane.b32.xlu1 %v2504_v33, %s7995_s30  ;;  %s7993_s23 = smov 70   ;;  %v2922_v17 = vmul.f32 %v6576_v60, %v6722_v11  ;;  %v6768_v33 = vpop.permute.xlu1 %2617  ;;  %s8105_s30 = smov 76  }
 0x164   : > { %2892 = vrot.lane.b32.xlu0 %v2881_v21, %s7987_s20  ;;  %2554 = vrot.lane.b32.xlu1 %v2543_v26, %s7984_s21  ;;  %s7990_s21 = smov 120   ;;  %v3116_v21 = vmul.f32 %v6562_v50, %v6722_v11  ;;  %v2997_v26 = vmul.f32 %v6560_v49, %v6714_v8 }
 0x168   : > { %2896 = vrot.lane.b32.xlu0 %v2883_v24, %s7987_s20  ;;  %2589 = vrot.lane.b32.xlu1 %v2581_v6, %s7993_s23  ;;  %s8100_s20 = smov 35   ;;  %v3192_v24 = vmul.f32 %v6608_v34, %v6714_v8  ;;  %v2999_v6 = vmul.f32 %v6560_v49, %v6722_v11  ;;  %s8104_s23 = smov 38  }
 0x16c   : > { %2970 = vrot.lane.b32.xlu0 %v2959_v7, %s7986_s22  ;;  %3546 = vrot.lane.b32.xlu1 %v3536_v44, %s7990_s21  ;;  %v6780_v7 = vpop.permute.xlu1 %3577  ;;  %s8102_s21 = smov 88   ;;  %v3233_v44 = vmul.f32 %v6564_v51, %v6722_v11 }
 0x170   : > { %2974 = vrot.lane.b32.xlu0 %v2961_v35, %s7986_s22  ;;  %2853 = vrot.lane.b32.xlu1 %v2842_v45, %s7992_s16  ;;  %s8099_s22 = smov 119   ;;  %v3075_v35 = vmul.f32 %v6590_v13, %v6714_v8  ;;  %v6790_v45 = vpop.permute.xlu1 %3616 }
 0x174   : > { %3046 = vrot.lane.b32.xlu0 %v3036_v46, %s7988_s24  ;;  %2857 = vrot.lane.b32.xlu1 %v2844_v20, %s7992_s16  ;;  %s8103_s16 = smov 85   ;;  %v3344_v46 = vmul.f32 %v6566_v52, %v6722_v11  ;;  %v3077_v20 = vmul.f32 %v6590_v13, %v6722_v11 }
 0x178   : > { %3050 = vrot.lane.b32.xlu0 %v3038_v47, %s7988_s24  ;;  %2931 = vrot.lane.b32.xlu1 %v2920_v18, %s8099_s22  ;;  %s8101_s24 = smov 44   ;;  %v2466_v47 = vmul.f32 %v6652_v27, %v6722_v11  ;;  %v3153_v18 = vmul.f32 %v6598_v23, %v6714_v8 }
 0x17c   : > { %3124 = vrot.lane.b32.xlu0 %v3114_v16, %s8100_s20  ;;  %2935 = vrot.lane.b32.xlu1 %v2922_v17, %s8099_s22  ;;  %v6802_v16 = vpop.permute.xlu1 %2695  ;;  %v3421_v17 = vmul.f32 %v6568_v53, %v6722_v11 }
 0x180   : > { %3128 = vrot.lane.b32.xlu0 %v3116_v21, %s8100_s20  ;;  %3007 = vrot.lane.b32.xlu1 %v2997_v26, %s8101_s24  ;;  %v3155_v21 = vmul.f32 %v6598_v23, %v6722_v11  ;;  %v6812_v26 = vpop.permute.xlu1 %2734 }
 0x181   : > { %8108 = vst [vmem:[#allocation31_spill] sm:$0xff] %v6812_v26 }
 0x184   : > { %3202 = vrot.lane.b32.xlu0 %v3192_v24, %s8102_s21  ;;  %3011 = vrot.lane.b32.xlu1 %v2999_v6, %s8101_s24  ;;  %v2464_v24 = vmul.f32 %v6652_v27, %v6714_v8  ;;  %v3194_v6 = vmul.f32 %v6608_v34, %v6722_v11 }
 0x188   : > { %3245 = vrot.lane.b32.xlu0 %v3233_v44, %s8103_s16  ;;  %3085 = vrot.lane.b32.xlu1 %v3075_v35, %s8104_s23  ;;  %v2505_v44 = vmul.f32 %v6667_v37, %v6722_v11  ;;  %v3231_v35 = vmul.f32 %v6564_v51, %v6714_v8 }
 0x18c   : > { %3355 = vrot.lane.b32.xlu0 %v3344_v46, %s8105_s30  ;;  %3089 = vrot.lane.b32.xlu1 %v3077_v20, %s8104_s23  ;;  %v6824_v46 = vpop.permute.xlu1 %3694  ;;  %v2396_v20 = vmax.f32 %v6695_v4, 0.0  ;;  %v3305_v4 = vmul.f32 %v6630_v39, %v6722_v11 }
 0x18d   : > { %8109 = vst [vmem:[#allocation32_spill] sm:$0xff] %v6824_v46 }
 0x190   : > { %2478 = vrot.lane.b32.xlu0 %v2466_v47, %s7997_s15  ;;  %3163 = vrot.lane.b32.xlu1 %v3153_v18, %s8106_s0  ;;  %v2544_v47 = vmul.f32 %v6570_v55, %v6722_v11  ;;  %v3271_v18 = vmul.f32 %v6620_v41, %v6722_v11 }
 0x194   : > { %3432 = vrot.lane.b32.xlu0 %v3421_v17, %s8107_s1  ;;  %3167 = vrot.lane.b32.xlu1 %v3155_v21, %s8106_s0  ;;  %v6835_v17 = vpop.permute.xlu0 %2452  ;;  %v6837_v21 = vpop.permute.xlu1 %2829 }
 0x195   : > { %8113 = vst [vmem:[#allocation33_spill] sm:$0xff] %v6835_v17 }
 0x198   : > { %2474 = vrot.lane.b32.xlu0 %v2464_v24, %s7997_s15  ;;  %3206 = vrot.lane.b32.xlu1 %v3194_v6, %s8102_s21  ;;  %s8111_s15 = smov 72   ;;  %v6839_v24 = vmin.f32 %v2396_v20, 6.0  ;;  %v2582_v6 = vmul.f32 %v6730_v30, %v6722_v11  ;;  %v3383_v20 = vmul.f32 %v6642_v19, %v6722_v11 }
 0x19a   : > { %v2884_v25 = vmul.f32 %v6572_v56, %v6839_v24  ;;  %v3306_v32 = vmul.f32 %v6630_v39, %v6839_v24  ;;  %v2962_v28 = vmul.f32 %v6580_v61, %v6839_v24 }
 0x19c   : > { %2517 = vrot.lane.b32.xlu0 %v2505_v44, %s8110_s2  ;;  %3241 = vrot.lane.b32.xlu1 %v3231_v35, %s8103_s16 }
 0x1a0   : > { %2556 = vrot.lane.b32.xlu0 %v2544_v47, %s8111_s15  ;;  %3280 = vrot.lane.b32.xlu1 %v3271_v18, %s8112_s3  ;;  %v2845_v47 = vmul.f32 %v6558_v48, %v6839_v24 }
 0x1a4   : > { %2591 = vrot.lane.b32.xlu0 %v2582_v6, %s8114_s6  ;;  %3316 = vrot.lane.b32.xlu1 %v3305_v4, %s8115_s8  ;;  %v2923_v6 = vmul.f32 %v6576_v60, %v6839_v24  ;;  %v3460_v4 = vmul.f32 %v6682_v40, %v6722_v11 }
 0x1a6   : > { %v6847_v44 = vpop.permute.xlu0 %2855  ;;  %v6849_v35 = vpop.permute.xlu1 %2851 }
 0x1a7   : > { %8116 = vst [vmem:[#allocation34_spill] sm:$0xff] %v6849_v35  ;;  %v2506_v35 = vmul.f32 %v6667_v37, %v6839_v24 }
 0x1a8   : > { %2859 = vrot.lane.b32.xlu0 %v2845_v47, %s8117_s17  ;;  %3394 = vrot.lane.b32.xlu1 %v3383_v20, %s8118_s27  ;;  %v3000_v47 = vmul.f32 %v6560_v49, %v6839_v24  ;;  %v2503_v20 = vmul.f32 %v6667_v37, %v6714_v8  ;;  %s8123_s17 = smov 123  }
 0x1aa   : > { %v6857_v18 = vpop.permute.xlu0 %2890  ;;  %v6859_v1 = vpop.permute.xlu1 %2894 }
 0x1ab   : > { %8119 = vst [vmem:[#allocation35_spill] sm:$0xff] %v6857_v18 }
 0x1ac   : > { %2937 = vrot.lane.b32.xlu0 %v2923_v6, %s8099_s22  ;;  %3471 = vrot.lane.b32.xlu1 %v3460_v4, %s8120_s14  ;;  %v3078_v6 = vmul.f32 %v6590_v13, %v6839_v24  ;;  %v3498_v4 = vmul.f32 %v6712_v43, %v6722_v11  ;;  %s8124_s22 = smov 120  }
 0x1ae   : > { %v6867_v48 = vpop.permute.xlu0 %2933  ;;  %v6869_v29 = vpop.permute.xlu1 %2929 }
 0x1af   : > { %8121 = vst [vmem:[#allocation36_spill] sm:$0xff] %v6869_v29 }
 0x1b0   : > { %3013 = vrot.lane.b32.xlu0 %v3000_v47, %s8101_s24  ;;  %2513 = vrot.lane.b32.xlu1 %v2503_v20, %s8110_s2  ;;  %v3156_v47 = vmul.f32 %v6598_v23, %v6839_v24  ;;  %v2542_v20 = vmul.f32 %v6570_v55, %v6714_v8 }
 0x1b2   : > { %v6877_v60 = vpop.permute.xlu0 %2968  ;;  %v6879_v9 = vpop.permute.xlu1 %2972 }
 0x1b3   : > { %8122 = vst [vmem:[#allocation37_spill] sm:$0xff] %v6877_v60 }
 0x1b4   : > { %3091 = vrot.lane.b32.xlu0 %v3078_v6, %s8104_s23  ;;  %3509 = vrot.lane.b32.xlu1 %v3498_v4, %s8123_s17  ;;  %v3195_v6 = vmul.f32 %v6608_v34, %v6839_v24  ;;  %v3537_v4 = vmul.f32 %v6574_v58, %v6722_v11 }
 0x1b6   : > { %v6887_v31 = vpop.permute.xlu0 %3009  ;;  %v6889_v2 = vpop.permute.xlu1 %3048 }
 0x1b8   : > { %3169 = vrot.lane.b32.xlu0 %v3156_v47, %s8106_s0  ;;  %2552 = vrot.lane.b32.xlu1 %v2542_v20, %s8111_s15  ;;  %v3272_v20 = vmul.f32 %v6620_v41, %v6839_v24 }
 0x1ba   : > { %v6897_v15 = vpop.permute.xlu0 %3087  ;;  %v6899_v57 = vpop.permute.xlu1 %3126 }
 0x1bc   : > { %3208 = vrot.lane.b32.xlu0 %v3195_v6, %s8102_s21  ;;  %3548 = vrot.lane.b32.xlu1 %v3537_v4, %s8124_s22 }
 0x1be   : > { %v6908_v54 = vpop.permute.xlu0 %3165  ;;  %v6910_v47 = vpop.permute.xlu1 %3243 }
 0x1c0   : > { %3282 = vrot.lane.b32.xlu0 %v3272_v20, %s8112_s3  ;;  %2898 = vrot.lane.b32.xlu1 %v2884_v25, %s8125_s19  ;;  %v3039_v25 = vmul.f32 %v6584_v0, %v6839_v24  ;;  %s8128_s19 = smov 41  }
 0x1c2   : > { %v6920_v6 = vpop.permute.xlu0 %3204  ;;  %v6922_v4 = vpop.permute.xlu1 %3278 }
 0x1c3   : > { %8126 = vst [vmem:[#allocation38_spill] sm:$0xff] %v6922_v4 }
 0x1c4   : > { %3318 = vrot.lane.b32.xlu0 %v3306_v32, %s8115_s8  ;;  %2976 = vrot.lane.b32.xlu1 %v2962_v28, %s8127_s25  ;;  %v3384_v28 = vmul.f32 %v6642_v19, %v6839_v24  ;;  %v3117_v32 = vmul.f32 %v6562_v50, %v6839_v24  ;;  %s6132_s25 = smov 14  }
 0x1c6   : > { %v6930_v56 = vpop.permute.xlu0 %3314  ;;  %v6932_v20 = vpop.permute.xlu1 %3353 }
 0x1c8   : > { %3322 = vrot.lane.b32.xlu0 %v3308_v22, %s8115_s8  ;;  %3052 = vrot.lane.b32.xlu1 %v3039_v25, %s8128_s19  ;;  %v3386_v22 = vmul.f32 %v6642_v19, %v6918_v63  ;;  %v3234_v25 = vmul.f32 %v6564_v51, %v6839_v24 }
 0x1ca   : > { %v6940_v59 = vpop.permute.xlu0 %3392  ;;  %v6942_v61 = vpop.permute.xlu1 %2476 }
 0x1cb   : > { %8129 = vst [vmem:[#allocation39_spill] sm:$0xff] %v6940_v59  ;;  %8130 = vst [vmem:[#allocation40_spill] sm:$0xff] %v6942_v61 }
 0x1cc   : > { %3396 = vrot.lane.b32.xlu0 %v3384_v28, %s8118_s27  ;;  %3130 = vrot.lane.b32.xlu1 %v3117_v32, %s8100_s20  ;;  %v3461_v28 = vmul.f32 %v6682_v40, %v6839_v24  ;;  %v3345_v32 = vmul.f32 %v6566_v52, %v6839_v24 }
 0x1ce   : > { %v6950_v38 = vpop.permute.xlu0 %3469  ;;  %v6952_v14 = vpop.permute.xlu1 %3430 }
 0x1cf   : > { %8131 = vst [vmem:[#allocation41_spill] sm:$0xff] %v6950_v38  ;;  %8132 = vst [vmem:[#allocation42_spill] sm:$0xff] %v6952_v14 }
 0x1d0   : > { %3400 = vrot.lane.b32.xlu0 %v3386_v22, %s8118_s27  ;;  %3247 = vrot.lane.b32.xlu1 %v3234_v25, %s8103_s16  ;;  %v3463_v22 = vmul.f32 %v6682_v40, %v6918_v63  ;;  %v3347_v25 = vmul.f32 %v6566_v52, %v6918_v63 }
 0x1d2   : > { %v6960_v61 = vpop.permute.xlu0 %3507  ;;  %v6962_v60 = vpop.permute.xlu1 %2515 }
 0x1d3   : > { %8133 = vst [vmem:[#allocation43_spill] sm:$0xff] %v6960_v61  ;;  %8134 = vst [vmem:[#allocation44_spill] sm:$0xff] %v6962_v60 }
 0x1d4   : > { %3473 = vrot.lane.b32.xlu0 %v3461_v28, %s8120_s14  ;;  %3357 = vrot.lane.b32.xlu1 %v3345_v32, %s8105_s30  ;;  %v3499_v28 = vmul.f32 %v6712_v43, %v6839_v24  ;;  %v2467_v32 = vmul.f32 %v6652_v27, %v6839_v24 }
 0x1d6   : > { %v6970_v38 = vpop.permute.xlu0 %2892  ;;  %v6972_v12 = vpop.permute.xlu1 %2554 }
 0x1d7   : > { %8135 = vst [vmem:[#allocation45_spill] sm:$0xff] %v6970_v38  ;;  %8136 = vst [vmem:[#allocation46_spill] sm:$0xff] %v6972_v12 }
 0x1d8   : > { %3477 = vrot.lane.b32.xlu0 %v3463_v22, %s8120_s14  ;;  %3361 = vrot.lane.b32.xlu1 %v3347_v25, %s8105_s30  ;;  %v3501_v22 = vmul.f32 %v6712_v43, %v6918_v63  ;;  %v3422_v25 = vmul.f32 %v6568_v53, %v6839_v24 }
 0x1da   : > { %v6980_v61 = vpop.permute.xlu0 %2896  ;;  %v6982_v60 = vpop.permute.xlu1 %2589 }
 0x1db   : > { %8137 = vst [vmem:[#allocation47_spill] sm:$0xff] %v6982_v60  ;;  %v2397_v60 = vmax.f32 %v6701_v36, 0.0  ;;  %v3540_v36 = vmul.f32 %v6574_v58, %v6918_v63 }
 0x1dc   : > { %3511 = vrot.lane.b32.xlu0 %v3499_v28, %s8123_s17  ;;  %2480 = vrot.lane.b32.xlu1 %v2467_v32, %s8120_s14  ;;  %v3538_v32 = vmul.f32 %v6574_v58, %v6839_v24 }
 0x1dd   : > { %v7011_v46 = vmin.f32 %v2397_v60, 6.0  ;;  %v2545_v60 = vmul.f32 %v6570_v55, %v6839_v24 }
 0x1de   : > { %v6990_v12 = vpop.permute.xlu0 %2970  ;;  %v6992_v29 = vpop.permute.xlu1 %3546 }
 0x1df   : > { %8138 = vst [vmem:[#allocation48_spill] sm:$0xff] %v6990_v12  ;;  %8139 = vst [vmem:[#allocation49_spill] sm:$0xff] %v6992_v29  ;;  %v3424_v29 = vmul.f32 %v6568_v53, %v6918_v63 }
 0x1e0   : > { %3515 = vrot.lane.b32.xlu0 %v3501_v22, %s8123_s17  ;;  %3434 = vrot.lane.b32.xlu1 %v3422_v25, %s8107_s1 }
 0x1e2   : > { %v7001_v18 = vpop.permute.xlu0 %2974  ;;  %v7003_v28 = vpop.permute.xlu1 %2853 }
 0x1e4   : > { %3550 = vrot.lane.b32.xlu0 %v3538_v32, %s8124_s22  ;;  %3438 = vrot.lane.b32.xlu1 %v3424_v29, %s8107_s1  ;;  %v3040_v29 = vmul.f32 %v6584_v0, %v7011_v46 }
 0x1e6   : > { %v7013_v22 = vpop.permute.xlu0 %3046  ;;  %v7015_v25 = vpop.permute.xlu1 %2857 }
 0x1e7   : > { %8140 = vst [vmem:[#allocation50_spill] sm:$0xff] %v7013_v22 }
 0x1e8   : > { %3554 = vrot.lane.b32.xlu0 %v3540_v36, %s8124_s22  ;;  %2519 = vrot.lane.b32.xlu1 %v2506_v35, %s8110_s2  ;;  %v3118_v35 = vmul.f32 %v6562_v50, %v7011_v46  ;;  %v2583_v36 = vmul.f32 %v6730_v30, %v6839_v24 }
 0x1ea   : > { %v7023_v17 = vpop.permute.xlu0 %3050  ;;  %v7025_v32 = vpop.permute.xlu1 %2931 }
 0x1eb   : > { %8141 = vst [vmem:[#allocation51_spill] sm:$0xff] %v7025_v32 }
 0x1ec   : > { %3054 = vrot.lane.b32.xlu0 %v3040_v29, %s8128_s19  ;;  %2558 = vrot.lane.b32.xlu1 %v2545_v60, %s8111_s15  ;;  %v3235_v29 = vmul.f32 %v6564_v51, %v7011_v46  ;;  %v3001_v60 = vmul.f32 %v6560_v49, %v7011_v46 }
 0x1ee   : > { %v7033_v5 = vpop.permute.xlu0 %3124  ;;  %v7035_v26 = vpop.permute.xlu1 %2935 }
 0x1f0   : > { %3132 = vrot.lane.b32.xlu0 %v3118_v35, %s8100_s20  ;;  %2593 = vrot.lane.b32.xlu1 %v2583_v36, %s8114_s6  ;;  %v3346_v35 = vmul.f32 %v6566_v52, %v7011_v46  ;;  %v3079_v36 = vmul.f32 %v6590_v13, %v7011_v46 }
 0x1f2   : > { %v7043_v0 = vpop.permute.xlu0 %3128  ;;  %v7045_v14 = vpop.permute.xlu1 %3007 }
 0x1f3   : > { %8142 = vst [vmem:[#allocation52_spill] sm:$0xff] %v7045_v14 }
 0x1f4   : > { %3249 = vrot.lane.b32.xlu0 %v3235_v29, %s8103_s16  ;;  %3015 = vrot.lane.b32.xlu1 %v3001_v60, %s8101_s24  ;;  %v2468_v29 = vmul.f32 %v6652_v27, %v7011_v46  ;;  %v3157_v60 = vmul.f32 %v6598_v23, %v7011_v46 }
 0x1f6   : > { %v7053_v50 = vpop.permute.xlu0 %3202  ;;  %v7055_v62 = vpop.permute.xlu1 %3011 }
 0x1f7   : > { %8143 = vst [vmem:[#allocation53_spill] sm:$0xff] %v7053_v50 }
 0x1f8   : > { %3359 = vrot.lane.b32.xlu0 %v3346_v35, %s8105_s30  ;;  %3093 = vrot.lane.b32.xlu1 %v3079_v36, %s8104_s23  ;;  %v3423_v35 = vmul.f32 %v6568_v53, %v7011_v46  ;;  %v3196_v36 = vmul.f32 %v6608_v34, %v7011_v46  ;;  %s6136_s23 = smov 36  }
 0x1fa   : > { %v7063_v51 = vpop.permute.xlu0 %3245  ;;  %v7065_v49 = vpop.permute.xlu1 %3085 }
 0x1fc   : > { %2482 = vrot.lane.b32.xlu0 %v2468_v29, %s8120_s14  ;;  %3171 = vrot.lane.b32.xlu1 %v3157_v60, %s8106_s0  ;;  %v2507_v29 = vmul.f32 %v6667_v37, %v7011_v46  ;;  %v3273_v60 = vmul.f32 %v6620_v41, %v7011_v46  ;;  %s6128_s0 = smov 68  }
 0x1fe   : > { %v7073_v52 = vpop.permute.xlu0 %3355  ;;  %v7075_v13 = vpop.permute.xlu1 %3089 }
 0x200   : > { %3436 = vrot.lane.b32.xlu0 %v3423_v35, %s8107_s1  ;;  %3210 = vrot.lane.b32.xlu1 %v3196_v36, %s8102_s21  ;;  %v2546_v35 = vmul.f32 %v6570_v55, %v7011_v46  ;;  %v3307_v36 = vmul.f32 %v6630_v39, %v7011_v46  ;;  %s6129_s1 = smov 48   ;;  %s6135_s21 = smov 39  }
 0x202   : > { %v7083_v27 = vpop.permute.xlu0 %2478  ;;  %v7085_v23 = vpop.permute.xlu1 %3163 }
 0x203   : > { %8144 = vst [vmem:[#allocation54_spill] sm:$0xff] %v7083_v27 }
 0x204   : > { %2521 = vrot.lane.b32.xlu0 %v2507_v29, %s8110_s2  ;;  %3284 = vrot.lane.b32.xlu1 %v3273_v60, %s8112_s3  ;;  %v2584_v29 = vmul.f32 %v6730_v30, %v7011_v46  ;;  %v3385_v60 = vmul.f32 %v6642_v19, %v7011_v46  ;;  %s6130_s2 = smov 16   ;;  %s6131_s3 = smov 45  }
 0x206   : > { %v7093_v53 = vpop.permute.xlu0 %3432  ;;  %v7095_v34 = vpop.permute.xlu1 %3167 }
 0x208   : > { %2560 = vrot.lane.b32.xlu0 %v2546_v35, %s8111_s15  ;;  %3320 = vrot.lane.b32.xlu1 %v3307_v36, %s8115_s8  ;;  %v2620_v35 = vmul.f32 %v6768_v33, %v6606_v10  ;;  %v3462_v36 = vmul.f32 %v6682_v40, %v7011_v46  ;;  %v2863_v40 = vsel %vm2861_vm2, %v7003_v28, %v6847_v44  ;;  %s6139_s15 = smov [#allocation3]  }
 0x20a   : > { %v7103_v37 = vpop.permute.xlu0 %2474  ;;  %v7105_v41 = vpop.permute.xlu1 %3206 }
 0x20b   : > { %8145 = vst [vmem:[#allocation55_spill] sm:$0xff] %v7103_v37  ;;  %v2624_v37 = vmul.f32 %v6768_v33, %v6918_v63 }
 0x20c   : > { %2595 = vrot.lane.b32.xlu0 %v2584_v29, %s8114_s6  ;;  %3398 = vrot.lane.b32.xlu1 %v3385_v60, %s8118_s27  ;;  %v2622_v29 = vmul.f32 %v6768_v33, %v6839_v24  ;;  %v3500_v60 = vmul.f32 %v6712_v43, %v7011_v46  ;;  %v3539_v43 = vmul.f32 %v6574_v58, %v7011_v46  ;;  %s6133_s27 = smov 42  }
 0x20d   : > { %v2902_v58 = vsel %vm2900_vm3, %v6970_v38, %v6859_v1  ;;  %v3583_v38 = vmul.f32 %v6780_v7, %v6918_v63 }
 0x20e   : > { %v7113_v55 = vpop.permute.xlu0 %2517  ;;  %v7115_v39 = vpop.permute.xlu1 %3241 }
 0x20f   : > { %8146 = vst [vmem:[#allocation56_spill] sm:$0xff] %v7113_v55  ;;  %8147 = vst [vmem:[#allocation57_spill] sm:$0xff] %v7115_v39  ;;  %v2623_v55 = vmul.f32 %v6768_v33, %v7011_v46 }
 0x210   : > { %2630 = vrot.lane.b32.xlu0 %v2620_v35, %s6128_s0  ;;  %3475 = vrot.lane.b32.xlu1 %v3462_v36, %s8120_s14  ;;  %v2833_v35 = vmul.f32 %v6837_v21, %v6714_v8  ;;  %v3581_v8 = vmul.f32 %v6780_v7, %v6839_v24  ;;  %s6134_s14 = smov 12  }
 0x212   : > { %v7123_v19 = vpop.permute.xlu0 %2556  ;;  %v7125_v30 = vpop.permute.xlu1 %3280 }
 0x213   : > { %8148 = vst [vmem:[#allocation58_spill] sm:$0xff] %v7123_v19 }
 0x214   : > { %2634 = vrot.lane.b32.xlu0 %v2622_v29, %s6128_s0  ;;  %3513 = vrot.lane.b32.xlu1 %v3500_v60, %s8123_s17  ;;  %v2872_v29 = vadd.f32 %v2863_v40, %v2833_v35  ;;  %s6020_s17 = sshll.u32 %s6139_s15, 4  ;;  %s6021_s17 = int_to_ptr.vmem [resolvable:$false] %s6020_s17 }
 0x216   : > { %v7138_v36 = vpop.permute.xlu0 %2591  ;;  %v7140_v39 = vpop.permute.xlu1 %3316  ;;  %v2911_v40 = vadd.f32 %v2902_v58, %v2872_v29  ;;  %v2399_v29 = vmax.f32 %v6703_v42, 0.0  ;;  %v2864_v42 = vsel %vm2861_vm2, %v6847_v44, %v7015_v25  ;;  %v3096_v44 = vsel %vm3095_vm8, %v7065_v49, %v6897_v15 }
 0x217   : > { %8149 = vst [vmem:[#allocation59_spill] sm:$0xff] %v7138_v36  ;;  %v2621_v36 = vmul.f32 %v6768_v33, %v6722_v11  ;;  %v3580_v33 = vmul.f32 %v6780_v7, %v6722_v11 }
 0x218   : > { %2638 = vrot.lane.b32.xlu0 %v2624_v37, %s6128_s0  ;;  %3552 = vrot.lane.b32.xlu1 %v3539_v43, %s8124_s22  ;;  %v2941_v37 = vsel %vm2939_vm4, %v7025_v32, %v6867_v48  ;;  %s6022_s22 = scalar_lea.vmem %s6021_s17, 1024 }
 0x219   : > { %v2950_v35 = vadd.f32 %v2941_v37, %v2911_v40 }
 0x21a   : > { %v7148_v60 = vpop.permute.xlu0 %2859  ;;  %v7150_v50 = vpop.permute.xlu1 %3394 }
 0x21c   : > { %3592 = vrot.lane.b32.xlu0 %v3581_v8, %s6129_s1  ;;  %2632 = vrot.lane.b32.xlu1 %v2621_v36, %s6128_s0  ;;  %v2980_v8 = vsel %vm2978_vm5, %v6990_v12, %v6879_v9  ;;  %v3018_v36 = vsel %vm3017_vm6, %v7045_v14, %v6887_v31 }
 0x21d   : > { %v2989_v58 = vadd.f32 %v2980_v8, %v2950_v35  ;;  %v7194_v35 = vmin.f32 %v2399_v29, 6.0  ;;  %v2834_v8 = vmul.f32 %v6837_v21, %v6606_v10 }
 0x21e   : > { %v7164_v43 = vpop.permute.xlu0 %2937  ;;  %v7166_v19 = vpop.permute.xlu1 %3471 }
 0x21f   : > { %8150 = vst [vmem:[#allocation60_spill] sm:$0xff] %v7166_v19  ;;  %v2873_v29 = vadd.f32 %v2864_v42, %v2834_v8  ;;  %v3584_v32 = vmul.f32 %v6780_v7, %v7194_v35  ;;  %v2942_v42 = vsel %vm2939_vm4, %v6867_v48, %v7035_v26 }
 0x220   : > { %3596 = vrot.lane.b32.xlu0 %v3583_v38, %s6129_s1  ;;  %2636 = vrot.lane.b32.xlu1 %v2623_v55, %s6128_s0  ;;  %v2659_v38 = vmul.f32 %v6578_v3, %v6606_v10  ;;  %v3028_v55 = vadd.f32 %v3018_v36, %v2989_v58  ;;  %v2661_v36 = vmul.f32 %v6578_v3, %v6839_v24  ;;  %s6137_s0 = smov 58  }
 0x221   : > { %v3582_v58 = vmul.f32 %v6780_v7, %v7011_v46  ;;  %v3174_v7 = vsel %vm3173_vm10, %v7085_v23, %v6908_v54 }
 0x222   : > { %v7181_v37 = vpop.permute.xlu0 %3013  ;;  %v7183_v40 = vpop.permute.xlu1 %2513 }
 0x223   : > { %8151 = vst [vmem:[#allocation61_spill] sm:$0xff] %v7181_v37  ;;  %8152 = vst [vmem:[#allocation62_spill] sm:$0xff] %v7183_v40 }
 0x224   : > { %2669 = vrot.lane.b32.xlu0 %v2659_v38, %s6130_s2  ;;  %3590 = vrot.lane.b32.xlu1 %v3580_v33, %s6129_s1  ;;  %v3057_v38 = vsel %vm3056_vm7, %v7013_v22, %v6889_v2  ;;  %v2663_v22 = vmul.f32 %v6578_v3, %v6918_v63 }
 0x225   : > { %v3067_v33 = vadd.f32 %v3057_v38, %v3028_v55  ;;  %v2903_v55 = vsel %vm2900_vm3, %v6859_v1, %v6980_v61  ;;  %v3619_v1 = vmul.f32 %v6790_v45, %v6722_v11 }
 0x226   : > { %v7198_v40 = vpop.permute.xlu0 %3091  ;;  %v7200_v14 = vpop.permute.xlu1 %3509  ;;  %v2912_v8 = vadd.f32 %v2903_v55, %v2873_v29  ;;  %v3621_v55 = vmul.f32 %v6790_v45, %v7011_v46 }
 0x227   : > { %8153 = vst [vmem:[#allocation63_spill] sm:$0xff] %v7198_v40  ;;  %8154 = vst [vmem:[#allocation64_spill] sm:$0xff] %v7200_v14  ;;  %v3106_v40 = vadd.f32 %v3096_v44, %v3067_v33  ;;  %v3019_v33 = vsel %vm3017_vm6, %v6887_v31, %v7055_v62  ;;  %v3253_v31 = vsel %vm3251_vm12, %v6910_v47, %v7063_v51 }
 0x228   : > { %2673 = vrot.lane.b32.xlu0 %v2661_v36, %s6130_s2  ;;  %3594 = vrot.lane.b32.xlu1 %v3582_v58, %s6129_s1  ;;  %v3135_v36 = vsel %vm3134_vm9, %v7033_v5, %v6899_v57  ;;  %v2951_v58 = vadd.f32 %v2942_v42, %v2912_v8  ;;  %v2662_v42 = vmul.f32 %v6578_v3, %v7011_v46 }
 0x229   : > { %v3145_v38 = vadd.f32 %v3135_v36, %v3106_v40  ;;  %v2981_v40 = vsel %vm2978_vm5, %v6879_v9, %v7001_v18  ;;  %v3287_v9 = vsel %vm3286_vm13, %v6922_v4, %v7125_v30 }
 0x22a   : > { %v7214_v12 = vpop.permute.xlu0 %3169  ;;  %v7216_v37 = vpop.permute.xlu1 %2552  ;;  %v2990_v8 = vadd.f32 %v2981_v40, %v2951_v58  ;;  %v3058_v40 = vsel %vm3056_vm7, %v6889_v2, %v7023_v17 }
 0x22b   : > { %8155 = vst [vmem:[#allocation65_spill] sm:$0xff] %v7216_v37  ;;  %v3184_v29 = vadd.f32 %v3174_v7, %v3145_v38 }
 0x22c   : > { %2677 = vrot.lane.b32.xlu0 %v2663_v22, %s6130_s2  ;;  %3598 = vrot.lane.b32.xlu1 %v3584_v32, %s6129_s1  ;;  %v2660_v22 = vmul.f32 %v6578_v3, %v6722_v11  ;;  %v3214_v32 = vsel %vm8047_vm11, %v6920_v6, %v7105_v41  ;;  %v3029_v38 = vadd.f32 %v3019_v33, %v2990_v8  ;;  %v2772_v3 = vld [vmem:[%s7951_s7] sm:$0xff]  ;;  %s6138_s1 = smov 46  }
 0x22d   : > { %v3223_v36 = vadd.f32 %v3214_v32, %v3184_v29  ;;  %v3623_v29 = vmul.f32 %v6790_v45, %v7194_v35  ;;  %v3097_v33 = vsel %vm3095_vm8, %v6897_v15, %v7075_v13  ;;  %v3620_v15 = vmul.f32 %v6790_v45, %v6839_v24 }
 0x22e   : > { %v7238_v48 = vpop.permute.xlu0 %3208  ;;  %v7240_v44 = vpop.permute.xlu1 %3548 }
 0x22f   : > { %8156 = vst [vmem:[#allocation66_spill] sm:$0xff] %v7240_v44  ;;  %v3262_v58 = vadd.f32 %v3253_v31, %v3223_v36  ;;  %v2699_v36 = vmul.f32 %v6802_v16, %v6722_v11 }
 0x230   : > { %3629 = vrot.lane.b32.xlu0 %v3619_v1, %s6131_s3  ;;  %2671 = vrot.lane.b32.xlu1 %v2660_v22, %s6130_s2 }
 0x231   : > { %v3296_v8 = vadd.f32 %v3287_v9, %v3262_v58  ;;  %v3364_v9 = vsel %vm3363_vm15, %v6932_v20, %v7073_v52 }
 0x232   : > { %v7259_v7 = vpop.permute.xlu0 %3282  ;;  %v7261_v1 = vpop.permute.xlu1 %2898 }
 0x234   : > { %3633 = vrot.lane.b32.xlu0 %v3621_v55, %s6131_s3  ;;  %2675 = vrot.lane.b32.xlu1 %v2662_v42, %s6130_s2  ;;  %v3325_v55 = vsel %vm8048_vm14, %v6930_v56, %v7140_v39  ;;  %v3068_v42 = vadd.f32 %v3058_v40, %v3029_v38  ;;  %v3136_v38 = vsel %vm3134_vm9, %v6899_v57, %v7043_v0 }
 0x235   : > { %v3335_v4 = vadd.f32 %v3325_v55, %v3296_v8  ;;  %v2701_v55 = vmul.f32 %v6802_v16, %v7011_v46  ;;  %v3622_v57 = vmul.f32 %v6790_v45, %v6918_v63 }
 0x236   : > { %v7274_v22 = vpop.permute.xlu0 %3318  ;;  %v7276_v32 = vpop.permute.xlu1 %2976  ;;  %v3107_v31 = vadd.f32 %v3097_v33, %v3068_v42  ;;  %v3402_v42 = vsel %vm511_vm0, %v6940_v59, %v7150_v50 }
 0x238   : > { %3637 = vrot.lane.b32.xlu0 %v3623_v29, %s6131_s3  ;;  %2775 = vperm.xlu1 %6011, %v2772_v3   ;;  %v3175_v3 = vsel %vm3173_vm10, %v6908_v54, %v7095_v34  ;;  %v3146_v58 = vadd.f32 %v3136_v38, %v3107_v31  ;;  %v3374_v29 = vadd.f32 %v3364_v9, %v3335_v4  ;;  %v8157_v4 = vld [vmem:[#allocation25_spill] sm:$0xff] }
 0x239   : > { %v3215_v54 = vsel %vm8047_vm11, %v7105_v41, %v7238_v48  ;;  %v2698_v9 = vmul.f32 %v6802_v16, %v6606_v10  ;;  %vm2484_vm11 = vcmask 1031168  }
 0x23a   : > { %v7292_v2 = vpop.permute.xlu0 %3322  ;;  %v7294_v37 = vpop.permute.xlu1 %3052  ;;  %v3185_v8 = vadd.f32 %v3175_v3, %v3146_v58  ;;  %v3412_v31 = vadd.f32 %v3402_v42, %v3374_v29  ;;  %v8158_v58 = vld [vmem:[#allocation42_spill] sm:$0xff] }
 0x23b   : > { %v3441_v29 = vsel %vm3440_vm1, %v8158_v58, %v7093_v53 }
 0x23c   : > { %2710 = vrot.lane.b32.xlu0 %v2699_v36, %s6132_s25  ;;  %3631 = vrot.lane.b32.xlu1 %v3620_v15, %s6131_s3  ;;  %v3658_v36 = vmul.f32 %v8157_v4, %v6722_v11  ;;  %v3224_v15 = vadd.f32 %v3215_v54, %v3185_v8  ;;  %v3451_v54 = vadd.f32 %v3441_v29, %v3412_v31 }
 0x23e   : > { %v7309_v40 = vpop.permute.xlu0 %3396  ;;  %v7311_v33 = vpop.permute.xlu1 %3130 }
 0x240   : > { %2714 = vrot.lane.b32.xlu0 %v2701_v55, %s6132_s25  ;;  %3635 = vrot.lane.b32.xlu1 %v3622_v57, %s6131_s3  ;;  %v3288_v55 = vsel %vm3286_vm13, %v7125_v30, %v7259_v7  ;;  %v3660_v57 = vmul.f32 %v8157_v4, %v7011_v46 }
 0x242   : > { %v7327_v45 = vpop.permute.xlu0 %3400  ;;  %v7329_v38 = vpop.permute.xlu1 %3247 }
 0x243   : > { %v3254_v41 = vsel %vm3251_vm12, %v7063_v51, %v7329_v38 }
 0x244   : > { %v3263_v3 = vadd.f32 %v3254_v41, %v3224_v15  ;;  %3668 = vrot.lane.b32.xlu0 %v3658_v36, %s6133_s27  ;;  %2708 = vrot.lane.b32.xlu1 %v2698_v9, %s6132_s25  ;;  %v2700_v36 = vmul.f32 %v6802_v16, %v6839_v24  ;;  %v3326_v15 = vsel %vm8048_vm14, %v7140_v39, %v7274_v22  ;;  %vm8051_vm14 = vcmask 1006592  }
 0x245   : > { %v3662_v39 = vmul.f32 %v8157_v4, %v7194_v35 }
 0x246   : > { %v3297_v42 = vadd.f32 %v3288_v55, %v3263_v3  ;;  %v7346_v51 = vpop.permute.xlu0 %3473  ;;  %v7348_v8 = vpop.permute.xlu1 %3357 }
 0x247   : > { %v3480_v30 = vsel %vm2484_vm11, %v7166_v19, %v7346_v51  ;;  %v3365_v31 = vsel %vm3363_vm15, %v7073_v52, %v7348_v8 }
 0x248   : > { %v3489_v9 = vadd.f32 %v3480_v30, %v3451_v54  ;;  %v3336_v41 = vadd.f32 %v3326_v15, %v3297_v42  ;;  %3672 = vrot.lane.b32.xlu0 %v3660_v57, %s6133_s27  ;;  %2712 = vrot.lane.b32.xlu1 %v2700_v36, %s6132_s25  ;;  %v2702_v54 = vmul.f32 %v6802_v16, %v6918_v63  ;;  %v8159_v15 = vld [vmem:[#allocation31_spill] sm:$0xff] }
 0x249   : > { %v3403_v57 = vsel %vm511_vm0, %v7150_v50, %v7309_v40  ;;  %v2737_v30 = vmul.f32 %v8159_v15, %v6606_v10  ;;  %v3659_v16 = vmul.f32 %v8157_v4, %v6839_v24  ;;  %v3771_v10 = vld [vmem:[%s7953_s9] sm:$0xff] }
 0x24a   : > { %v3375_v3 = vadd.f32 %v3365_v31, %v3336_v41  ;;  %v7363_v29 = vpop.permute.xlu0 %3477  ;;  %v7365_v55 = vpop.permute.xlu1 %3361  ;;  %v2865_v31 = vsel %vm2861_vm2, %v7015_v25, %v7148_v60 }
 0x24c   : > { %3676 = vrot.lane.b32.xlu0 %v3662_v39, %s6133_s27  ;;  %2716 = vrot.lane.b32.xlu1 %v2702_v54, %s6132_s25  ;;  %v3413_v52 = vadd.f32 %v3403_v57, %v3375_v3  ;;  %v2835_v3 = vmul.f32 %v6837_v21, %v6722_v11  ;;  %v2739_v57 = vmul.f32 %v8159_v15, %v6839_v24  ;;  %s431_s25 = sand.u32 1, %s6070_s26  }
 0x24e   : > { %v7376_v42 = vpop.permute.xlu0 %3511  ;;  %v7378_v36 = vpop.permute.xlu1 %2480 }
 0x24f   : > { %v3519_v50 = vsel %vm8051_vm14, %v7200_v14, %v7376_v42  ;;  %vm8055_vm14 = vcmask 982016  }
 0x250   : > { %v3528_v41 = vadd.f32 %v3519_v50, %v3489_v9  ;;  %2747 = vrot.lane.b32.xlu0 %v2737_v30, %s6134_s14  ;;  %3670 = vrot.lane.b32.xlu1 %v3659_v16, %s6133_s27  ;;  %v3661_v9 = vmul.f32 %v8157_v4, %v6918_v63  ;;  %v2904_v30 = vsel %vm2900_vm3, %v6980_v61, %v7261_v1 }
 0x251   : > { %v2874_v16 = vadd.f32 %v2865_v31, %v2835_v3  ;;  %v8161_v3 = vld [vmem:[#allocation27_spill] sm:$0xff] }
 0x252   : > { %v7394_v39 = vpop.permute.xlu0 %3515  ;;  %v7396_v54 = vpop.permute.xlu1 %3434 }
 0x253   : > { %v3442_v25 = vsel %vm3440_vm1, %v7093_v53, %v7396_v54  ;;  %v2913_v4 = vadd.f32 %v2904_v30, %v2874_v16  ;;  %v2741_v53 = vmul.f32 %v8159_v15, %v6918_v63  ;;  %v8164_v16 = vld [vmem:[#allocation34_spill] sm:$0xff] }
 0x254   : > { %v7408_v50 = vadd.f32 %v3442_v25, %v3413_v52  ;;  %2751 = vrot.lane.b32.xlu0 %v2739_v57, %s6134_s14  ;;  %3674 = vrot.lane.b32.xlu1 %v3661_v9, %s6133_s27  ;;  %v2487_v52 = vsel %vm2484_vm11, %v7083_v27, %v7378_v36  ;;  %v2832_v57 = vmul.f32 %v6837_v21, %v8161_v3  ;;  %v8162_v9 = vld [vmem:[#allocation33_spill] sm:$0xff]  ;;  %s5778_s27 = sshll.u32 %s431_s25, 5 }
 0x255   : > { %v2457_v30 = vmul.f32 %v8162_v9, %v6722_v11  ;;  %v2862_v58 = vsel %vm2861_vm2, %v8164_v16, %v7003_v28  ;;  %v2836_v27 = vmul.f32 %v6837_v21, %v6839_v24  ;;  %v2738_v3 = vmul.f32 %v8159_v15, %v6722_v11  ;;  %v8166_v16 = vld [vmem:[#allocation56_spill] sm:$0xff]  ;;  %s433_s16 = scalar_lea.vmem [#allocation3], %s5778_s27 }
 0x256   : > { %v7415_v14 = vpop.permute.xlu0 %3550  ;;  %v7417_v61 = vpop.permute.xlu1 %3438  ;;  %v2982_v21 = vsel %vm2978_vm5, %v7001_v18, %v7276_v32  ;;  %v2871_v19 = vadd.f32 %v2862_v58, %v2832_v57  ;;  %vm2562_vm2 = vcmask 588800   ;;  %v2740_v58 = vmul.f32 %v8159_v15, %v7011_v46  ;;  %s5715_s20 = sshll.u32 %s433_s16, 4  ;;  %s7904_s20 = int_to_ptr.vmem [resolvable:$true] %s5715_s20 }
 0x257   : > { %8160 = vst [vmem:[#allocation25_spill] sm:$0xff] %v7415_v14  ;;  %v3558_v31 = vsel %vm8055_vm14, %v7240_v44, %v7415_v14  ;;  %v2943_v44 = vsel %vm2939_vm4, %v7035_v26, %v7164_v43  ;;  %vm2523_vm14 = vcmask 1014784   ;;  %v2875_v14 = vadd.f32 %v7148_v60, %v2836_v27  ;;  %v8167_v27 = vld [vmem:[#allocation45_spill] sm:$0xff]  ;;  %v8168_v60 = vld [vmem:[#allocation35_spill] sm:$0xff]  ;;  %s6016_s30 = scalar_lea.vmem %s7904_s20, 512  ;;  %p6023_p0 = scmp.lt.s32.totalorder %s7904_s20, %s6021_s17 }
 0x258   : > { %v7431_v25 = vadd.f32 %v3558_v31, %v3528_v41  ;;  %2755 = vrot.lane.b32.xlu0 %v2741_v53, %s6134_s14  ;;  %3774 = vperm.xlu1 %6011, %v3771_v10   ;;  %v2952_v41 = vadd.f32 %v2943_v44, %v2913_v4  ;;  %v2496_v31 = vadd.f32 %v2487_v52, %v2457_v30  ;;  %v8165_v53 = vld [vmem:[#allocation32_spill] sm:$0xff]  ;;  %p6017_p11 = scmp.ne.s32.totalorder %s7904_s20, %s6016_s30  ;;  %p6024_p1 = scmp.lt.s32.totalorder %s6022_s22, %s6016_s30 }
 0x259   : > { %v3698_v28 = vmul.f32 %v8165_v53, %v6839_v24  ;;  %v3700_v4 = vmul.f32 %v8165_v53, %v6918_v63  ;;  %v2914_v52 = vadd.f32 %v7261_v1, %v2875_v14  ;;  %v2901_v57 = vsel %vm2900_vm3, %v8168_v60, %v8167_v27 }
 0x25a   : > { %8163 = vst [vmem:[#allocation31_spill] sm:$0xff] %v7431_v25  ;;  %v7444_v25 = vpop.permute.xlu0 %3554  ;;  %v7446_v10 = vpop.permute.xlu1 %2519  ;;  %v2991_v18 = vadd.f32 %v2982_v21, %v2952_v41  ;;  %v2910_v14 = vadd.f32 %v2901_v57, %v2871_v19  ;;  %v8172_v41 = vld [vmem:[#allocation61_spill] sm:$0xff]  ;;  %v8173_v21 = vld [vmem:[#allocation26_spill] sm:$0xff]  ;;  %v3697_v60 = vmul.f32 %v8165_v53, %v6722_v11  ;;  %vm2597_vm3 = vcmask 572416   ;;  %p6018_p12 = pnand %p6017_p11, %p6248_p5  ;;  %p6025_p2 = por %p6024_p1, %p6023_p0 }
 0x25b   : > { %v2526_v26 = vsel %vm2523_vm14, %v8166_v16, %v7446_v10  ;;  %v3020_v15 = vsel %vm3017_vm6, %v7055_v62, %v8172_v41  ;;  %v3736_v27 = vmul.f32 %v8173_v21, %v6722_v11  ;;  %v8174_v62 = vld [vmem:[#allocation59_spill] sm:$0xff] }
 0x25c   : > { %v2535_v44 = vadd.f32 %v2526_v26, %v2496_v31  ;;  %3709 = vrot.lane.b32.xlu0 %v3698_v28, %s6135_s21  ;;  %2749 = vrot.lane.b32.xlu1 %v2738_v3, %s6134_s14  ;;  %v8169_v31 = vld [vmem:[#allocation51_spill] sm:$0xff]  ;;  %v8170_v28 = vld [vmem:[#allocation36_spill] sm:$0xff]  ;;  %v8171_v26 = vld [vmem:[#allocation58_spill] sm:$0xff]  ;;  %v3030_v19 = vadd.f32 %v3020_v15, %v2991_v18  ;;  %p6019_p13 = pneg %p6018_p12 }
 0x25d   : > { %v2940_v3 = vsel %vm2939_vm4, %v8170_v28, %v8169_v31  ;;  %v2953_v28 = vadd.f32 %v7164_v43, %v2914_v52  ;;  %v8175_v43 = vld [vmem:[#allocation48_spill] sm:$0xff]  ;;  %v8176_v52 = vld [vmem:[#allocation37_spill] sm:$0xff]  ;;  %vm8180_vm4 = vcmask 719872  }
 0x25e   : > { %v3055_v30 = vpop.permute.xlu0 %3054  ;;  %v7462_v59 = vpop.permute.xlu1 %2558  ;;  %v2949_v31 = vadd.f32 %v2940_v3, %v2910_v14  ;;  %v2979_v18 = vsel %vm2978_vm5, %v8176_v52, %v8175_v43  ;;  %v3738_v3 = vmul.f32 %v8173_v21, %v7011_v46  ;;  %vm8183_vm5 = vmmov %vm8180_vm4  ;;  %p6026_p3 = pnand %p6025_p2, %p6019_p13 }
 0x25f   : > { %v2565_v16 = vsel %vm2562_vm2, %v8171_v26, %v7462_v59 }
 0x260   : > { %v2574_v1 = vadd.f32 %v2565_v16, %v2535_v44  ;;  %3713 = vrot.lane.b32.xlu0 %v3700_v4, %s6135_s21  ;;  %2753 = vrot.lane.b32.xlu1 %v2740_v58, %s6134_s14  ;;  %v3059_v4 = vsel %vm3056_vm7, %v7023_v17, %v7294_v37  ;;  %v2988_v14 = vadd.f32 %v2979_v18, %v2949_v31  ;;  %s5787_s14 = sshll.u32 %s6231_s29, 9  ;;  %s5701_s29 = scalar_lea.sflag [#allocation4], %s431_s25 }
 0x261   : > { %v2992_v17 = vadd.f32 %v7276_v32, %v2953_v28  ;;  %v3069_v15 = vadd.f32 %v3059_v4, %v3030_v19  ;;  %v8178_v32 = vld [vmem:[#allocation63_spill] sm:$0xff]  ;;  %v3060_v28 = vsel %vm3056_vm7, %v7294_v37, %v3055_v30  ;;  %s7902_s24 = scalar_lea.hbm %s7957_s13, %s5787_s14 }
 0x262   : > { %v3133_v16 = vpop.permute.xlu0 %3132  ;;  %v7485_v44 = vpop.permute.xlu1 %2593  ;;  %v3098_v31 = vsel %vm3095_vm8, %v7075_v13, %v8178_v32 }
 0x263   : > { %v2599_v58 = vsel %vm2597_vm3, %v8174_v62, %v7485_v44  ;;  %v3108_v19 = vadd.f32 %v3098_v31, %v3069_v15 }
 0x264   : > { %v7493_v57 = vadd.f32 %v2599_v58, %v2574_v1  ;;  %3746 = vrot.lane.b32.xlu0 %v3736_v27, %s6136_s23  ;;  %3707 = vrot.lane.b32.xlu1 %v3697_v60, %s6135_s21  ;;  %v3699_v1 = vmul.f32 %v8165_v53, %v7011_v46  ;;  %v8177_v58 = vld [vmem:[#allocation52_spill] sm:$0xff] }
 0x265   : > { %v3027_v43 = vadd.f32 %v8177_v58, %v2988_v14  ;;  %v8179_v14 = vld [vmem:[#allocation50_spill] sm:$0xff]  ;;  %v3737_v58 = vmul.f32 %v8173_v21, %v6839_v24 }
 0x266   : > { %v3250_v11 = vpop.permute.xlu0 %3249  ;;  %v3016_v62 = vpop.permute.xlu1 %3015 }
 0x267   : > { %v3255_v27 = vsel %vm3251_vm12, %v7329_v38, %v3250_v11  ;;  %v3021_v60 = vsel %vm3017_vm6, %v8172_v41, %v3016_v62  ;;  %v3740_v41 = vmul.f32 %v8173_v21, %v7194_v35  ;;  %v3701_v62 = vmul.f32 %v8165_v53, %v7194_v35  ;;  %v2430_v35 = vld [vmem:[%s7949_s5] sm:$0xff] }
 0x268   : > { %v3031_v52 = vadd.f32 %v3021_v60, %v2992_v17  ;;  %3750 = vrot.lane.b32.xlu0 %v3738_v3, %s6136_s23  ;;  %3711 = vrot.lane.b32.xlu1 %v3699_v1, %s6135_s21  ;;  %v3137_v3 = vsel %vm3134_vm9, %v7043_v0, %v7311_v33  ;;  %v3066_v17 = vadd.f32 %v8179_v14, %v3027_v43  ;;  %vm8191_vm6 = vcmask 646144  }
 0x269   : > { %v3138_v0 = vsel %vm3134_vm9, %v7311_v33, %v3133_v16  ;;  %vm8192_vm7 = vmmov %vm8191_vm6  ;;  %vm8199_vm9 = vcmask 982016  }
 0x26a   : > { %v3360_v4 = vpop.permute.xlu0 %3359  ;;  %v3070_v38 = vadd.f32 %v3060_v28, %v3031_v52  ;;  %v3094_v18 = vpop.permute.xlu1 %3093 }
 0x26b   : > { %v7526_v13 = vsel %vm3363_vm15, %v7348_v8, %v3360_v4  ;;  %v7530_v37 = vsel %vm3363_vm15, %v3360_v4, %v7365_v55  ;;  %v3099_v30 = vsel %vm3095_vm8, %v8178_v32, %v3094_v18  ;;  %v3105_v8 = vadd.f32 %v7065_v49, %v3066_v17  ;;  %v8181_v18 = vld [vmem:[#allocation29_spill] sm:$0xff] }
 0x26c   : > { %v3109_v15 = vadd.f32 %v3099_v30, %v3070_v38  ;;  %3754 = vrot.lane.b32.xlu0 %v3740_v41, %s6136_s23  ;;  %3715 = vrot.lane.b32.xlu1 %v3701_v62, %s6135_s21  ;;  %v3147_v55 = vadd.f32 %v3137_v3, %v3108_v19  ;;  %v3176_v49 = vsel %vm3173_vm10, %v7095_v34, %v7214_v12  ;;  %v8186_v17 = vld [vmem:[#allocation57_spill] sm:$0xff]  ;;  %vm2640_vm15 = vcmask 556032  }
 0x26d   : > { %v3144_v16 = vadd.f32 %v7033_v5, %v3105_v8  ;;  %v2459_v32 = vmul.f32 %v8162_v9, %v7011_v46  ;;  %v2455_v41 = vmul.f32 %v8162_v9, %v8181_v18  ;;  %v2458_v62 = vmul.f32 %v8162_v9, %v6839_v24 }
 0x26e   : > { %v2483_v53 = vpop.permute.xlu0 %2482  ;;  %v3148_v1 = vadd.f32 %v3138_v0, %v3109_v15  ;;  %v3172_v60 = vpop.permute.xlu1 %3171  ;;  %v3186_v28 = vadd.f32 %v3176_v49, %v3147_v55  ;;  %v3252_v15 = vsel %vm3251_vm12, %v8186_v17, %v6910_v47  ;;  %v8187_v0 = vld [vmem:[#allocation44_spill] sm:$0xff] }
 0x26f   : > { %v2488_v43 = vsel %vm2484_vm11, %v7378_v36, %v2483_v53  ;;  %v3177_v52 = vsel %vm3173_vm10, %v7214_v12, %v3172_v60  ;;  %v3739_v36 = vmul.f32 %v8173_v21, %v6918_v63  ;;  %v3183_v5 = vadd.f32 %v7085_v23, %v3144_v16  ;;  %v8182_v63 = vld [vmem:[#allocation53_spill] sm:$0xff]  ;;  %v8185_v21 = vld [vmem:[#allocation55_spill] sm:$0xff]  ;;  %vm8200_vm10 = vmmov %vm8199_vm9 }
 0x270   : > { %v3187_v33 = vadd.f32 %v3177_v52, %v3148_v1  ;;  %2433 = vperm.xlu0 %6010, %v2430_v35   ;;  %3748 = vrot.lane.b32.xlu1 %v3737_v58, %s6136_s23  ;;  %v2498_v30 = vadd.f32 %v2483_v53, %v2459_v32  ;;  %v2420_v23 = vld [vmem:[%s7948_s4] sm:$0xff]  ;;  %v8188_v35 = vld [vmem:[#allocation62_spill] sm:$0xff]  ;;  %v2497_v55 = vadd.f32 %v2488_v43, %v2458_v62  ;;  %v8190_v43 = vld [vmem:[#allocation65_spill] sm:$0xff] }
 0x271   : > { %v2524_v8 = vsel %vm2523_vm14, %v8188_v35, %v8187_v0  ;;  %v8194_v35 = vld [vmem:[#allocation47_spill] sm:$0xff] }
 0x272   : > { %v3437_v31 = vpop.permute.xlu0 %3436  ;;  %v3211_v19 = vpop.permute.xlu1 %3210 }
 0x273   : > { %v3443_v4 = vsel %vm3440_vm1, %v7396_v54, %v3437_v31  ;;  %v3444_v38 = vsel %vm3440_vm1, %v3437_v31, %v7417_v61  ;;  %v3216_v12 = vsel %vm8180_vm4, %v7238_v48, %v3211_v19  ;;  %v3226_v34 = vadd.f32 %v3211_v19, %v3187_v33  ;;  %v8184_v61 = vld [vmem:[#allocation40_spill] sm:$0xff] }
 0x274   : > { %v3225_v3 = vadd.f32 %v3216_v12, %v3186_v28  ;;  %3752 = vrot.lane.b32.xlu1 %v3739_v36, %s6136_s23  ;;  %v3213_v54 = vsel %vm8183_vm5, %v8182_v63, %v6920_v6  ;;  %v2485_v48 = vsel %vm2484_vm11, %v8185_v21, %v8184_v61  ;;  %v8189_v28 = vld [vmem:[#allocation46_spill] sm:$0xff]  ;;  %vm3600_vm1 = vcmask 392192  }
 0x275   : > { %v3265_v14 = vadd.f32 %v3250_v11, %v3226_v34  ;;  %v2494_v33 = vadd.f32 %v2485_v48, %v2455_v41  ;;  %v3222_v49 = vadd.f32 %v3213_v54, %v3183_v5  ;;  %vm3678_vm4 = vcmask 343040  }
 0x276   : > { %v2522_v6 = vpop.permute.xlu0 %2521  ;;  %v3264_v1 = vadd.f32 %v3255_v27, %v3225_v3  ;;  %v3285_v60 = vpop.permute.xlu1 %3284  ;;  %v2563_v27 = vsel %vm2562_vm2, %v8190_v43, %v8189_v28  ;;  %v8193_v3 = vld [vmem:[#allocation38_spill] sm:$0xff]  ;;  %vm3717_vm5 = vcmask 318464  }
 0x277   : > { %v2527_v53 = vsel %vm2523_vm14, %v7446_v10, %v2522_v6  ;;  %v2537_v11 = vadd.f32 %v2522_v6, %v2498_v30  ;;  %v3289_v58 = vsel %vm3286_vm13, %v7259_v7, %v3285_v60  ;;  %v3299_v52 = vadd.f32 %v3285_v60, %v3265_v14  ;;  %vm8214_vm13 = vmmov %vm8199_vm9 }
 0x278   : > { %v2536_v16 = vadd.f32 %v2527_v53, %v2497_v55  ;;  %v3298_v47 = vadd.f32 %v3289_v58, %v3264_v1  ;;  %2423 = vperm.xlu1 %6011, %v2420_v23   ;;  %v3261_v32 = vadd.f32 %v3252_v15, %v3222_v49  ;;  %v2533_v31 = vadd.f32 %v2524_v8, %v2494_v33 }
 0x27a   : > { %v2561_v19 = vpop.permute.xlu0 %2560  ;;  %v3321_v36 = vpop.permute.xlu1 %3320  ;;  %v2572_v62 = vadd.f32 %v2563_v27, %v2533_v31  ;;  %v3295_v63 = vadd.f32 %v8193_v3, %v3261_v32 }
 0x27b   : > { %v2566_v10 = vsel %vm2562_vm2, %v7462_v59, %v2561_v19  ;;  %v2576_v12 = vadd.f32 %v2561_v19, %v2537_v11  ;;  %v3327_v7 = vsel %vm8191_vm6, %v7274_v22, %v3321_v36  ;;  %v3328_v34 = vsel %vm8192_vm7, %v3321_v36, %v7292_v2  ;;  %v8197_v36 = vld [vmem:[#allocation39_spill] sm:$0xff] }
 0x27c   : > { %v2575_v5 = vadd.f32 %v2566_v10, %v2536_v16  ;;  %v3337_v18 = vadd.f32 %v3327_v7, %v3298_v47  ;;  %v3338_v41 = vadd.f32 %v3328_v34, %v3299_v52  ;;  %v2606_v8 = vadd.f32 %v8194_v35, %v2572_v62 }
 0x27d   : > { %vm3756_vm6 = vcmask 293888   ;;  %vm4753_vm7 = vcmask 64512  }
 0x27e   : > { %v2596_v54 = vpop.permute.xlu0 %2595  ;;  %v3376_v21 = vadd.f32 %v7526_v13, %v3337_v18  ;;  %v3377_v48 = vadd.f32 %v7530_v37, %v3338_v41  ;;  %v3399_v30 = vpop.permute.xlu1 %3398  ;;  %v497_v13 = vld [vmem:[%s7955_s11] sm:$0xff]  ;;  %v3334_v37 = vadd.f32 %v6930_v56, %v3295_v63  ;;  %v8202_v18 = vld [vmem:[#allocation41_spill] sm:$0xff]  ;;  %v8203_v63 = vld [vmem:[#allocation24_spill] sm:$0xff] }
 0x27f   : > { %v2600_v59 = vsel %vm2597_vm3, %v7485_v44, %v2596_v54  ;;  %v7603_v14 = vadd.f32 %v2596_v54, %v2576_v12  ;;  %v3404_v22 = vsel %vm511_vm0, %v7309_v40, %v3399_v30  ;;  %v3405_v2 = vsel %vm511_vm0, %v3399_v30, %v7327_v45  ;;  %v8206_v30 = vld [vmem:[#allocation17_spill] sm:$0xff] }
 0x280   : > { %v2609_v23 = vadd.f32 %v2600_v59, %v2575_v5  ;;  %v3414_v17 = vadd.f32 %v3404_v22, %v3376_v21  ;;  %v3415_v15 = vadd.f32 %v3405_v2, %v3377_v48  ;;  %v3821_v40 = vsel %vm511_vm0, %v497_v13, 0  ;;  %v8201_v5 = vld [vmem:[#allocation60_spill] sm:$0xff]  ;;  %v8205_v21 = vld [vmem:[#allocation42_spill] sm:$0xff]  ;;  %v8208_v59 = vld [vmem:[#allocation43_spill] sm:$0xff] }
 0x281   : > { %v7624_v11 = vand.u32 4294901760, %v3821_v40  ;;  %v3373_v16 = vadd.f32 %v6932_v20, %v3334_v37  ;;  %vm8195_vm0 = vcmask 1006592   ;;  %v8198_v20 = vld [vmem:[#allocation25_spill] sm:$0xff]  ;;  %v3479_v41 = vsel %vm2484_vm11, %v8202_v18, %v8201_v5  ;;  %v8210_v2 = vld [vmem:[#allocation20_spill] sm:$0xff]  ;;  %v8221_v18 = vld [vmem:[#allocation11_spill] sm:$0xff] }
 0x282   : > { %v3454_v44 = vadd.f32 %v3444_v38, %v3415_v15  ;;  %v7614_v55 = vpop.permute.xlu0 %2630  ;;  %v3453_v6 = vadd.f32 %v3443_v4, %v3414_v17  ;;  %v3476_v1 = vpop.permute.xlu1 %3475  ;;  %vm8196_vm8 = vmmov %vm8195_vm0  ;;  %v8204_v54 = vmov 0.0   ;;  %v8211_v17 = vld [vmem:[#allocation14_spill] sm:$0xff]  ;;  %v8213_v13 = vld [vmem:[#allocation49_spill] sm:$0xff] }
 0x283   : > { %v7618_v45 = vadd.f32 %v7614_v55, %v2606_v8  ;;  %v3481_v60 = vsel %vm2484_vm11, %v7346_v51, %v3476_v1  ;;  %v3482_v53 = vsel %vm2484_vm11, %v3476_v1, %v7363_v29  ;;  %v3891_v4 = vsub.f32 %v3821_v40, %v7624_v11  ;;  %vm8209_vm12 = vmmov %vm8195_vm0  ;;  %v8212_v8 = vld [vmem:[#allocation66_spill] sm:$0xff] }
 0x284   : > { %v3492_v56 = vadd.f32 %v7363_v29, %v3454_v44  ;;  %v3490_v38 = vadd.f32 %v3481_v60, %v7408_v50  ;;  %v3491_v58 = vadd.f32 %v3482_v53, %v3453_v6  ;;  %v3411_v10 = vadd.f32 %v8197_v36, %v3373_v16  ;;  %v8216_v16 = vld [vmem:[#allocation13_spill] sm:$0xff] }
 0x285   : > { %v7637_v32 = vand.u32 4294901760, %v3891_v4  ;;  %v3557_v37 = vsel %vm8214_vm13, %v8213_v13, %v8212_v8 }
 0x286   : > { %v7629_v52 = vpop.permute.xlu0 %2634  ;;  %v3514_v33 = vpop.permute.xlu1 %3513  ;;  %v3531_v49 = vadd.f32 %v7394_v39, %v3492_v56  ;;  %v3450_v48 = vadd.f32 %v8205_v21, %v3411_v10  ;;  %v8225_v21 = vld [vmem:[#allocation15_spill] sm:$0xff] }
 0x287   : > { %v3520_v51 = vsel %vm8195_vm0, %v7376_v42, %v3514_v33  ;;  %v3521_v47 = vsel %vm8196_vm8, %v3514_v33, %v7394_v39  ;;  %v3893_v43 = vsub.f32 %v3891_v4, %v7637_v32  ;;  %vm2808_vm0 = vcmask 474112  }
 0x288   : > { %v3529_v29 = vadd.f32 %v3520_v51, %v3490_v38  ;;  %v3530_v50 = vadd.f32 %v3521_v47, %v3491_v58  ;;  %v3570_v31 = vadd.f32 %v7444_v25, %v3531_v49  ;;  %v3488_v15 = vadd.f32 %v3479_v41, %v3450_v48  ;;  %v8215_v58 = vld [vmem:[#allocation21_spill] sm:$0xff]  ;;  %v8218_v47 = vld [vmem:[#allocation18_spill] sm:$0xff] }
 0x289   : > { %v3894_v39 = vand.u32 4294901760, %v3893_v43  ;;  %vm3807_vm8 = vcmask 375808  }
 0x28a   : > { %v7641_v27 = vpop.permute.xlu0 %2638  ;;  %v3553_v19 = vpop.permute.xlu1 %3552 }
 0x28b   : > { %v3559_v12 = vsel %vm8199_vm9, %v8198_v20, %v3553_v19  ;;  %v3560_v42 = vsel %vm8200_vm10, %v3553_v19, %v7444_v25  ;;  %4360 = vmatmul.mubr.f32.vlgmr.msra.gmra.mrb[4].mxu1 %v3894_v39  ;;  %3895 = vmatmul.mubr.f32.vlgmr.msra.gmra.mrb[4].mxu0 %v3894_v39  ;;  %v8207_v25 = vld [vmem:[#allocation64_spill] sm:$0xff]  ;;  %v8220_v39 = vld [vmem:[#allocation19_spill] sm:$0xff] }
 0x28c   : > { %v3568_v7 = vadd.f32 %v3559_v12, %v3529_v29  ;;  %v3569_v34 = vadd.f32 %v3560_v42, %v3530_v50  ;;  %4377 = vmatpush1.msra.mxu1 %v8203_v63  ;;  %4440 = vmatprep.mubr.f32.mxu1 %v8204_v54  ;;  %v3518_v22 = vsel %vm8209_vm12, %v8208_v59, %v8207_v25  ;;  %v8219_v29 = vld [vmem:[#allocation12_spill] sm:$0xff]  ;;  %v8224_v63 = vld [vmem:[#allocation23_spill] sm:$0xff] }
 0x28d   : > { %3912 = vmatpush1.msra.mxu0 %v8206_v30  ;;  %3975 = vmatprep.mubr.f32.mxu0 %v8204_v54  ;;  %v3527_v1 = vadd.f32 %v3518_v22, %v3488_v15 }
 0x28e   : > { %v3593_v62 = vpop.permute.xlu0 %3592  ;;  %v7651_v3 = vpop.permute.xlu1 %2632  ;;  %4450 = vmatprep.subr.mxu1 %v8210_v2  ;;  %3985 = vmatprep.subr.mxu0 %v8211_v17 }
 0x28f   : > { %v3566_v53 = vadd.f32 %v3557_v37, %v3527_v1  ;;  %v8226_v1 = vld [vmem:[#allocation54_spill] sm:$0xff] }
 0x292   : > { %v3597_v44 = vpop.permute.xlu0 %3596  ;;  %v7666_v6 = vpop.permute.xlu1 %2636 }
 0x293   : > { %v2643_v40 = vsel %vm2640_vm15, %v7629_v52, %v7666_v6  ;;  %4442 = vmatmul.mubr.f32.vlgmr.msra.gmra.mrb[4].mxu1 %v7624_v11  ;;  %3977 = vmatmul.mubr.f32.vlgmr.msra.gmra.mrb[4].mxu0 %v7624_v11 }
 0x294   : > { %v7671_v60 = vadd.f32 %v2643_v40, %v2609_v23  ;;  %4453 = vmatpush1.msra.mxu1 %v8215_v58  ;;  %4516 = vmatprep.mubr.f32.mxu1 %v8204_v54  ;;  %v8217_v23 = vld [vmem:[#allocation31_spill] sm:$0xff]  ;;  %v2486_v40 = vsel %vm2484_vm11, %v8184_v61, %v8226_v1  ;;  %v8228_v58 = vld [vmem:[#allocation56_spill] sm:$0xff]  ;;  %vm2679_vm11 = vcmask 130048  }
 0x295   : > { %3988 = vmatpush1.msra.mxu0 %v8216_v16  ;;  %4051 = vmatprep.mubr.f32.mxu0 %v8204_v54 }
 0x296   : > { %v7675_v56 = vpop.permute.xlu0 %2669  ;;  %v3591_v38 = vpop.permute.xlu1 %3590  ;;  %4526 = vmatprep.subr.mxu1 %v8218_v47  ;;  %4061 = vmatprep.subr.mxu0 %v8219_v29 }
 0x297   : > { %v3601_v33 = vsel %vm3600_vm1, %v3591_v38, %v3593_v62  ;;  %v7680_v49 = vadd.f32 %v3591_v38, %v3566_v53  ;;  %v8227_v53 = vld [vmem:[#allocation28_spill] sm:$0xff] }
 0x298   : > { %v7685_v51 = vadd.f32 %v3601_v33, %v8217_v23  ;;  %v2456_v38 = vmul.f32 %v8162_v9, %v8227_v53  ;;  %v2525_v33 = vsel %vm2523_vm14, %v8187_v0, %v8228_v58  ;;  %v2641_v0 = vsel %vm2640_vm15, %v7614_v55, %v7651_v3 }
 0x299   : > { %vm2718_vm14 = vcmask 113664  }
 0x29a   : > { %v7689_v50 = vpop.permute.xlu0 %2673  ;;  %v3595_v43 = vpop.permute.xlu1 %3594  ;;  %v2495_v16 = vadd.f32 %v2486_v40, %v2456_v38 }
 0x29b   : > { %v3602_v19 = vsel %vm3600_vm1, %v3593_v62, %v3595_v43  ;;  %v3603_v36 = vsel %vm3600_vm1, %v3595_v43, %v3597_v44  ;;  %4519 = vmatmul.mubr.f32.vlgmr.msra.gmra.mrb[4].mxu1 %v3891_v4  ;;  %4054 = vmatmul.mubr.f32.vlgmr.msra.gmra.mrb[4].mxu0 %v3891_v4 }
 0x29c   : > { %v7693_v10 = vadd.f32 %v3602_v19, %v3568_v7  ;;  %v7695_v20 = vadd.f32 %v3603_v36, %v3569_v34  ;;  %4528 = vmatpush1.msra.mxu1 %v8220_v39  ;;  %4591 = vmatprep.mubr.f32.mxu1 %v8204_v54  ;;  %v8222_v7 = vld [vmem:[#allocation22_spill] sm:$0xff]  ;;  %v8223_v34 = vld [vmem:[#allocation16_spill] sm:$0xff]  ;;  %v2534_v43 = vadd.f32 %v2525_v33, %v2495_v16  ;;  %v8229_v19 = vld [vmem:[#allocation59_spill] sm:$0xff] }
 0x29d   : > { %4063 = vmatpush1.msra.mxu0 %v8221_v18  ;;  %4126 = vmatprep.mubr.f32.mxu0 %v8204_v54  ;;  %v2598_v61 = vsel %vm2597_vm3, %v8194_v35, %v8229_v19  ;;  %vm3639_vm3 = vcmask 367616  }
 0x29e   : > { %v7697_v12 = vpop.permute.xlu0 %2677  ;;  %v3599_v42 = vpop.permute.xlu1 %3598  ;;  %4604 = vmatprep.subr.mxu1 %v8222_v7  ;;  %4139 = vmatprep.subr.mxu0 %v8223_v34 }
 0x29f   : > { %v3604_v5 = vsel %vm3600_vm1, %v3597_v44, %v3599_v42  ;;  %v2642_v42 = vsel %vm2640_vm15, %v7651_v3, %v7629_v52  ;;  %v2644_v52 = vsel %vm2640_vm15, %v7666_v6, %v7641_v27 }
 0x2a0   : > { %v7704_v41 = vadd.f32 %v3604_v5, %v3570_v31  ;;  %v2652_v55 = vadd.f32 %v2642_v42, %v7493_v57  ;;  %v2654_v1 = vadd.f32 %v2644_v52, %v7603_v14 }
 0x2a2   : > { %v7708_v4 = vpop.permute.xlu0 %3629  ;;  %v2672_v48 = vpop.permute.xlu1 %2671 }
 0x2a3   : > { %4595 = vmatmul.mubr.f32.vlgmr.msra.gmra.mrb[4].mxu1 %v7637_v32  ;;  %4130 = vmatmul.mubr.f32.vlgmr.msra.gmra.mrb[4].mxu0 %v7637_v32  ;;  %v2680_v35 = vsel %vm2679_vm11, %v7675_v56, %v2672_v48  ;;  %v2681_v5 = vsel %vm2679_vm11, %v2672_v48, %v7689_v50 }
 0x2a4   : > { %4608 = vmatpush1.msra.mxu1 %v8224_v63  ;;  %4671 = vmatprep.mubr.f32.mxu1 %v8204_v54 }
 0x2a5   : > { %4143 = vmatpush1.msra.mxu0 %v8225_v21  ;;  %4206 = vmatprep.mubr.f32.mxu0 %v8204_v54  ;;  %v2691_v21 = vadd.f32 %v2681_v5, %v2652_v55 }
 0x2a6   : > { %v7712_v62 = vpop.permute.xlu0 %3633  ;;  %4680 = vmatprep.subr.mxu1 %v8218_v47  ;;  %4215 = vmatprep.subr.mxu0 %v8219_v29  ;;  %v2676_v25 = vpop.permute.xlu1 %2675  ;;  %v2564_v29 = vsel %vm2562_vm2, %v8189_v28, %v8171_v26  ;;  %v2689_v26 = vadd.f32 %v7675_v56, %v7618_v45  ;;  %vm2757_vm2 = vcmask 97280  }
 0x2a7   : > { %v2573_v36 = vadd.f32 %v2564_v29, %v2534_v43  ;;  %v2682_v56 = vsel %vm2679_vm11, %v7689_v50, %v2676_v25  ;;  %v2683_v48 = vsel %vm2679_vm11, %v2676_v25, %v7697_v12 }
 0x2a8   : > { %v2692_v50 = vadd.f32 %v2682_v56, %v7671_v60  ;;  %v2693_v16 = vadd.f32 %v2683_v48, %v2654_v1 }
 0x2a9   : > { %v2607_v28 = vadd.f32 %v2598_v61, %v2573_v36 }
 0x2aa   : > { %v7720_v31 = vpop.permute.xlu0 %3637 }
 0x2ab   : > { %4673 = vmatmul.mubr.f32.vlgmr.msra.gmra.mrb[4].mxu1 %v7624_v11  ;;  %4208 = vmatmul.mubr.f32.vlgmr.msra.gmra.mrb[4].mxu0 %v7624_v11  ;;  %v2651_v7 = vadd.f32 %v2641_v0, %v2607_v28 }
 0x2ac   : > { %4682 = vmatpush1.msra.mxu1 %v8220_v39  ;;  %4745 = vmatprep.mubr.f32.mxu1 %v8204_v54 }
 0x2ad   : > { %4217 = vmatpush1.msra.mxu0 %v8221_v18  ;;  %4280 = vmatprep.mubr.f32.mxu0 %v8204_v54  ;;  %v2690_v63 = vadd.f32 %v2680_v35, %v2651_v7 }
 0x2ae   : > { %v2711_v32 = vpop.permute.xlu0 %2710 }
 0x2b2   : > { %v2715_v30 = vpop.permute.xlu0 %2714 }
 0x2b3   : > { %4747 = vmatmul.mubr.f32.vlgmr.msra.gmra.mrb[4].mxu1 %v7624_v11  ;;  %4282 = vmatmul.mubr.f32.vlgmr.msra.gmra.mrb[4].mxu0 %v7624_v11 }
 0x2b4   : > { %5288 = vmatprep.mubr.f32.mxu1 %v8204_v54  ;;  %4823 = vmatprep.mubr.f32.mxu0 %v8204_v54 }
 0x2b6   : > { %v7732_v59 = vpop.permute.xlu0 %3668 }
 0x2b7   : > { %v7734_v22 = vpop.permute.xlu1 %2775 }
 0x2ba   : > { %v7738_v17 = vpop.permute.xlu0 %3672 }
 0x2bb   : > { %v7736_v2 = vpop.permute.xlu1 %3631 }
 0x2be   : > { %v7742_v8 = vpop.permute.xlu0 %3676 }
 0x2bf   : > { %v7740_v15 = vpop.permute.xlu1 %3635 }
 0x2c2   : > { %v2748_v44 = vpop.permute.xlu0 %2747 }
 0x2c3   : > { %v2709_v13 = vpop.permute.xlu1 %2708 }
 0x2c4   : > { %v2728_v18 = vadd.f32 %v2709_v13, %v2689_v26  ;;  %v2719_v45 = vsel %vm2718_vm14, %v2709_v13, %v2711_v32 }
 0x2c5   : > { %v2729_v40 = vadd.f32 %v2719_v45, %v2690_v63  ;;  %v3640_v63 = vsel %vm3639_vm3, %v7708_v4, %v7736_v2 }
 0x2c6   : > { %v2752_v23 = vpop.permute.xlu0 %2751  ;;  %v2767_v57 = vadd.f32 %v2748_v44, %v2728_v18  ;;  %v3650_v1 = vadd.f32 %v3640_v63, %v7685_v51 }
 0x2c7   : > { %v2713_v37 = vpop.permute.xlu1 %2712 }
 0x2c8   : > { %v2720_v3 = vsel %vm2718_vm14, %v2711_v32, %v2713_v37  ;;  %v2721_v6 = vsel %vm2718_vm14, %v2713_v37, %v2715_v30  ;;  %v2778_v25 = vadd.f32 %v7734_v22, %v2767_v57 }
 0x2c9   : > { %v2730_v38 = vadd.f32 %v2720_v3, %v2691_v21  ;;  %v2731_v14 = vadd.f32 %v2721_v6, %v2692_v50  ;;  %v3649_v21 = vadd.f32 %v7708_v4, %v7680_v49  ;;  %v3642_v49 = vsel %vm3639_vm3, %v7712_v62, %v7740_v15 }
 0x2ca   : > { %v2756_v39 = vpop.permute.xlu0 %2755  ;;  %v2783_v26 = vmax.f32 %v2778_v25, 0.0  ;;  %v3643_v4 = vsel %vm3639_vm3, %v7740_v15, %v7720_v31  ;;  %v3652_v31 = vadd.f32 %v3642_v49, %v7695_v20 }
 0x2cb   : > { %v2717_v11 = vpop.permute.xlu1 %2716  ;;  %v3688_v57 = vadd.f32 %v7732_v59, %v3649_v21  ;;  %v3653_v15 = vadd.f32 %v3643_v4, %v7704_v41  ;;  %v8230_v21 = vld [vmem:[#allocation30_spill] sm:$0xff] }
 0x2cc   : > { %v2722_v32 = vsel %vm2718_vm14, %v2715_v30, %v2717_v11 }
 0x2cd   : > { %v2732_v43 = vadd.f32 %v2722_v32, %v2693_v16 }
 0x2ce   : > { %v3710_v58 = vpop.permute.xlu0 %3709 }
 0x2cf   : > { %v7752_v47 = vpop.permute.xlu1 %3670 }
 0x2d0   : > { %v3679_v56 = vsel %vm3678_vm4, %v7732_v59, %v7752_v47  ;;  %v3680_v48 = vsel %vm3678_vm4, %v7752_v47, %v7738_v17 }
 0x2d1   : > { %v3689_v6 = vadd.f32 %v3679_v56, %v3650_v1 }
 0x2d2   : > { %v3714_v11 = vpop.permute.xlu0 %3713 }
 0x2d3   : > { %v7760_v9 = vpop.permute.xlu1 %3674 }
 0x2d4   : > { %v3681_v51 = vsel %vm3678_vm4, %v7738_v17, %v7760_v9 }
 0x2d7   : > { %v7775_v34 = vpop.permute.xlu1 %3774 }
 0x2db   : > { %v2750_v27 = vpop.permute.xlu1 %2749 }
 0x2dc   : > { %v2758_v13 = vsel %vm2757_vm2, %v2748_v44, %v2750_v27  ;;  %v2759_v33 = vsel %vm2757_vm2, %v2750_v27, %v2752_v23 }
 0x2dd   : > { %v2768_v29 = vadd.f32 %v2758_v13, %v2729_v40  ;;  %v2769_v12 = vadd.f32 %v2759_v33, %v2730_v38 }
 0x2df   : > { %v2779_v19 = vadd.f32 %v7734_v22, %v2768_v29  ;;  %v2780_v61 = vadd.f32 %v7734_v22, %v2769_v12  ;;  %v2754_v37 = vpop.permute.xlu1 %2753  ;;  %v3691_v12 = vadd.f32 %v3681_v51, %v3652_v31 }
 0x2e0   : > { %v2760_v30 = vsel %vm2757_vm2, %v2752_v23, %v2754_v37  ;;  %v2761_v44 = vsel %vm2757_vm2, %v2754_v37, %v2756_v39  ;;  %v2788_v23 = vmin.f32 %v2783_v26, 6.0  ;;  %v3747_v39 = vpop.permute.xlu0 %3746 }
 0x2e1   : > { %v2784_v36 = vmax.f32 %v2779_v19, 0.0  ;;  %v2785_v0 = vmax.f32 %v2780_v61, 0.0  ;;  %v2770_v60 = vadd.f32 %v2760_v30, %v2731_v14  ;;  %v2771_v42 = vadd.f32 %v2761_v44, %v2732_v43 }
 0x2e3   : > { %v2789_v28 = vmin.f32 %v2784_v36, 6.0  ;;  %v2790_v35 = vmin.f32 %v2785_v0, 6.0  ;;  %v2781_v5 = vadd.f32 %v7734_v22, %v2770_v60  ;;  %v2782_v18 = vadd.f32 %v7734_v22, %v2771_v42  ;;  %v3708_v7 = vpop.permute.xlu1 %3707 }
 0x2e4   : > { %v3641_v22 = vsel %vm3639_vm3, %v7736_v2, %v7712_v62  ;;  %v3718_v27 = vsel %vm3717_vm5, %v3708_v7, %v3710_v58  ;;  %v3751_v32 = vpop.permute.xlu0 %3750  ;;  %v3727_v62 = vadd.f32 %v3708_v7, %v3688_v57 }
 0x2e5   : > { %v2787_v55 = vmax.f32 %v2782_v18, 0.0  ;;  %2802 = vrot.lane.b32.xlu0 %v2790_v35, %s6137_s0  ;;  %2800 = vrot.lane.b32.xlu1 %v2789_v28, %s6137_s0  ;;  %v2786_v52 = vmax.f32 %v2781_v5, 0.0  ;;  %v3651_v2 = vadd.f32 %v3641_v22, %v7693_v10  ;;  %v3682_v10 = vsel %vm3678_vm4, %v7760_v9, %v7742_v8 }
 0x2e6   : > { %v3728_v13 = vadd.f32 %v3718_v27, %v3689_v6  ;;  %v3692_v25 = vadd.f32 %v3682_v10, %v3653_v15  ;;  %v3766_v9 = vadd.f32 %v3747_v39, %v3727_v62 }
 0x2e7   : > { %v2792_v45 = vmin.f32 %v2787_v55, 6.0  ;;  %v3712_v3 = vpop.permute.xlu1 %3711  ;;  %v2791_v40 = vmin.f32 %v2786_v52, 6.0  ;;  %v3690_v59 = vadd.f32 %v3680_v48, %v3651_v2  ;;  %v498_v52 = vld [vmem:[%s7956_s12] sm:$0xff] }
 0x2e8   : > { %v3719_v47 = vsel %vm3717_vm5, %v3710_v58, %v3712_v3  ;;  %v3720_v50 = vsel %vm3717_vm5, %v3712_v3, %v3714_v11  ;;  %v3755_v43 = vpop.permute.xlu0 %3754  ;;  %v3777_v42 = vadd.f32 %v7775_v34, %v3766_v9 }
 0x2e9   : > { %2798 = vrot.lane.b32.xlu1 %v2788_v23, %s6137_s0  ;;  %2806 = vrot.lane.b32.xlu0 %v2792_v45, %s6137_s0  ;;  %v3729_v58 = vadd.f32 %v3719_v47, %v3690_v59  ;;  %v3730_v20 = vadd.f32 %v3720_v50, %v3691_v12 }
 0x2ea   : > { %v3782_v55 = vmax.f32 %v3777_v42, 0.0 }
 0x2eb   : > { %v3716_v38 = vpop.permute.xlu1 %3715 }
 0x2ec   : > { %v3721_v16 = vsel %vm3717_vm5, %v3714_v11, %v3716_v38  ;;  %v3787_v45 = vmin.f32 %v3782_v55, 6.0 }
 0x2ed   : > { %2804 = vrot.lane.b32.xlu1 %v2791_v40, %s6137_s0  ;;  %v3731_v19 = vadd.f32 %v3721_v16, %v3692_v25 }
 0x2ef   : > { %v3749_v33 = vpop.permute.xlu1 %3748  ;;  %v2434_v22 = vpop.permute.xlu0 %2433 }
 0x2f0   : > { %v3757_v29 = vsel %vm3756_vm6, %v3747_v39, %v3749_v33  ;;  %v3758_v17 = vsel %vm3756_vm6, %v3749_v33, %v3751_v32 }
 0x2f1   : > { %v3767_v14 = vadd.f32 %v3757_v29, %v3728_v13  ;;  %v3768_v8 = vadd.f32 %v3758_v17, %v3729_v58 }
 0x2f3   : > { %v3778_v41 = vadd.f32 %v7775_v34, %v3767_v14  ;;  %v3779_v61 = vadd.f32 %v7775_v34, %v3768_v8  ;;  %v3753_v37 = vpop.permute.xlu1 %3752 }
 0x2f4   : > { %v3759_v30 = vsel %vm3756_vm6, %v3751_v32, %v3753_v37  ;;  %v3760_v44 = vsel %vm3756_vm6, %v3753_v37, %v3755_v43 }
 0x2f5   : > { %v3783_v11 = vmax.f32 %v3778_v41, 0.0  ;;  %v3784_v36 = vmax.f32 %v3779_v61, 0.0  ;;  %v3769_v0 = vadd.f32 %v3759_v30, %v3730_v20  ;;  %v3770_v60 = vadd.f32 %v3760_v44, %v3731_v19 }
 0x2f7   : > { %v3788_v26 = vmin.f32 %v3783_v11, 6.0  ;;  %v3789_v28 = vmin.f32 %v3784_v36, 6.0  ;;  %v3780_v35 = vadd.f32 %v7775_v34, %v3769_v0  ;;  %v3781_v5 = vadd.f32 %v7775_v34, %v3770_v60  ;;  %v2424_v3 = vpop.permute.xlu1 %2423  ;;  %v496_v34 = vld [vmem:[%s7954_s10] sm:$0xff] }
 0x2f8   : > { %v2427_v56 = vmul.f32 %v2424_v3, %v8230_v21  ;;  %v4755_v48 = vsel %vm4753_vm7, %v496_v34, 0  ;;  %v2428_v57 = vmul.f32 %v2424_v3, %v6839_v24  ;;  %v2429_v1 = vmul.f32 %v2424_v3, %v7011_v46 }
 0x2f9   : > { %v3785_v18 = vmax.f32 %v3780_v35, 0.0  ;;  %v3786_v7 = vmax.f32 %v3781_v5, 0.0  ;;  %3801 = vrot.lane.b32.xlu1 %v3789_v28, %s6138_s1  ;;  %3799 = vrot.lane.b32.xlu0 %v3788_v26, %s6138_s1  ;;  %v7852_v49 = vand.u32 4294901760, %v4755_v48  ;;  %v2426_v4 = vmul.f32 %v2424_v3, %v8227_v53 }
 0x2fa   : > { %v2437_v40 = vadd.f32 %v2434_v22, %v2427_v56  ;;  %v2438_v47 = vadd.f32 %v2434_v22, %v2428_v57  ;;  %v2439_v6 = vadd.f32 %v2434_v22, %v2429_v1 }
 0x2fb   : > { %v3790_v23 = vmin.f32 %v3785_v18, 6.0  ;;  %v3791_v39 = vmin.f32 %v3786_v7, 6.0  ;;  %v7856_v59 = vsub.f32 %v4755_v48, %v7852_v49  ;;  %v2436_v10 = vadd.f32 %v2434_v22, %v2426_v4 }
 0x2fc   : > { %v2441_v27 = vmax.f32 %v2437_v40, 0.0  ;;  %v2442_v62 = vmax.f32 %v2438_v47, 0.0  ;;  %v2443_v31 = vmax.f32 %v2439_v6, 0.0 }
 0x2fd   : > { %3805 = vrot.lane.b32.xlu1 %v3791_v39, %s6138_s1  ;;  %3803 = vrot.lane.b32.xlu0 %v3790_v23, %s6138_s1  ;;  %v7860_v15 = vand.u32 4294901760, %v7856_v59  ;;  %v2440_v29 = vmax.f32 %v2436_v10, 0.0 }
 0x2fe   : > { %v2445_v46 = vmin.f32 %v2441_v27, 6.0  ;;  %v2446_v17 = vmin.f32 %v2442_v62, 6.0  ;;  %v2447_v12 = vmin.f32 %v2443_v31, 6.0 }
 0x2ff   : > { %v4827_v14 = vsub.f32 %v7856_v59, %v7860_v15  ;;  %v2444_v30 = vmin.f32 %v2440_v29, 6.0 }
 0x301   : > { %5689 = vperm.xlu1 %6011, %v498_v52   ;;  %3797 = vrot.lane.b32.xlu0 %v3787_v45, %s6138_s1  ;;  %v4828_v0 = vand.u32 4294901760, %v4827_v14 }
 0x357   : > { %v2801_v63 = vpop.permute.xlu1 %2800  ;;  %v2803_v2 = vpop.permute.xlu0 %2802 }
 0x358   : > { %v2810_v24 = vsel %vm2808_vm0, %v2801_v63, %v2803_v2 }
 0x359   : > { %v2818_v13 = vadd.f32 %v2810_v24, %v2445_v46 }
 0x35b   : > { %v2799_v38 = vpop.permute.xlu1 %2798  ;;  %v2807_v32 = vpop.permute.xlu0 %2806 }
 0x35c   : > { %v2809_v41 = vsel %vm2808_vm0, %v2799_v38, %v2801_v63 }
 0x35d   : > { %v2817_v60 = vadd.f32 %v2809_v41, %v2444_v30 }
 0x35f   : > { %v2805_v51 = vpop.permute.xlu1 %2804 }
 0x360   : > { %v2811_v33 = vsel %vm2808_vm0, %v2803_v2, %v2805_v51  ;;  %v2812_v50 = vsel %vm2808_vm0, %v2805_v51, %v2807_v32 }
 0x361   : > { %v2819_v8 = vadd.f32 %v2811_v33, %v2446_v17  ;;  %v2820_v9 = vadd.f32 %v2812_v50, %v2447_v12 }
 0x36b   : > { %v3800_v53 = vpop.permute.xlu0 %3799  ;;  %v3802_v58 = vpop.permute.xlu1 %3801 }
 0x36c   : > { %v3809_v16 = vsel %vm3807_vm8, %v3800_v53, %v3802_v58 }
 0x36d   : > { %v3817_v25 = vadd.f32 %v3809_v16, %v2818_v13 }
 0x36f   : > { %v7867_v43 = vand.u32 4294901760, %v3817_v25  ;;  %v3804_v20 = vpop.permute.xlu0 %3803  ;;  %v3806_v19 = vpop.permute.xlu1 %3805 }
 0x370   : > { %v3810_v61 = vsel %vm3807_vm8, %v3802_v58, %v3804_v20  ;;  %v3811_v37 = vsel %vm3807_vm8, %v3804_v20, %v3806_v19 }
 0x371   : > { %v4836_v44 = vsub.f32 %v3817_v25, %v7867_v43  ;;  %v3818_v11 = vadd.f32 %v3810_v61, %v2819_v8  ;;  %v3819_v36 = vadd.f32 %v3811_v37, %v2820_v9  ;;  %4758 = vmatprep.subr.mxu0 %v7867_v43 }
 0x373   : > { %v5224_v42 = vand.u32 4294901760, %v3818_v11  ;;  %v5222_v26 = vand.u32 4294901760, %v3819_v36  ;;  %v3798_v28 = vpop.permute.xlu0 %3797  ;;  %v4837_v35 = vand.u32 4294901760, %v4836_v44 }
 0x374   : > { %v3808_v5 = vsel %vm3807_vm8, %v3798_v28, %v3800_v53 }
 0x375   : > { %v5307_v18 = vsub.f32 %v3818_v11, %v5224_v42  ;;  %v5301_v7 = vsub.f32 %v3819_v36, %v5222_v26  ;;  %v3816_v55 = vadd.f32 %v3808_v5, %v2817_v60  ;;  %5223 = vmatprep.subr.mxu1 %v5222_v26  ;;  %v4838_v23 = vsub.f32 %v4836_v44, %v4837_v35 }
 0x376   : > { %5225 = vmatpush1.msra.mxu1 %v5224_v42 }
 0x377   : > { %v5308_v39 = vand.u32 4294901760, %v5307_v18  ;;  %v4759_v52 = vand.u32 4294901760, %v3816_v55  ;;  %5294 = vmatmul.mubr.f32.vlgmr.msra.gmra.mrb[4].mxu1 %v4828_v0  ;;  %v4839_v45 = vand.u32 4294901760, %v4838_v23  ;;  %v5302_v3 = vand.u32 4294901760, %v5301_v7 }
 0x378   : > { %5374 = vmatprep.mubr.f32.mxu1 %v8204_v54 }
 0x379   : > { %v4842_v63 = vsub.f32 %v3816_v55, %v4759_v52  ;;  %4760 = vmatpush1.msra.mxu0 %v4759_v52  ;;  %v5303_v34 = vsub.f32 %v5301_v7, %v5302_v3  ;;  %v5309_v22 = vsub.f32 %v5307_v18, %v5308_v39 }
 0x37a   : > { %4829 = vmatmul.mubr.f32.vlgmr.msra.gmra.mrb[4].mxu0 %v4828_v0  ;;  %4840 = vmatprep.subr.mxu0 %v4839_v45 }
 0x37b   : > { %v4843_v21 = vand.u32 4294901760, %v4842_v63  ;;  %v5304_v56 = vand.u32 4294901760, %v5303_v34  ;;  %v5310_v48 = vand.u32 4294901760, %v5309_v22  ;;  %4909 = vmatprep.mubr.f32.mxu0 %v8204_v54 }
 0x37d   : > { %5305 = vmatprep.subr.mxu1 %v5304_v56  ;;  %v4844_v57 = vsub.f32 %v4842_v63, %v4843_v21 }
 0x37e   : > { %5311 = vmatpush1.msra.mxu1 %v5310_v48 }
 0x37f   : > { %5376 = vmatmul.mubr.f32.vlgmr.msra.gmra.mrb[4].mxu1 %v7852_v49  ;;  %5384 = vmatprep.subr.mxu1 %v5301_v7  ;;  %v4845_v1 = vand.u32 4294901760, %v4844_v57 }
 0x380   : > { %5387 = vmatpush1.msra.mxu1 %v5307_v18  ;;  %5450 = vmatprep.mubr.f32.mxu1 %v8204_v54  ;;  %v5690_v2 = vpop.permute.xlu1 %5689 }
 0x381   : > { %4846 = vmatpush1.msra.mxu0 %v4845_v1  ;;  %5460 = vmatprep.subr.mxu1 %v5222_v26 }
 0x382   : > { %4911 = vmatmul.mubr.f32.vlgmr.msra.gmra.mrb[4].mxu0 %v7852_v49  ;;  %4919 = vmatprep.subr.mxu0 %v4836_v44 }
 0x383   : > { %4922 = vmatpush1.msra.mxu0 %v4842_v63  ;;  %4985 = vmatprep.mubr.f32.mxu0 %v8204_v54 }
 0x384   : > { %4995 = vmatprep.subr.mxu0 %v7867_v43 }
 0x387   : > { %5453 = vmatmul.mubr.f32.vlgmr.msra.gmra.mrb[4].mxu1 %v7856_v59 }
 0x388   : > { %5462 = vmatpush1.msra.mxu1 %v5224_v42  ;;  %5525 = vmatprep.mubr.f32.mxu1 %v8204_v54 }
 0x389   : > { %5538 = vmatprep.subr.mxu1 %v5302_v3 }
 0x38a   : > { %4988 = vmatmul.mubr.f32.vlgmr.msra.gmra.mrb[4].mxu0 %v7856_v59 }
 0x38b   : > { %4997 = vmatpush1.msra.mxu0 %v4759_v52  ;;  %5060 = vmatprep.mubr.f32.mxu0 %v8204_v54 }
 0x38c   : > { %5073 = vmatprep.subr.mxu0 %v4837_v35 }
 0x38f   : > { %5529 = vmatmul.mubr.f32.vlgmr.msra.gmra.mrb[4].mxu1 %v7860_v15 }
 0x390   : > { %5542 = vmatpush1.msra.mxu1 %v5308_v39  ;;  %5605 = vmatprep.mubr.f32.mxu1 %v8204_v54 }
 0x391   : > { %5614 = vmatprep.subr.mxu1 %v5222_v26 }
 0x392   : > { %5064 = vmatmul.mubr.f32.vlgmr.msra.gmra.mrb[4].mxu0 %v7860_v15 }
 0x393   : > { %5077 = vmatpush1.msra.mxu0 %v4843_v21  ;;  %5140 = vmatprep.mubr.f32.mxu0 %v8204_v54 }
 0x394   : > { %5149 = vmatprep.subr.mxu0 %v7867_v43 }
 0x397   : > { %5607 = vmatmul.mubr.f32.vlgmr.msra.gmra.mrb[4].mxu1 %v7852_v49 }
 0x398   : > { %5616 = vmatpush1.msra.mxu1 %v5224_v42  ;;  %5679 = vmatprep.mubr.f32.mxu1 %v8204_v54 }
 0x39a   : > { %5142 = vmatmul.mubr.f32.vlgmr.msra.gmra.mrb[4].mxu0 %v7852_v49 }
 0x39b   : > { %5151 = vmatpush1.msra.mxu0 %v4759_v52  ;;  %5214 = vmatprep.mubr.f32.mxu0 %v8204_v54 }
 0x39f   : > { %5681 = vmatmul.mubr.f32.vlgmr.msra.gmra.mrb[4].mxu1 %v7852_v49 }
 0x3a2   : > { %5216 = vmatmul.mubr.f32.vlgmr.msra.gmra.mrb[4].mxu0 %v7852_v49 }
 0x472   : > { %v5682_v40 = vpop.f32.mrb[4].mxu1 }
 0x473   : > { %v5694_v38 = vadd.f32 %v5690_v2, %v5682_v40  ;;  %v5684_v4 = vpop.f32.mrb[5].mxu1 }
 0x474   : > { %v5695_v27 = vadd.f32 %v5690_v2, %v5684_v4 }
 0x475   : > { %5698 = vst [vmem:[%s433_s16 + $0x10] sm:$0xff] %v5694_v38  ;;  %v5217_v47 = vpop.f32.mrb[4].mxu0 }
 0x476   : > { %5699 = vst [vmem:[%s433_s16 + $0x18] sm:$0xff] %v5695_v27  ;;  %v5692_v6 = vadd.f32 %v5690_v2, %v5217_v47  ;;  %v5219_v54 = vpop.f32.mrb[5].mxu0 }
 0x477   : > { %v5693_v59 = vadd.f32 %v5690_v2, %v5219_v54 }
 0x478   : > { %5696 = vst [vmem:[%s433_s16] sm:$0xff] %v5692_v6 }
 0x479   : > { %5697 = vst [vmem:[%s433_s16 + $0x8] sm:$0xff] %v5693_v59 }
 0x47a   : > { %6029 = shalt.err (!%p6026_p3)
}
 0x47b   : > { %s6030_s19 = scalar_lea.hbm %s7902_s24, 512  ;;  %s6034_s2 = scalar_lea.hbm %s7957_s13, 1024 }
 0x47c   : > { %p6031_p4 = scmp.ne.s32.totalorder %s7902_s24, %s6030_s19  ;;  %p6035_p9 = scmp.lt.u32.totalorder %s7902_s24, %s7957_s13 }
 0x47d   : > { %p6036_p10 = scmp.lt.u32.totalorder %s6034_s2, %s6030_s19  ;;  %p6038_p12 = scmp.lt.u32.totalorder %s6030_s19, %s7902_s24 }
 0x47e   : > { %p6032_p7 = pnand %p6031_p4, %p6248_p5 }
 0x47f   : > { %p6037_p11 = por %p6036_p10, %p6035_p9 }
 0x480   : > { %p6033_p8 = pneg %p6032_p7 }
 0x481   : > { %p6039_p13 = por %p6038_p12, %p6037_p11 }
 0x483   : > { %p6040_p0 = pnand %p6039_p13, %p6033_p8 }
 0x485   : > { %6043 = shalt.err (!%p6040_p0)
}
 0x486   : > { %5880 = dma.vmem_to_hbm [thread:$0]  (%p6248_p5), %s7904_s20, 512, %s7902_s24, %s5701_s29  }
 0x487 PF: > { %s8231_s8 = sld [smem:[#allocation6_spill]]  ;;  %p5886_p1 = scmp.ge.s32.totalorder %s6078_s28, 2 }
 0x489   : > { %p5883_p2 = pnand %p5886_p1, %p6252_p6 }
 0x48d   : > { %s5727_s27 = sand.u32 1, %s8231_s8  }
 0x48e   : > { %s5728_s14 = scalar_lea.sflag [#allocation4], %s5727_s27 }
 0x48f   : > { %6061 = dma.done.wait (!%p5883_p2), %s5728_s14, 512  }
 0x490   : > { %6063 = vsyncadd (!%p5883_p2), %s5728_s14, 4294966784  ;;  %s8233_s28 = sld [smem:[#allocation8_spill]]  ;;  %s8234_s16 = sld [smem:[#allocation7_spill]] }
 0x491   : > { %s8235_s27 = sld [smem:[#allocation9_spill]]  ;;  %s8236_s25 = smov %s6070_s26 }
 0x496   : > { %p23_p3 = scmp.ge.s32.totalorder %s8233_s28, 4   ;;  %s8237_s26 = smov %s8234_s16 }
 0x498   :  { %25 = sbr.rel (!%p23_p3) target bundleno = 10 (0xa), region = 107 }
 0x49f   :  { %5733 = vsyncpa [#allocation4], 1 }
 0x4a0   :  { %5735 = vsyncpa [#allocation4 + $0x1], 1 }

</bundles_post_ra>
